<compile_context>
chip_gen: v7x
topology: tpu7x:2x2x1
jax: 0.10.0
libtpu: 0.0.40
codegen_flags: <defaults>
</compile_context>

<pallas_src>
import functools

import jax
import jax.numpy as jnp
from jax.experimental import pallas as pl
from jax.experimental.pallas import tpu as pltpu

EPS = 1e-5
LANE = 128
_VMEM_LIMIT = 48 * 1024 * 1024


def _pad_to_lane(c):
    return ((c + LANE - 1) // LANE) * LANE


def _pick_tile(m, target=512):
    """Largest divisor of m that is <= target and sublane aligned (mult. of 8)."""
    for t in range(min(m, target), 0, -1):
        if m % t == 0 and (t % 8 == 0 or t == m):
            return t
    return m


def _pad_lane_2d(a, rows_p, cols_p):
    r, c = a.shape
    return jnp.pad(a, ((0, rows_p - r), (0, cols_p - c)))


# ---------------- in-kernel helpers ----------------

def _accumulate_stats(y, stats_ref):
    """Accumulate per-channel sum / sum-of-squares across the grid axis."""
    @pl.when(pl.program_id(0) == 0)
    def _():
        stats_ref[...] = jnp.zeros_like(stats_ref)
    stats_ref[0:1, :] += jnp.sum(y, axis=0, keepdims=True)
    stats_ref[1:2, :] += jnp.sum(y * y, axis=0, keepdims=True)


# ---------------- kernels ----------------

def matmul_stats_kernel(x_ref, w_ref, y_ref, stats_ref):
    # stage 1: 1x1 conv as (tile_m, Cin) @ (Cin, Cmid), BN stats pass 1 fused.
    y = jnp.dot(x_ref[...], w_ref[...], preferred_element_type=jnp.float32)
    y_ref[...] = y
    _accumulate_stats(y, stats_ref)


def bnrelu_matmul_stats_kernel(x_ref, scale_ref, shift_ref, w_ref, y_ref, stats_ref):
    # stage 3: previous stage's BN+ReLU fused on the input, 1x1 conv, stats pass 1.
    xn = jnp.maximum(x_ref[...] * scale_ref[...] + shift_ref[...], 0.0)
    y = jnp.dot(xn.astype(jnp.bfloat16), w_ref[...],
                preferred_element_type=jnp.float32)
    y_ref[...] = y
    _accumulate_stats(y, stats_ref)


def conv3x3_bnrelu_stats_kernel(x_ref, scale_ref, shift_ref, w_ref, y_ref,
                                stats_ref, xp_ref, *, stride, h, w, h_out, w_out):
    # stage 2: BN1+ReLU fused on the input, 3x3 conv (pad=1, stride), stats pass 1.
    # One image per grid step.  The zero-padded spatial window lives in a VMEM
    # scratch whose interior starts at W offset 8 (sublane-aligned store); the
    # zero halo is written once at program 0 (grid axis is "arbitrary", so the
    # scratch persists and the halo never needs re-zeroing).
    @pl.when(pl.program_id(0) == 0)
    def _():
        xp_ref[...] = jnp.zeros_like(xp_ref)

    xn = jnp.maximum(x_ref[0] * scale_ref[...] + shift_ref[...], 0.0)
    xp_ref[1:h + 1, 8:8 + w, :] = xn

    first = True
    for kh in range(3):
        for kw in range(3):
            if stride == 1:
                patch = xp_ref[kh:kh + h_out, 7 + kw:7 + kw + w_out, :]
            else:
                patch = xp_ref[pl.ds(kh, h_out, stride),
                               pl.ds(7 + kw, w_out, stride), :]
            # (h_out, w_out, C) -> (h_out*w_out, C) is layout-preserving when
            # w_out % 8 == 0; the load feeds the MXU directly (no strided
            # value copies like the previous version).
            patch = patch.reshape(h_out * w_out, patch.shape[-1]).astype(jnp.bfloat16)
            contrib = jnp.dot(patch, w_ref[kh, kw],
                              preferred_element_type=jnp.float32)
            if first:
                y_ref[0] = contrib
                first = False
            else:
                y_ref[0] += contrib

    _accumulate_stats(y_ref[0], stats_ref)


def bn_add_relu_kernel(y_ref, scale_ref, shift_ref, id_ref, o_ref):
    # stage 3 pass 2: BN3 + residual add + ReLU (pure elementwise, "parallel").
    o_ref[...] = jnp.maximum(
        y_ref[...] * scale_ref[...] + shift_ref[...] + id_ref[...], 0.0)


# ---------------- host-side BN finalize ----------------

def _bn_scale_shift(stats, gamma_p, beta_p, count):
    mean = stats[0] / count
    var = jnp.maximum(stats[1] / count - mean * mean, 0.0)
    scale = gamma_p[0] * jax.lax.rsqrt(var + EPS)
    shift = beta_p[0] - mean * scale
    return scale[None, :], shift[None, :]


# ---------------- wrapper ----------------

@functools.partial(jax.jit, static_argnames=("stride",))
def block_forward(x_nchw, params, *, stride=1):
    n, c_in, h, w = x_nchw.shape
    c_mid = params["conv1_w"].shape[1]
    c_out = params["conv3_w"].shape[1]

    if stride != 1 or c_in != c_out:
        # TODO(synk): identity_downsample is an arbitrary user-supplied submodule
        # in the original Block; only the `None` path (stride=1, c_in==4*c_mid)
        # is implemented here.
        raise NotImplementedError("residual path requires stride=1 and c_in == 4*c_mid")

    c_in_p, c_mid_p, c_out_p = map(_pad_to_lane, (c_in, c_mid, c_out))
    h_out = (h - 1) // stride + 1
    w_out = (w - 1) // stride + 1
    m1 = n * h * w
    m2 = n * h_out * w_out

    # NHWC, channel-padded to a lane multiple (done once on the input).
    x_rows = jnp.pad(jnp.transpose(x_nchw, (0, 2, 3, 1)).astype(jnp.float32),
                     ((0, 0), (0, 0), (0, 0), (0, c_in_p - c_in))).reshape(m1, c_in_p)
    x_rows_bf16 = x_rows.astype(jnp.bfloat16)

    # Weights / BN params, channel padded.  Conv biases are NOT passed to the
    # kernels: training-mode BN cancels a per-channel bias exactly.
    w1 = _pad_lane_2d(params["conv1_w"], c_in_p, c_mid_p).astype(jnp.bfloat16)
    w2 = jnp.pad(params["conv2_w"],
                 ((0, 0), (0, 0), (0, c_mid_p - c_mid), (0, c_mid_p - c_mid))
                 ).astype(jnp.bfloat16)
    w3 = _pad_lane_2d(params["conv3_w"], c_mid_p, c_out_p).astype(jnp.bfloat16)
    g1 = _pad_lane_2d(params["bn1_g"], 1, c_mid_p)
    b1 = _pad_lane_2d(params["bn1_b"], 1, c_mid_p)
    g2 = _pad_lane_2d(params["bn2_g"], 1, c_mid_p)
    b2 = _pad_lane_2d(params["bn2_b"], 1, c_mid_p)
    g3 = _pad_lane_2d(params["bn3_g"], 1, c_out_p)
    b3 = _pad_lane_2d(params["bn3_b"], 1, c_out_p)

    # ---- stage 1: 1x1 conv + BN stats (pass 1) ----
    t1 = _pick_tile(m1)
    y1, stats1 = pl.pallas_call(
        matmul_stats_kernel,
        grid=(m1 // t1,),
        in_specs=[pl.BlockSpec((t1, c_in_p), lambda i: (i, 0)),
                  pl.BlockSpec((c_in_p, c_mid_p), lambda i: (0, 0))],
        out_specs=(pl.BlockSpec((t1, c_mid_p), lambda i: (i, 0)),
                   pl.BlockSpec((2, c_mid_p), lambda i: (0, 0))),
        out_shape=(jax.ShapeDtypeStruct((m1, c_mid_p), jnp.float32),
                   jax.ShapeDtypeStruct((2, c_mid_p), jnp.float32)),
        compiler_params=pltpu.CompilerParams(
            dimension_semantics=("arbitrary",),   # stats accumulate across tiles
            vmem_limit_bytes=_VMEM_LIMIT),
        cost_estimate=pl.CostEstimate(
            flops=2 * m1 * c_in_p * c_mid_p, transcendentals=0,
            bytes_accessed=2 * m1 * c_in_p + 2 * c_in_p * c_mid_p + 4 * m1 * c_mid_p),
    )(x_rows_bf16, w1)
    scale1, shift1 = _bn_scale_shift(stats1, g1, b1, m1)

    # ---- stage 2: (BN1+ReLU fused) 3x3 conv + BN stats (pass 1) ----
    y2, stats2 = pl.pallas_call(
        functools.partial(conv3x3_bnrelu_stats_kernel, stride=stride,
                          h=h, w=w, h_out=h_out, w_out=w_out),
        grid=(n,),
        in_specs=[pl.BlockSpec((1, h, w, c_mid_p), lambda i: (i, 0, 0, 0)),
                  pl.BlockSpec((1, c_mid_p), lambda i: (0, 0)),
                  pl.BlockSpec((1, c_mid_p), lambda i: (0, 0)),
                  pl.BlockSpec((3, 3, c_mid_p, c_mid_p), lambda i: (0, 0, 0, 0))],
        out_specs=(pl.BlockSpec((1, h_out * w_out, c_mid_p), lambda i: (i, 0, 0)),
                   pl.BlockSpec((2, c_mid_p), lambda i: (0, 0))),
        out_shape=(jax.ShapeDtypeStruct((n, h_out * w_out, c_mid_p), jnp.float32),
                   jax.ShapeDtypeStruct((2, c_mid_p), jnp.float32)),
        scratch_shapes=[pltpu.VMEM((h + 2, w + 16, c_mid_p), jnp.float32)],
        compiler_params=pltpu.CompilerParams(
            dimension_semantics=("arbitrary",),
            vmem_limit_bytes=_VMEM_LIMIT),
        cost_estimate=pl.CostEstimate(
            flops=2 * 9 * m2 * c_mid_p * c_mid_p, transcendentals=0,
            bytes_accessed=4 * m1 * c_mid_p + 2 * 9 * c_mid_p * c_mid_p
                           + 4 * m2 * c_mid_p),
    )(y1.reshape(n, h, w, c_mid_p), scale1, shift1, w2)
    scale2, shift2 = _bn_scale_shift(stats2, g2, b2, m2)

    # ---- stage 3: (BN2+ReLU fused) 1x1 conv + BN stats (pass 1) ----
    t2 = _pick_tile(m2)
    y3, stats3 = pl.pallas_call(
        bnrelu_matmul_stats_kernel,
        grid=(m2 // t2,),
        in_specs=[pl.BlockSpec((t2, c_mid_p), lambda i: (i, 0)),
                  pl.BlockSpec((1, c_mid_p), lambda i: (0, 0)),
                  pl.BlockSpec((1, c_mid_p), lambda i: (0, 0)),
                  pl.BlockSpec((c_mid_p, c_out_p), lambda i: (0, 0))],
        out_specs=(pl.BlockSpec((t2, c_out_p), lambda i: (i, 0)),
                   pl.BlockSpec((2, c_out_p), lambda i: (0, 0))),
        out_shape=(jax.ShapeDtypeStruct((m2, c_out_p), jnp.float32),
                   jax.ShapeDtypeStruct((2, c_out_p), jnp.float32)),
        compiler_params=pltpu.CompilerParams(
            dimension_semantics=("arbitrary",),
            vmem_limit_bytes=_VMEM_LIMIT),
        cost_estimate=pl.CostEstimate(
            flops=2 * m2 * c_mid_p * c_out_p, transcendentals=0,
            bytes_accessed=4 * m2 * c_mid_p + 2 * c_mid_p * c_out_p + 4 * m2 * c_out_p),
    )(y2.reshape(m2, c_mid_p), scale2, shift2, w3)
    scale3, shift3 = _bn_scale_shift(stats3, g3, b3, m2)

    # ---- stage 3 pass 2: BN3 + residual add + ReLU ----
    identity_rows = x_rows               # valid: stride==1 and c_in_p == c_out_p
    out_rows = pl.pallas_call(
        bn_add_relu_kernel,
        grid=(m2 // t2,),
        in_specs=[pl.BlockSpec((t2, c_out_p), lambda i: (i, 0)),
                  pl.BlockSpec((1, c_out_p), lambda i: (0, 0)),
                  pl.BlockSpec((1, c_out_p), lambda i: (0, 0)),
                  pl.BlockSpec((t2, c_out_p), lambda i: (i, 0))],
        out_specs=pl.BlockSpec((t2, c_out_p), lambda i: (i, 0)),
        out_shape=jax.ShapeDtypeStruct((m2, c_out_p), jnp.float32),
        compiler_params=pltpu.CompilerParams(
            dimension_semantics=("parallel",),    # no cross-tile state
            vmem_limit_bytes=_VMEM_LIMIT),
        cost_estimate=pl.CostEstimate(
            flops=4 * m2 * c_out_p, transcendentals=0,
            bytes_accessed=4 * 4 * m2 * c_out_p),
    )(y3, scale3, shift3, identity_rows)

    out = out_rows.reshape(n, h_out, w_out, c_out_p)[:, :, :, :c_out]
    return jnp.transpose(out, (0, 3, 1, 2))   # back to NCHW


# ---------------- deterministic params & pure-JAX f32 reference ----------------

def init_params(key, c_in, c_mid):
    c_out = c_mid * 4
    ks = jax.random.split(key, 6)

    def u(k, shape, fan_in):
        bound = 1.0 / jnp.sqrt(float(fan_in))
        return jax.random.uniform(k, shape, jnp.float32, -bound, bound)

    return {
        "conv1_w": u(ks[0], (c_in, c_mid), c_in),
        "conv1_b": u(ks[1], (1, c_mid), c_in),
        "bn1_g": jnp.ones((1, c_mid), jnp.float32),
        "bn1_b": jnp.zeros((1, c_mid), jnp.float32),
        "conv2_w": u(ks[2], (3, 3, c_mid, c_mid), 9 * c_mid),
        "conv2_b": u(ks[3], (1, c_mid), 9 * c_mid),
        "bn2_g": jnp.ones((1, c_mid), jnp.float32),
        "bn2_b": jnp.zeros((1, c_mid), jnp.float32),
        "conv3_w": u(ks[4], (c_mid, c_out), c_mid),
        "conv3_b": u(ks[5], (1, c_out), c_mid),
        "bn3_g": jnp.ones((1, c_out), jnp.float32),
        "bn3_b": jnp.zeros((1, c_out), jnp.float32),
    }


def ref_forward(x, params, *, stride=1):
    def conv(x, w_oihw, b, s, pad):
        y = jax.lax.conv_general_dilated(
            x, w_oihw, (s, s), [(pad, pad), (pad, pad)],
            dimension_numbers=("NCHW", "OIHW", "NCHW"))
        return y + b.reshape(1, -1, 1, 1)

    def bn(x, g, b):
        mean = jnp.mean(x, axis=(0, 2, 3), keepdims=True)
        var = jnp.mean((x - mean) ** 2, axis=(0, 2, 3), keepdims=True)
        return ((x - mean) * jax.lax.rsqrt(var + EPS) * g.reshape(1, -1, 1, 1)
                + b.reshape(1, -1, 1, 1))

    w1 = params["conv1_w"].T[:, :, None, None]
    w2 = jnp.transpose(params["conv2_w"], (3, 2, 0, 1))
    w3 = params["conv3_w"].T[:, :, None, None]
    identity = x
    y = jax.nn.relu(bn(conv(x, w1, params["conv1_b"][0], 1, 0),
                       params["bn1_g"][0], params["bn1_b"][0]))
    y = jax.nn.relu(bn(conv(y, w2, params["conv2_b"][0], stride, 1),
                       params["bn2_g"][0], params["bn2_b"][0]))
    y = bn(conv(y, w3, params["conv3_b"][0], 1, 0),
           params["bn3_g"][0], params["bn3_b"][0])
    return jax.nn.relu(y + identity)


if __name__ == "__main__":
    key = jax.random.PRNGKey(0)
    k_x, k_p = jax.random.split(key)

    n, in_channels, h, w = 4, 16, 16, 16
    out_channels = 4        # expansion 4 -> block output channels = 16 == in_channels
    stride = 1              # identity_downsample = None

    x = jax.random.normal(k_x, (n, in_channels, h, w), jnp.float32)
    params = init_params(k_p, in_channels, out_channels)

    out = jax.block_until_ready(block_forward(x, params, stride=stride))
    ref = jax.block_until_ready(ref_forward(x, params, stride=stride))

    assert out.shape == (n, out_channels * 4, h, w), out.shape
    # bf16 MXU inputs (per perf guidance for v6e/v7x) vs. a pure-f32 reference:
    # typical error is <1e-2 after three BN-normalized stages; 5e-2 gives margin.
    assert jnp.allclose(out, ref, atol=5e-2, rtol=5e-2), \
        float(jnp.max(jnp.abs(out - ref)))
    print("KERNEL_OK")
</pallas_src>

<mosaic_0001>
module attributes {stable_mosaic.version = 11 : i64} {
  func.func @matmul_stats_kernel(%arg0: i32, %arg1: memref<512x128xbf16, #tpu.memory_space<vmem>>, %arg2: memref<128x128xbf16, #tpu.memory_space<vmem>>, %arg3: memref<512x128xf32, #tpu.memory_space<vmem>>, %arg4: memref<2x128xf32, #tpu.memory_space<vmem>>) attributes {dimension_semantics = [#tpu.dimension_semantics<arbitrary>], iteration_bounds = array<i64: 2>, scalar_prefetch = 0 : i64, scratch_operands = 0 : i64, tpu.core_type = #tpu.core_type<tc>, window_params = [{transform_indices = @transform_0, window_bounds = array<i64: 512, 128>}, {pipeline_mode = #tpu.pipeline_mode<synchronous>, transform_indices = @transform_1, window_bounds = array<i64: 128, 128>}, {transform_indices = @transform_2, window_bounds = array<i64: 512, 128>}, {pipeline_mode = #tpu.pipeline_mode<synchronous>, transform_indices = @transform_3, window_bounds = array<i64: 2, 128>}]} {
    %c0 = arith.constant 0 : index
    %c0_0 = arith.constant 0 : index
    %0 = vector.load %arg1[%c0, %c0_0] : memref<512x128xbf16, #tpu.memory_space<vmem>>, vector<512x128xbf16>
    %c0_1 = arith.constant 0 : index
    %c0_2 = arith.constant 0 : index
    %1 = vector.load %arg2[%c0_1, %c0_2] : memref<128x128xbf16, #tpu.memory_space<vmem>>, vector<128x128xbf16>
    %cst = arith.constant dense<0.000000e+00> : vector<512x128xf32>
    %2 = tpu.matmul %0, %1, %cst {dimension_numbers = #tpu.dot_dimension_numbers<[1], [0], [0], [1], [0, 0, 1, 1], [], []>} : vector<512x128xbf16>, vector<128x128xbf16>, vector<512x128xf32> -> vector<512x128xf32>
    %c0_3 = arith.constant 0 : index
    %c0_4 = arith.constant 0 : index
    %3 = vector.load %arg3[%c0_3, %c0_4] : memref<512x128xf32, #tpu.memory_space<vmem>>, vector<512x128xf32>
    tpu.vector_store %arg3[%c0_3, %c0_4], %2 {strides = array<i32>} : memref<512x128xf32, #tpu.memory_space<vmem>>, vector<512x128xf32>,
    %c0_i32 = arith.constant 0 : i32
    %4 = arith.cmpi eq, %arg0, %c0_i32 : i32
    %5 = arith.extui %4 : i1 to i32
    %c0_i32_5 = arith.constant 0 : i32
    %6 = arith.cmpi ne, %5, %c0_i32_5 : i32
    scf.if %6 {
      %cst_15 = arith.constant 0.000000e+00 : f32
      %18 = vector.broadcast %cst_15 : f32 to vector<2x128xf32>
      %c0_16 = arith.constant 0 : index
      %c0_17 = arith.constant 0 : index
      %19 = vector.load %arg4[%c0_16, %c0_17] : memref<2x128xf32, #tpu.memory_space<vmem>>, vector<2x128xf32>
      tpu.vector_store %arg4[%c0_16, %c0_17], %18 {strides = array<i32>} : memref<2x128xf32, #tpu.memory_space<vmem>>, vector<2x128xf32>,
    } else {
    }
    %c0_6 = arith.constant 0 : index
    %c0_7 = arith.constant 0 : index
    %7 = vector.load %arg4[%c0_6, %c0_7] : memref<2x128xf32, #tpu.memory_space<vmem>>, vector<1x128xf32>
    %cst_8 = arith.constant dense<0.000000e+00> : vector<128xf32>
    %8 = vector.multi_reduction <add>, %2, %cst_8 [0] : vector<512x128xf32> to vector<128xf32>
    %9 = vector.shape_cast %8 : vector<128xf32> to vector<1x128xf32>
    %10 = arith.addf %7, %9 : vector<1x128xf32>
    %c0_9 = arith.constant 0 : index
    %c0_10 = arith.constant 0 : index
    %11 = vector.load %arg4[%c0_9, %c0_10] : memref<2x128xf32, #tpu.memory_space<vmem>>, vector<1x128xf32>
    tpu.vector_store %arg4[%c0_9, %c0_10], %10 {strides = array<i32>} : memref<2x128xf32, #tpu.memory_space<vmem>>, vector<1x128xf32>,
    %c1 = arith.constant 1 : index
    %c0_11 = arith.constant 0 : index
    %12 = vector.load %arg4[%c1, %c0_11] : memref<2x128xf32, #tpu.memory_space<vmem>>, vector<1x128xf32>
    %13 = arith.mulf %2, %2 : vector<512x128xf32>
    %cst_12 = arith.constant dense<0.000000e+00> : vector<128xf32>
    %14 = vector.multi_reduction <add>, %13, %cst_12 [0] : vector<512x128xf32> to vector<128xf32>
    %15 = vector.shape_cast %14 : vector<128xf32> to vector<1x128xf32>
    %16 = arith.addf %12, %15 : vector<1x128xf32>
    %c1_13 = arith.constant 1 : index
    %c0_14 = arith.constant 0 : index
    %17 = vector.load %arg4[%c1_13, %c0_14] : memref<2x128xf32, #tpu.memory_space<vmem>>, vector<1x128xf32>
    tpu.vector_store %arg4[%c1_13, %c0_14], %16 {strides = array<i32>} : memref<2x128xf32, #tpu.memory_space<vmem>>, vector<1x128xf32>,
    return
  }
  func.func @transform_0(%arg0: i32) -> (i32, i32) {
    %c0_i32 = arith.constant 0 : i32
    %c0_i32_0 = arith.constant 0 : i32
    return %arg0, %c0_i32 : i32, i32
  }
  func.func @transform_1(%arg0: i32) -> (i32, i32) {
    %c0_i32 = arith.constant 0 : i32
    %c0_i32_0 = arith.constant 0 : i32
    %c0_i32_1 = arith.constant 0 : i32
    return %c0_i32, %c0_i32_0 : i32, i32
  }
  func.func @transform_2(%arg0: i32) -> (i32, i32) {
    %c0_i32 = arith.constant 0 : i32
    %c0_i32_0 = arith.constant 0 : i32
    return %arg0, %c0_i32 : i32, i32
  }
  func.func @transform_3(%arg0: i32) -> (i32, i32) {
    %c0_i32 = arith.constant 0 : i32
    %c0_i32_0 = arith.constant 0 : i32
    %c0_i32_1 = arith.constant 0 : i32
    return %c0_i32, %c0_i32_0 : i32, i32
  }
}

module attributes {stable_mosaic.version = 11 : i64} {
  func.func @conv3x3_bnrelu_stats_kernel(%arg0: i32, %arg1: memref<1x16x16x128xf32, #tpu.memory_space<vmem>>, %arg2: memref<1x128xf32, #tpu.memory_space<vmem>>, %arg3: memref<1x128xf32, #tpu.memory_space<vmem>>, %arg4: memref<3x3x128x128xbf16, #tpu.memory_space<vmem>>, %arg5: memref<1x256x128xf32, #tpu.memory_space<vmem>>, %arg6: memref<2x128xf32, #tpu.memory_space<vmem>>, %arg7: memref<18x32x128xf32, #tpu.memory_space<vmem>>) attributes {dimension_semantics = [#tpu.dimension_semantics<arbitrary>], iteration_bounds = array<i64: 4>, scalar_prefetch = 0 : i64, scratch_operands = 1 : i64, tpu.core_type = #tpu.core_type<tc>, window_params = [{transform_indices = @transform_0, window_bounds = array<i64: 1, 16, 16, 128>}, {pipeline_mode = #tpu.pipeline_mode<synchronous>, transform_indices = @transform_1, window_bounds = array<i64: 1, 128>}, {pipeline_mode = #tpu.pipeline_mode<synchronous>, transform_indices = @transform_2, window_bounds = array<i64: 1, 128>}, {pipeline_mode = #tpu.pipeline_mode<synchronous>, transform_indices = @transform_3, window_bounds = array<i64: 3, 3, 128, 128>}, {transform_indices = @transform_4, window_bounds = array<i64: 1, 256, 128>}, {pipeline_mode = #tpu.pipeline_mode<synchronous>, transform_indices = @transform_5, window_bounds = array<i64: 2, 128>}]} {
    %c0_i32 = arith.constant 0 : i32
    %0 = arith.cmpi eq, %arg0, %c0_i32 : i32
    %1 = arith.extui %0 : i1 to i32
    %c0_i32_0 = arith.constant 0 : i32
    %2 = arith.cmpi ne, %1, %c0_i32_0 : i32
    scf.if %2 {
      %cst_144 = arith.constant 0.000000e+00 : f32
      %137 = vector.broadcast %cst_144 : f32 to vector<18x32x128xf32>
      %c0_145 = arith.constant 0 : index
      %c0_146 = arith.constant 0 : index
      %c0_147 = arith.constant 0 : index
      %138 = vector.load %arg7[%c0_145, %c0_146, %c0_147] : memref<18x32x128xf32, #tpu.memory_space<vmem>>, vector<18x32x128xf32>
      tpu.vector_store %arg7[%c0_145, %c0_146, %c0_147], %137 {strides = array<i32>} : memref<18x32x128xf32, #tpu.memory_space<vmem>>, vector<18x32x128xf32>,
    } else {
    }
    %c0 = arith.constant 0 : index
    %c0_1 = arith.constant 0 : index
    %c0_2 = arith.constant 0 : index
    %c0_3 = arith.constant 0 : index
    %3 = vector.load %arg1[%c0, %c0_1, %c0_2, %c0_3] : memref<1x16x16x128xf32, #tpu.memory_space<vmem>>, vector<1x16x16x128xf32>
    %4 = vector.shape_cast %3 : vector<1x16x16x128xf32> to vector<16x16x128xf32>
    %c0_4 = arith.constant 0 : index
    %c0_5 = arith.constant 0 : index
    %5 = vector.load %arg2[%c0_4, %c0_5] : memref<1x128xf32, #tpu.memory_space<vmem>>, vector<1x128xf32>
    %6 = vector.shape_cast %5 : vector<1x128xf32> to vector<1x1x128xf32>
    %7 = vector.broadcast %6 : vector<1x1x128xf32> to vector<16x16x128xf32>
    %8 = arith.mulf %4, %7 : vector<16x16x128xf32>
    %c0_6 = arith.constant 0 : index
    %c0_7 = arith.constant 0 : index
    %9 = vector.load %arg3[%c0_6, %c0_7] : memref<1x128xf32, #tpu.memory_space<vmem>>, vector<1x128xf32>
    %10 = vector.shape_cast %9 : vector<1x128xf32> to vector<1x1x128xf32>
    %11 = vector.broadcast %10 : vector<1x1x128xf32> to vector<16x16x128xf32>
    %12 = arith.addf %8, %11 : vector<16x16x128xf32>
    %cst = arith.constant 0.000000e+00 : f32
    %13 = vector.broadcast %cst : f32 to vector<16x16x128xf32>
    %14 = arith.maximumf %12, %13 : vector<16x16x128xf32>
    %c1 = arith.constant 1 : index
    %c8 = arith.constant 8 : index
    %c0_8 = arith.constant 0 : index
    %15 = vector.load %arg7[%c1, %c8, %c0_8] : memref<18x32x128xf32, #tpu.memory_space<vmem>>, vector<16x16x128xf32>
    tpu.vector_store %arg7[%c1, %c8, %c0_8], %14 {strides = array<i32>} : memref<18x32x128xf32, #tpu.memory_space<vmem>>, vector<16x16x128xf32>,
    %c0_9 = arith.constant 0 : index
    %c7 = arith.constant 7 : index
    %c0_10 = arith.constant 0 : index
    %16 = vector.load %arg7[%c0_9, %c7, %c0_10] : memref<18x32x128xf32, #tpu.memory_space<vmem>>, vector<16x16x128xf32>
    %17 = vector.shape_cast %16 : vector<16x16x128xf32> to vector<256x128xf32>
    %18 = arith.truncf %17 : vector<256x128xf32> to vector<256x128xbf16>
    %c0_11 = arith.constant 0 : index
    %c0_12 = arith.constant 0 : index
    %c0_13 = arith.constant 0 : index
    %c0_14 = arith.constant 0 : index
    %19 = vector.load %arg4[%c0_11, %c0_12, %c0_13, %c0_14] : memref<3x3x128x128xbf16, #tpu.memory_space<vmem>>, vector<1x1x128x128xbf16>
    %20 = vector.shape_cast %19 : vector<1x1x128x128xbf16> to vector<128x128xbf16>
    %cst_15 = arith.constant dense<0.000000e+00> : vector<256x128xf32>
    %21 = tpu.matmul %18, %20, %cst_15 {dimension_numbers = #tpu.dot_dimension_numbers<[1], [0], [0], [1], [0, 0, 1, 1], [], []>} : vector<256x128xbf16>, vector<128x128xbf16>, vector<256x128xf32> -> vector<256x128xf32>
    %c0_16 = arith.constant 0 : index
    %c0_17 = arith.constant 0 : index
    %c0_18 = arith.constant 0 : index
    %22 = vector.load %arg5[%c0_16, %c0_17, %c0_18] : memref<1x256x128xf32, #tpu.memory_space<vmem>>, vector<1x256x128xf32>
    %23 = vector.shape_cast %22 : vector<1x256x128xf32> to vector<256x128xf32>
    %24 = vector.shape_cast %21 : vector<256x128xf32> to vector<1x256x128xf32>
    tpu.vector_store %arg5[%c0_16, %c0_17, %c0_18], %24 {strides = array<i32>} : memref<1x256x128xf32, #tpu.memory_space<vmem>>, vector<1x256x128xf32>,
    %c0_19 = arith.constant 0 : index
    %c8_20 = arith.constant 8 : index
    %c0_21 = arith.constant 0 : index
    %25 = vector.load %arg7[%c0_19, %c8_20, %c0_21] : memref<18x32x128xf32, #tpu.memory_space<vmem>>, vector<16x16x128xf32>
    %26 = vector.shape_cast %25 : vector<16x16x128xf32> to vector<256x128xf32>
    %27 = arith.truncf %26 : vector<256x128xf32> to vector<256x128xbf16>
    %c0_22 = arith.constant 0 : index
    %c1_23 = arith.constant 1 : index
    %c0_24 = arith.constant 0 : index
    %c0_25 = arith.constant 0 : index
    %28 = vector.load %arg4[%c0_22, %c1_23, %c0_24, %c0_25] : memref<3x3x128x128xbf16, #tpu.memory_space<vmem>>, vector<1x1x128x128xbf16>
    %29 = vector.shape_cast %28 : vector<1x1x128x128xbf16> to vector<128x128xbf16>
    %cst_26 = arith.constant dense<0.000000e+00> : vector<256x128xf32>
    %30 = tpu.matmul %27, %29, %cst_26 {dimension_numbers = #tpu.dot_dimension_numbers<[1], [0], [0], [1], [0, 0, 1, 1], [], []>} : vector<256x128xbf16>, vector<128x128xbf16>, vector<256x128xf32> -> vector<256x128xf32>
    %c0_27 = arith.constant 0 : index
    %c0_28 = arith.constant 0 : index
    %c0_29 = arith.constant 0 : index
    %31 = vector.load %arg5[%c0_27, %c0_28, %c0_29] : memref<1x256x128xf32, #tpu.memory_space<vmem>>, vector<1x256x128xf32>
    %32 = vector.shape_cast %31 : vector<1x256x128xf32> to vector<256x128xf32>
    %33 = arith.addf %32, %30 : vector<256x128xf32>
    %c0_30 = arith.constant 0 : index
    %c0_31 = arith.constant 0 : index
    %c0_32 = arith.constant 0 : index
    %34 = vector.load %arg5[%c0_30, %c0_31, %c0_32] : memref<1x256x128xf32, #tpu.memory_space<vmem>>, vector<1x256x128xf32>
    %35 = vector.shape_cast %34 : vector<1x256x128xf32> to vector<256x128xf32>
    %36 = vector.shape_cast %33 : vector<256x128xf32> to vector<1x256x128xf32>
    tpu.vector_store %arg5[%c0_30, %c0_31, %c0_32], %36 {strides = array<i32>} : memref<1x256x128xf32, #tpu.memory_space<vmem>>, vector<1x256x128xf32>,
    %c0_33 = arith.constant 0 : index
    %c9 = arith.constant 9 : index
    %c0_34 = arith.constant 0 : index
    %37 = vector.load %arg7[%c0_33, %c9, %c0_34] : memref<18x32x128xf32, #tpu.memory_space<vmem>>, vector<16x16x128xf32>
    %38 = vector.shape_cast %37 : vector<16x16x128xf32> to vector<256x128xf32>
    %39 = arith.truncf %38 : vector<256x128xf32> to vector<256x128xbf16>
    %c0_35 = arith.constant 0 : index
    %c2 = arith.constant 2 : index
    %c0_36 = arith.constant 0 : index
    %c0_37 = arith.constant 0 : index
    %40 = vector.load %arg4[%c0_35, %c2, %c0_36, %c0_37] : memref<3x3x128x128xbf16, #tpu.memory_space<vmem>>, vector<1x1x128x128xbf16>
    %41 = vector.shape_cast %40 : vector<1x1x128x128xbf16> to vector<128x128xbf16>
    %cst_38 = arith.constant dense<0.000000e+00> : vector<256x128xf32>
    %42 = tpu.matmul %39, %41, %cst_38 {dimension_numbers = #tpu.dot_dimension_numbers<[1], [0], [0], [1], [0, 0, 1, 1], [], []>} : vector<256x128xbf16>, vector<128x128xbf16>, vector<256x128xf32> -> vector<256x128xf32>
    %c0_39 = arith.constant 0 : index
    %c0_40 = arith.constant 0 : index
    %c0_41 = arith.constant 0 : index
    %43 = vector.load %arg5[%c0_39, %c0_40, %c0_41] : memref<1x256x128xf32, #tpu.memory_space<vmem>>, vector<1x256x128xf32>
    %44 = vector.shape_cast %43 : vector<1x256x128xf32> to vector<256x128xf32>
    %45 = arith.addf %44, %42 : vector<256x128xf32>
    %c0_42 = arith.constant 0 : index
    %c0_43 = arith.constant 0 : index
    %c0_44 = arith.constant 0 : index
    %46 = vector.load %arg5[%c0_42, %c0_43, %c0_44] : memref<1x256x128xf32, #tpu.memory_space<vmem>>, vector<1x256x128xf32>
    %47 = vector.shape_cast %46 : vector<1x256x128xf32> to vector<256x128xf32>
    %48 = vector.shape_cast %45 : vector<256x128xf32> to vector<1x256x128xf32>
    tpu.vector_store %arg5[%c0_42, %c0_43, %c0_44], %48 {strides = array<i32>} : memref<1x256x128xf32, #tpu.memory_space<vmem>>, vector<1x256x128xf32>,
    %c1_45 = arith.constant 1 : index
    %c7_46 = arith.constant 7 : index
    %c0_47 = arith.constant 0 : index
    %49 = vector.load %arg7[%c1_45, %c7_46, %c0_47] : memref<18x32x128xf32, #tpu.memory_space<vmem>>, vector<16x16x128xf32>
    %50 = vector.shape_cast %49 : vector<16x16x128xf32> to vector<256x128xf32>
    %51 = arith.truncf %50 : vector<256x128xf32> to vector<256x128xbf16>
    %c1_48 = arith.constant 1 : index
    %c0_49 = arith.constant 0 : index
    %c0_50 = arith.constant 0 : index
    %c0_51 = arith.constant 0 : index
    %52 = vector.load %arg4[%c1_48, %c0_49, %c0_50, %c0_51] : memref<3x3x128x128xbf16, #tpu.memory_space<vmem>>, vector<1x1x128x128xbf16>
    %53 = vector.shape_cast %52 : vector<1x1x128x128xbf16> to vector<128x128xbf16>
    %cst_52 = arith.constant dense<0.000000e+00> : vector<256x128xf32>
    %54 = tpu.matmul %51, %53, %cst_52 {dimension_numbers = #tpu.dot_dimension_numbers<[1], [0], [0], [1], [0, 0, 1, 1], [], []>} : vector<256x128xbf16>, vector<128x128xbf16>, vector<256x128xf32> -> vector<256x128xf32>
    %c0_53 = arith.constant 0 : index
    %c0_54 = arith.constant 0 : index
    %c0_55 = arith.constant 0 : index
    %55 = vector.load %arg5[%c0_53, %c0_54, %c0_55] : memref<1x256x128xf32, #tpu.memory_space<vmem>>, vector<1x256x128xf32>
    %56 = vector.shape_cast %55 : vector<1x256x128xf32> to vector<256x128xf32>
    %57 = arith.addf %56, %54 : vector<256x128xf32>
    %c0_56 = arith.constant 0 : index
    %c0_57 = arith.constant 0 : index
    %c0_58 = arith.constant 0 : index
    %58 = vector.load %arg5[%c0_56, %c0_57, %c0_58] : memref<1x256x128xf32, #tpu.memory_space<vmem>>, vector<1x256x128xf32>
    %59 = vector.shape_cast %58 : vector<1x256x128xf32> to vector<256x128xf32>
    %60 = vector.shape_cast %57 : vector<256x128xf32> to vector<1x256x128xf32>
    tpu.vector_store %arg5[%c0_56, %c0_57, %c0_58], %60 {strides = array<i32>} : memref<1x256x128xf32, #tpu.memory_space<vmem>>, vector<1x256x128xf32>,
    %c1_59 = arith.constant 1 : index
    %c8_60 = arith.constant 8 : index
    %c0_61 = arith.constant 0 : index
    %61 = vector.load %arg7[%c1_59, %c8_60, %c0_61] : memref<18x32x128xf32, #tpu.memory_space<vmem>>, vector<16x16x128xf32>
    %62 = vector.shape_cast %61 : vector<16x16x128xf32> to vector<256x128xf32>
    %63 = arith.truncf %62 : vector<256x128xf32> to vector<256x128xbf16>
    %c1_62 = arith.constant 1 : index
    %c1_63 = arith.constant 1 : index
    %c0_64 = arith.constant 0 : index
    %c0_65 = arith.constant 0 : index
    %64 = vector.load %arg4[%c1_62, %c1_63, %c0_64, %c0_65] : memref<3x3x128x128xbf16, #tpu.memory_space<vmem>>, vector<1x1x128x128xbf16>
    %65 = vector.shape_cast %64 : vector<1x1x128x128xbf16> to vector<128x128xbf16>
    %cst_66 = arith.constant dense<0.000000e+00> : vector<256x128xf32>
    %66 = tpu.matmul %63, %65, %cst_66 {dimension_numbers = #tpu.dot_dimension_numbers<[1], [0], [0], [1], [0, 0, 1, 1], [], []>} : vector<256x128xbf16>, vector<128x128xbf16>, vector<256x128xf32> -> vector<256x128xf32>
    %c0_67 = arith.constant 0 : index
    %c0_68 = arith.constant 0 : index
    %c0_69 = arith.constant 0 : index
    %67 = vector.load %arg5[%c0_67, %c0_68, %c0_69] : memref<1x256x128xf32, #tpu.memory_space<vmem>>, vector<1x256x128xf32>
    %68 = vector.shape_cast %67 : vector<1x256x128xf32> to vector<256x128xf32>
    %69 = arith.addf %68, %66 : vector<256x128xf32>
    %c0_70 = arith.constant 0 : index
    %c0_71 = arith.constant 0 : index
    %c0_72 = arith.constant 0 : index
    %70 = vector.load %arg5[%c0_70, %c0_71, %c0_72] : memref<1x256x128xf32, #tpu.memory_space<vmem>>, vector<1x256x128xf32>
    %71 = vector.shape_cast %70 : vector<1x256x128xf32> to vector<256x128xf32>
    %72 = vector.shape_cast %69 : vector<256x128xf32> to vector<1x256x128xf32>
    tpu.vector_store %arg5[%c0_70, %c0_71, %c0_72], %72 {strides = array<i32>} : memref<1x256x128xf32, #tpu.memory_space<vmem>>, vector<1x256x128xf32>,
    %c1_73 = arith.constant 1 : index
    %c9_74 = arith.constant 9 : index
    %c0_75 = arith.constant 0 : index
    %73 = vector.load %arg7[%c1_73, %c9_74, %c0_75] : memref<18x32x128xf32, #tpu.memory_space<vmem>>, vector<16x16x128xf32>
    %74 = vector.shape_cast %73 : vector<16x16x128xf32> to vector<256x128xf32>
    %75 = arith.truncf %74 : vector<256x128xf32> to vector<256x128xbf16>
    %c1_76 = arith.constant 1 : index
    %c2_77 = arith.constant 2 : index
    %c0_78 = arith.constant 0 : index
    %c0_79 = arith.constant 0 : index
    %76 = vector.load %arg4[%c1_76, %c2_77, %c0_78, %c0_79] : memref<3x3x128x128xbf16, #tpu.memory_space<vmem>>, vector<1x1x128x128xbf16>
    %77 = vector.shape_cast %76 : vector<1x1x128x128xbf16> to vector<128x128xbf16>
    %cst_80 = arith.constant dense<0.000000e+00> : vector<256x128xf32>
    %78 = tpu.matmul %75, %77, %cst_80 {dimension_numbers = #tpu.dot_dimension_numbers<[1], [0], [0], [1], [0, 0, 1, 1], [], []>} : vector<256x128xbf16>, vector<128x128xbf16>, vector<256x128xf32> -> vector<256x128xf32>
    %c0_81 = arith.constant 0 : index
    %c0_82 = arith.constant 0 : index
    %c0_83 = arith.constant 0 : index
    %79 = vector.load %arg5[%c0_81, %c0_82, %c0_83] : memref<1x256x128xf32, #tpu.memory_space<vmem>>, vector<1x256x128xf32>
    %80 = vector.shape_cast %79 : vector<1x256x128xf32> to vector<256x128xf32>
    %81 = arith.addf %80, %78 : vector<256x128xf32>
    %c0_84 = arith.constant 0 : index
    %c0_85 = arith.constant 0 : index
    %c0_86 = arith.constant 0 : index
    %82 = vector.load %arg5[%c0_84, %c0_85, %c0_86] : memref<1x256x128xf32, #tpu.memory_space<vmem>>, vector<1x256x128xf32>
    %83 = vector.shape_cast %82 : vector<1x256x128xf32> to vector<256x128xf32>
    %84 = vector.shape_cast %81 : vector<256x128xf32> to vector<1x256x128xf32>
    tpu.vector_store %arg5[%c0_84, %c0_85, %c0_86], %84 {strides = array<i32>} : memref<1x256x128xf32, #tpu.memory_space<vmem>>, vector<1x256x128xf32>,
    %c2_87 = arith.constant 2 : index
    %c7_88 = arith.constant 7 : index
    %c0_89 = arith.constant 0 : index
    %85 = vector.load %arg7[%c2_87, %c7_88, %c0_89] : memref<18x32x128xf32, #tpu.memory_space<vmem>>, vector<16x16x128xf32>
    %86 = vector.shape_cast %85 : vector<16x16x128xf32> to vector<256x128xf32>
    %87 = arith.truncf %86 : vector<256x128xf32> to vector<256x128xbf16>
    %c2_90 = arith.constant 2 : index
    %c0_91 = arith.constant 0 : index
    %c0_92 = arith.constant 0 : index
    %c0_93 = arith.constant 0 : index
    %88 = vector.load %arg4[%c2_90, %c0_91, %c0_92, %c0_93] : memref<3x3x128x128xbf16, #tpu.memory_space<vmem>>, vector<1x1x128x128xbf16>
    %89 = vector.shape_cast %88 : vector<1x1x128x128xbf16> to vector<128x128xbf16>
    %cst_94 = arith.constant dense<0.000000e+00> : vector<256x128xf32>
    %90 = tpu.matmul %87, %89, %cst_94 {dimension_numbers = #tpu.dot_dimension_numbers<[1], [0], [0], [1], [0, 0, 1, 1], [], []>} : vector<256x128xbf16>, vector<128x128xbf16>, vector<256x128xf32> -> vector<256x128xf32>
    %c0_95 = arith.constant 0 : index
    %c0_96 = arith.constant 0 : index
    %c0_97 = arith.constant 0 : index
    %91 = vector.load %arg5[%c0_95, %c0_96, %c0_97] : memref<1x256x128xf32, #tpu.memory_space<vmem>>, vector<1x256x128xf32>
    %92 = vector.shape_cast %91 : vector<1x256x128xf32> to vector<256x128xf32>
    %93 = arith.addf %92, %90 : vector<256x128xf32>
    %c0_98 = arith.constant 0 : index
    %c0_99 = arith.constant 0 : index
    %c0_100 = arith.constant 0 : index
    %94 = vector.load %arg5[%c0_98, %c0_99, %c0_100] : memref<1x256x128xf32, #tpu.memory_space<vmem>>, vector<1x256x128xf32>
    %95 = vector.shape_cast %94 : vector<1x256x128xf32> to vector<256x128xf32>
    %96 = vector.shape_cast %93 : vector<256x128xf32> to vector<1x256x128xf32>
    tpu.vector_store %arg5[%c0_98, %c0_99, %c0_100], %96 {strides = array<i32>} : memref<1x256x128xf32, #tpu.memory_space<vmem>>, vector<1x256x128xf32>,
    %c2_101 = arith.constant 2 : index
    %c8_102 = arith.constant 8 : index
    %c0_103 = arith.constant 0 : index
    %97 = vector.load %arg7[%c2_101, %c8_102, %c0_103] : memref<18x32x128xf32, #tpu.memory_space<vmem>>, vector<16x16x128xf32>
    %98 = vector.shape_cast %97 : vector<16x16x128xf32> to vector<256x128xf32>
    %99 = arith.truncf %98 : vector<256x128xf32> to vector<256x128xbf16>
    %c2_104 = arith.constant 2 : index
    %c1_105 = arith.constant 1 : index
    %c0_106 = arith.constant 0 : index
    %c0_107 = arith.constant 0 : index
    %100 = vector.load %arg4[%c2_104, %c1_105, %c0_106, %c0_107] : memref<3x3x128x128xbf16, #tpu.memory_space<vmem>>, vector<1x1x128x128xbf16>
    %101 = vector.shape_cast %100 : vector<1x1x128x128xbf16> to vector<128x128xbf16>
    %cst_108 = arith.constant dense<0.000000e+00> : vector<256x128xf32>
    %102 = tpu.matmul %99, %101, %cst_108 {dimension_numbers = #tpu.dot_dimension_numbers<[1], [0], [0], [1], [0, 0, 1, 1], [], []>} : vector<256x128xbf16>, vector<128x128xbf16>, vector<256x128xf32> -> vector<256x128xf32>
    %c0_109 = arith.constant 0 : index
    %c0_110 = arith.constant 0 : index
    %c0_111 = arith.constant 0 : index
    %103 = vector.load %arg5[%c0_109, %c0_110, %c0_111] : memref<1x256x128xf32, #tpu.memory_space<vmem>>, vector<1x256x128xf32>
    %104 = vector.shape_cast %103 : vector<1x256x128xf32> to vector<256x128xf32>
    %105 = arith.addf %104, %102 : vector<256x128xf32>
    %c0_112 = arith.constant 0 : index
    %c0_113 = arith.constant 0 : index
    %c0_114 = arith.constant 0 : index
    %106 = vector.load %arg5[%c0_112, %c0_113, %c0_114] : memref<1x256x128xf32, #tpu.memory_space<vmem>>, vector<1x256x128xf32>
    %107 = vector.shape_cast %106 : vector<1x256x128xf32> to vector<256x128xf32>
    %108 = vector.shape_cast %105 : vector<256x128xf32> to vector<1x256x128xf32>
    tpu.vector_store %arg5[%c0_112, %c0_113, %c0_114], %108 {strides = array<i32>} : memref<1x256x128xf32, #tpu.memory_space<vmem>>, vector<1x256x128xf32>,
    %c2_115 = arith.constant 2 : index
    %c9_116 = arith.constant 9 : index
    %c0_117 = arith.constant 0 : index
    %109 = vector.load %arg7[%c2_115, %c9_116, %c0_117] : memref<18x32x128xf32, #tpu.memory_space<vmem>>, vector<16x16x128xf32>
    %110 = vector.shape_cast %109 : vector<16x16x128xf32> to vector<256x128xf32>
    %111 = arith.truncf %110 : vector<256x128xf32> to vector<256x128xbf16>
    %c2_118 = arith.constant 2 : index
    %c2_119 = arith.constant 2 : index
    %c0_120 = arith.constant 0 : index
    %c0_121 = arith.constant 0 : index
    %112 = vector.load %arg4[%c2_118, %c2_119, %c0_120, %c0_121] : memref<3x3x128x128xbf16, #tpu.memory_space<vmem>>, vector<1x1x128x128xbf16>
    %113 = vector.shape_cast %112 : vector<1x1x128x128xbf16> to vector<128x128xbf16>
    %cst_122 = arith.constant dense<0.000000e+00> : vector<256x128xf32>
    %114 = tpu.matmul %111, %113, %cst_122 {dimension_numbers = #tpu.dot_dimension_numbers<[1], [0], [0], [1], [0, 0, 1, 1], [], []>} : vector<256x128xbf16>, vector<128x128xbf16>, vector<256x128xf32> -> vector<256x128xf32>
    %c0_123 = arith.constant 0 : index
    %c0_124 = arith.constant 0 : index
    %c0_125 = arith.constant 0 : index
    %115 = vector.load %arg5[%c0_123, %c0_124, %c0_125] : memref<1x256x128xf32, #tpu.memory_space<vmem>>, vector<1x256x128xf32>
    %116 = vector.shape_cast %115 : vector<1x256x128xf32> to vector<256x128xf32>
    %117 = arith.addf %116, %114 : vector<256x128xf32>
    %c0_126 = arith.constant 0 : index
    %c0_127 = arith.constant 0 : index
    %c0_128 = arith.constant 0 : index
    %118 = vector.load %arg5[%c0_126, %c0_127, %c0_128] : memref<1x256x128xf32, #tpu.memory_space<vmem>>, vector<1x256x128xf32>
    %119 = vector.shape_cast %118 : vector<1x256x128xf32> to vector<256x128xf32>
    %120 = vector.shape_cast %117 : vector<256x128xf32> to vector<1x256x128xf32>
    tpu.vector_store %arg5[%c0_126, %c0_127, %c0_128], %120 {strides = array<i32>} : memref<1x256x128xf32, #tpu.memory_space<vmem>>, vector<1x256x128xf32>,
    %c0_129 = arith.constant 0 : index
    %c0_130 = arith.constant 0 : index
    %c0_131 = arith.constant 0 : index
    %121 = vector.load %arg5[%c0_129, %c0_130, %c0_131] : memref<1x256x128xf32, #tpu.memory_space<vmem>>, vector<1x256x128xf32>
    %122 = vector.shape_cast %121 : vector<1x256x128xf32> to vector<256x128xf32>
    %c0_i32_132 = arith.constant 0 : i32
    %123 = arith.cmpi eq, %arg0, %c0_i32_132 : i32
    %124 = arith.extui %123 : i1 to i32
    %c0_i32_133 = arith.constant 0 : i32
    %125 = arith.cmpi ne, %124, %c0_i32_133 : i32
    scf.if %125 {
      %cst_144 = arith.constant 0.000000e+00 : f32
      %137 = vector.broadcast %cst_144 : f32 to vector<2x128xf32>
      %c0_145 = arith.constant 0 : index
      %c0_146 = arith.constant 0 : index
      %138 = vector.load %arg6[%c0_145, %c0_146] : memref<2x128xf32, #tpu.memory_space<vmem>>, vector<2x128xf32>
      tpu.vector_store %arg6[%c0_145, %c0_146], %137 {strides = array<i32>} : memref<2x128xf32, #tpu.memory_space<vmem>>, vector<2x128xf32>,
    } else {
    }
    %c0_134 = arith.constant 0 : index
    %c0_135 = arith.constant 0 : index
    %126 = vector.load %arg6[%c0_134, %c0_135] : memref<2x128xf32, #tpu.memory_space<vmem>>, vector<1x128xf32>
    %cst_136 = arith.constant dense<0.000000e+00> : vector<128xf32>
    %127 = vector.multi_reduction <add>, %122, %cst_136 [0] : vector<256x128xf32> to vector<128xf32>
    %128 = vector.shape_cast %127 : vector<128xf32> to vector<1x128xf32>
    %129 = arith.addf %126, %128 : vector<1x128xf32>
    %c0_137 = arith.constant 0 : index
    %c0_138 = arith.constant 0 : index
    %130 = vector.load %arg6[%c0_137, %c0_138] : memref<2x128xf32, #tpu.memory_space<vmem>>, vector<1x128xf32>
    tpu.vector_store %arg6[%c0_137, %c0_138], %129 {strides = array<i32>} : memref<2x128xf32, #tpu.memory_space<vmem>>, vector<1x128xf32>,
    %c1_139 = arith.constant 1 : index
    %c0_140 = arith.constant 0 : index
    %131 = vector.load %arg6[%c1_139, %c0_140] : memref<2x128xf32, #tpu.memory_space<vmem>>, vector<1x128xf32>
    %132 = arith.mulf %122, %122 : vector<256x128xf32>
    %cst_141 = arith.constant dense<0.000000e+00> : vector<128xf32>
    %133 = vector.multi_reduction <add>, %132, %cst_141 [0] : vector<256x128xf32> to vector<128xf32>
    %134 = vector.shape_cast %133 : vector<128xf32> to vector<1x128xf32>
    %135 = arith.addf %131, %134 : vector<1x128xf32>
    %c1_142 = arith.constant 1 : index
    %c0_143 = arith.constant 0 : index
    %136 = vector.load %arg6[%c1_142, %c0_143] : memref<2x128xf32, #tpu.memory_space<vmem>>, vector<1x128xf32>
    tpu.vector_store %arg6[%c1_142, %c0_143], %135 {strides = array<i32>} : memref<2x128xf32, #tpu.memory_space<vmem>>, vector<1x128xf32>,
    return
  }
  func.func @transform_0(%arg0: i32) -> (i32, i32, i32, i32) {
    %c0_i32 = arith.constant 0 : i32
    %c0_i32_0 = arith.constant 0 : i32
    %c0_i32_1 = arith.constant 0 : i32
    %c0_i32_2 = arith.constant 0 : i32
    return %arg0, %c0_i32, %c0_i32_0, %c0_i32_1 : i32, i32, i32, i32
  }
  func.func @transform_1(%arg0: i32) -> (i32, i32) {
    %c0_i32 = arith.constant 0 : i32
    %c0_i32_0 = arith.constant 0 : i32
    %c0_i32_1 = arith.constant 0 : i32
    return %c0_i32, %c0_i32_0 : i32, i32
  }
  func.func @transform_2(%arg0: i32) -> (i32, i32) {
    %c0_i32 = arith.constant 0 : i32
    %c0_i32_0 = arith.constant 0 : i32
    %c0_i32_1 = arith.constant 0 : i32
    return %c0_i32, %c0_i32_0 : i32, i32
  }
  func.func @transform_3(%arg0: i32) -> (i32, i32, i32, i32) {
    %c0_i32 = arith.constant 0 : i32
    %c0_i32_0 = arith.constant 0 : i32
    %c0_i32_1 = arith.constant 0 : i32
    %c0_i32_2 = arith.constant 0 : i32
    %c0_i32_3 = arith.constant 0 : i32
    return %c0_i32, %c0_i32_0, %c0_i32_1, %c0_i32_2 : i32, i32, i32, i32
  }
  func.func @transform_4(%arg0: i32) -> (i32, i32, i32) {
    %c0_i32 = arith.constant 0 : i32
    %c0_i32_0 = arith.constant 0 : i32
    %c0_i32_1 = arith.constant 0 : i32
    return %arg0, %c0_i32, %c0_i32_0 : i32, i32, i32
  }
  func.func @transform_5(%arg0: i32) -> (i32, i32) {
    %c0_i32 = arith.constant 0 : i32
    %c0_i32_0 = arith.constant 0 : i32
    %c0_i32_1 = arith.constant 0 : i32
    return %c0_i32, %c0_i32_0 : i32, i32
  }
}

module attributes {stable_mosaic.version = 11 : i64} {
  func.func @bnrelu_matmul_stats_kernel(%arg0: i32, %arg1: memref<512x128xf32, #tpu.memory_space<vmem>>, %arg2: memref<1x128xf32, #tpu.memory_space<vmem>>, %arg3: memref<1x128xf32, #tpu.memory_space<vmem>>, %arg4: memref<128x128xbf16, #tpu.memory_space<vmem>>, %arg5: memref<512x128xf32, #tpu.memory_space<vmem>>, %arg6: memref<2x128xf32, #tpu.memory_space<vmem>>) attributes {dimension_semantics = [#tpu.dimension_semantics<arbitrary>], iteration_bounds = array<i64: 2>, scalar_prefetch = 0 : i64, scratch_operands = 0 : i64, tpu.core_type = #tpu.core_type<tc>, window_params = [{transform_indices = @transform_0, window_bounds = array<i64: 512, 128>}, {pipeline_mode = #tpu.pipeline_mode<synchronous>, transform_indices = @transform_1, window_bounds = array<i64: 1, 128>}, {pipeline_mode = #tpu.pipeline_mode<synchronous>, transform_indices = @transform_2, window_bounds = array<i64: 1, 128>}, {pipeline_mode = #tpu.pipeline_mode<synchronous>, transform_indices = @transform_3, window_bounds = array<i64: 128, 128>}, {transform_indices = @transform_4, window_bounds = array<i64: 512, 128>}, {pipeline_mode = #tpu.pipeline_mode<synchronous>, transform_indices = @transform_5, window_bounds = array<i64: 2, 128>}]} {
    %c0 = arith.constant 0 : index
    %c0_0 = arith.constant 0 : index
    %0 = vector.load %arg1[%c0, %c0_0] : memref<512x128xf32, #tpu.memory_space<vmem>>, vector<512x128xf32>
    %c0_1 = arith.constant 0 : index
    %c0_2 = arith.constant 0 : index
    %1 = vector.load %arg2[%c0_1, %c0_2] : memref<1x128xf32, #tpu.memory_space<vmem>>, vector<1x128xf32>
    %2 = vector.broadcast %1 : vector<1x128xf32> to vector<512x128xf32>
    %3 = arith.mulf %0, %2 : vector<512x128xf32>
    %c0_3 = arith.constant 0 : index
    %c0_4 = arith.constant 0 : index
    %4 = vector.load %arg3[%c0_3, %c0_4] : memref<1x128xf32, #tpu.memory_space<vmem>>, vector<1x128xf32>
    %5 = vector.broadcast %4 : vector<1x128xf32> to vector<512x128xf32>
    %6 = arith.addf %3, %5 : vector<512x128xf32>
    %cst = arith.constant 0.000000e+00 : f32
    %7 = vector.broadcast %cst : f32 to vector<512x128xf32>
    %8 = arith.maximumf %6, %7 : vector<512x128xf32>
    %9 = arith.truncf %8 : vector<512x128xf32> to vector<512x128xbf16>
    %c0_5 = arith.constant 0 : index
    %c0_6 = arith.constant 0 : index
    %10 = vector.load %arg4[%c0_5, %c0_6] : memref<128x128xbf16, #tpu.memory_space<vmem>>, vector<128x128xbf16>
    %cst_7 = arith.constant dense<0.000000e+00> : vector<512x128xf32>
    %11 = tpu.matmul %9, %10, %cst_7 {dimension_numbers = #tpu.dot_dimension_numbers<[1], [0], [0], [1], [0, 0, 1, 1], [], []>} : vector<512x128xbf16>, vector<128x128xbf16>, vector<512x128xf32> -> vector<512x128xf32>
    %c0_8 = arith.constant 0 : index
    %c0_9 = arith.constant 0 : index
    %12 = vector.load %arg5[%c0_8, %c0_9] : memref<512x128xf32, #tpu.memory_space<vmem>>, vector<512x128xf32>
    tpu.vector_store %arg5[%c0_8, %c0_9], %11 {strides = array<i32>} : memref<512x128xf32, #tpu.memory_space<vmem>>, vector<512x128xf32>,
    %c0_i32 = arith.constant 0 : i32
    %13 = arith.cmpi eq, %arg0, %c0_i32 : i32
    %14 = arith.extui %13 : i1 to i32
    %c0_i32_10 = arith.constant 0 : i32
    %15 = arith.cmpi ne, %14, %c0_i32_10 : i32
    scf.if %15 {
      %cst_20 = arith.constant 0.000000e+00 : f32
      %27 = vector.broadcast %cst_20 : f32 to vector<2x128xf32>
      %c0_21 = arith.constant 0 : index
      %c0_22 = arith.constant 0 : index
      %28 = vector.load %arg6[%c0_21, %c0_22] : memref<2x128xf32, #tpu.memory_space<vmem>>, vector<2x128xf32>
      tpu.vector_store %arg6[%c0_21, %c0_22], %27 {strides = array<i32>} : memref<2x128xf32, #tpu.memory_space<vmem>>, vector<2x128xf32>,
    } else {
    }
    %c0_11 = arith.constant 0 : index
    %c0_12 = arith.constant 0 : index
    %16 = vector.load %arg6[%c0_11, %c0_12] : memref<2x128xf32, #tpu.memory_space<vmem>>, vector<1x128xf32>
    %cst_13 = arith.constant dense<0.000000e+00> : vector<128xf32>
    %17 = vector.multi_reduction <add>, %11, %cst_13 [0] : vector<512x128xf32> to vector<128xf32>
    %18 = vector.shape_cast %17 : vector<128xf32> to vector<1x128xf32>
    %19 = arith.addf %16, %18 : vector<1x128xf32>
    %c0_14 = arith.constant 0 : index
    %c0_15 = arith.constant 0 : index
    %20 = vector.load %arg6[%c0_14, %c0_15] : memref<2x128xf32, #tpu.memory_space<vmem>>, vector<1x128xf32>
    tpu.vector_store %arg6[%c0_14, %c0_15], %19 {strides = array<i32>} : memref<2x128xf32, #tpu.memory_space<vmem>>, vector<1x128xf32>,
    %c1 = arith.constant 1 : index
    %c0_16 = arith.constant 0 : index
    %21 = vector.load %arg6[%c1, %c0_16] : memref<2x128xf32, #tpu.memory_space<vmem>>, vector<1x128xf32>
    %22 = arith.mulf %11, %11 : vector<512x128xf32>
    %cst_17 = arith.constant dense<0.000000e+00> : vector<128xf32>
    %23 = vector.multi_reduction <add>, %22, %cst_17 [0] : vector<512x128xf32> to vector<128xf32>
    %24 = vector.shape_cast %23 : vector<128xf32> to vector<1x128xf32>
    %25 = arith.addf %21, %24 : vector<1x128xf32>
    %c1_18 = arith.constant 1 : index
    %c0_19 = arith.constant 0 : index
    %26 = vector.load %arg6[%c1_18, %c0_19] : memref<2x128xf32, #tpu.memory_space<vmem>>, vector<1x128xf32>
    tpu.vector_store %arg6[%c1_18, %c0_19], %25 {strides = array<i32>} : memref<2x128xf32, #tpu.memory_space<vmem>>, vector<1x128xf32>,
    return
  }
  func.func @transform_0(%arg0: i32) -> (i32, i32) {
    %c0_i32 = arith.constant 0 : i32
    %c0_i32_0 = arith.constant 0 : i32
    return %arg0, %c0_i32 : i32, i32
  }
  func.func @transform_1(%arg0: i32) -> (i32, i32) {
    %c0_i32 = arith.constant 0 : i32
    %c0_i32_0 = arith.constant 0 : i32
    %c0_i32_1 = arith.constant 0 : i32
    return %c0_i32, %c0_i32_0 : i32, i32
  }
  func.func @transform_2(%arg0: i32) -> (i32, i32) {
    %c0_i32 = arith.constant 0 : i32
    %c0_i32_0 = arith.constant 0 : i32
    %c0_i32_1 = arith.constant 0 : i32
    return %c0_i32, %c0_i32_0 : i32, i32
  }
  func.func @transform_3(%arg0: i32) -> (i32, i32) {
    %c0_i32 = arith.constant 0 : i32
    %c0_i32_0 = arith.constant 0 : i32
    %c0_i32_1 = arith.constant 0 : i32
    return %c0_i32, %c0_i32_0 : i32, i32
  }
  func.func @transform_4(%arg0: i32) -> (i32, i32) {
    %c0_i32 = arith.constant 0 : i32
    %c0_i32_0 = arith.constant 0 : i32
    return %arg0, %c0_i32 : i32, i32
  }
  func.func @transform_5(%arg0: i32) -> (i32, i32) {
    %c0_i32 = arith.constant 0 : i32
    %c0_i32_0 = arith.constant 0 : i32
    %c0_i32_1 = arith.constant 0 : i32
    return %c0_i32, %c0_i32_0 : i32, i32
  }
}

module attributes {stable_mosaic.version = 11 : i64} {
  func.func @bn_add_relu_kernel(%arg0: i32, %arg1: memref<512x128xf32, #tpu.memory_space<vmem>>, %arg2: memref<1x128xf32, #tpu.memory_space<vmem>>, %arg3: memref<1x128xf32, #tpu.memory_space<vmem>>, %arg4: memref<512x128xf32, #tpu.memory_space<vmem>>, %arg5: memref<512x128xf32, #tpu.memory_space<vmem>>) attributes {dimension_semantics = [#tpu.dimension_semantics<parallel>], iteration_bounds = array<i64: 2>, scalar_prefetch = 0 : i64, scratch_operands = 0 : i64, tpu.core_type = #tpu.core_type<tc>, window_params = [{transform_indices = @transform_0, window_bounds = array<i64: 512, 128>}, {pipeline_mode = #tpu.pipeline_mode<synchronous>, transform_indices = @transform_1, window_bounds = array<i64: 1, 128>}, {pipeline_mode = #tpu.pipeline_mode<synchronous>, transform_indices = @transform_2, window_bounds = array<i64: 1, 128>}, {transform_indices = @transform_3, window_bounds = array<i64: 512, 128>}, {transform_indices = @transform_4, window_bounds = array<i64: 512, 128>}]} {
    %c0 = arith.constant 0 : index
    %c0_0 = arith.constant 0 : index
    %0 = vector.load %arg1[%c0, %c0_0] : memref<512x128xf32, #tpu.memory_space<vmem>>, vector<512x128xf32>
    %c0_1 = arith.constant 0 : index
    %c0_2 = arith.constant 0 : index
    %1 = vector.load %arg2[%c0_1, %c0_2] : memref<1x128xf32, #tpu.memory_space<vmem>>, vector<1x128xf32>
    %2 = vector.broadcast %1 : vector<1x128xf32> to vector<512x128xf32>
    %3 = arith.mulf %0, %2 : vector<512x128xf32>
    %c0_3 = arith.constant 0 : index
    %c0_4 = arith.constant 0 : index
    %4 = vector.load %arg3[%c0_3, %c0_4] : memref<1x128xf32, #tpu.memory_space<vmem>>, vector<1x128xf32>
    %5 = vector.broadcast %4 : vector<1x128xf32> to vector<512x128xf32>
    %6 = arith.addf %3, %5 : vector<512x128xf32>
    %c0_5 = arith.constant 0 : index
    %c0_6 = arith.constant 0 : index
    %7 = vector.load %arg4[%c0_5, %c0_6] : memref<512x128xf32, #tpu.memory_space<vmem>>, vector<512x128xf32>
    %8 = arith.addf %6, %7 : vector<512x128xf32>
    %cst = arith.constant 0.000000e+00 : f32
    %9 = vector.broadcast %cst : f32 to vector<512x128xf32>
    %10 = arith.maximumf %8, %9 : vector<512x128xf32>
    %c0_7 = arith.constant 0 : index
    %c0_8 = arith.constant 0 : index
    %11 = vector.load %arg5[%c0_7, %c0_8] : memref<512x128xf32, #tpu.memory_space<vmem>>, vector<512x128xf32>
    tpu.vector_store %arg5[%c0_7, %c0_8], %10 {strides = array<i32>} : memref<512x128xf32, #tpu.memory_space<vmem>>, vector<512x128xf32>,
    return
  }
  func.func @transform_0(%arg0: i32) -> (i32, i32) {
    %c0_i32 = arith.constant 0 : i32
    %c0_i32_0 = arith.constant 0 : i32
    return %arg0, %c0_i32 : i32, i32
  }
  func.func @transform_1(%arg0: i32) -> (i32, i32) {
    %c0_i32 = arith.constant 0 : i32
    %c0_i32_0 = arith.constant 0 : i32
    %c0_i32_1 = arith.constant 0 : i32
    return %c0_i32, %c0_i32_0 : i32, i32
  }
  func.func @transform_2(%arg0: i32) -> (i32, i32) {
    %c0_i32 = arith.constant 0 : i32
    %c0_i32_0 = arith.constant 0 : i32
    %c0_i32_1 = arith.constant 0 : i32
    return %c0_i32, %c0_i32_0 : i32, i32
  }
  func.func @transform_3(%arg0: i32) -> (i32, i32) {
    %c0_i32 = arith.constant 0 : i32
    %c0_i32_0 = arith.constant 0 : i32
    return %arg0, %c0_i32 : i32, i32
  }
  func.func @transform_4(%arg0: i32) -> (i32, i32) {
    %c0_i32 = arith.constant 0 : i32
    %c0_i32_0 = arith.constant 0 : i32
    return %arg0, %c0_i32 : i32, i32
  }
}

</mosaic_0001>

<bundles_post_ra>
// kernel: block_forward.6
= control target key start
LH: loop header
LB: loop body
LE: loop exit
PB: predicated region body
PF: predicated region fallthrough
CT: control target
= control target key end

     0   :  { %s1435_s18 = smov 0   ;;  %s2197_s0 = inlined_call_operand.vmem [shape: f32[1024,128], index: 0, kind: input, shape index: {}]   ;;  %s2198_s1 = inlined_call_operand.vmem [shape: f32[1,128], index: 1, kind: input, shape index: {}]   ;;  %s2199_s2 = inlined_call_operand.vmem [shape: f32[1,128], index: 2, kind: input, shape index: {}]   ;;  %s2200_s3 = inlined_call_operand.vmem [shape: bf16[128,128], index: 3, kind: input, shape index: {}]   ;;  %s2201_s4 = inlined_call_operand.vmem [shape: f32[1024,128], index: 4, kind: output, shape index: {0}]   ;;  %s2202_s5 = inlined_call_operand.vmem [shape: f32[2,128], index: 5, kind: output, shape index: {1}]  }
   0x1 LB: > { %s1221_s19 = sadd.s32 4294967295, %s1402_s18   ;;  %p1225_p0 = scmp.ge.s32.totalorder %s1402_s18, 1  ;;  %s1402_s18 = sphi %s1435_s18, %s16_s18  }
   0x2   : > { %p186_p1 = scmp.lt.s32.totalorder %s1402_s18, 3 }
   0x4   : > { %p187_p2 = pnand %p1225_p0, %p186_p1 }
   0x6   : > { %190 = sbr.rel (%p187_p2) target bundleno = 474 (0x1da), region = 36 }
   0xd   : > { %v1388_v0 = vld [vmem:[%s2200_s3] sm:$0xff]   ;;  %s1226_s22 = sshll.u32 %s1221_s19, 6  ;;  %v1389_v1 = vld [vmem:[%s2200_s3 + $0x8] sm:$0xff]   ;;  %v1390_v2 = vld [vmem:[%s2200_s3 + $0x10] sm:$0xff]   ;;  %p1240_p4 = scmp.ne.s32.totalorder %s1221_s19, 0 }
   0xe   : > { %p215_p3 = scmp.lt.s32.totalorder %s1226_s22, 127  ;;  %1283 = vmatprep.subr.bf16.mxu0 %v1388_v0  ;;  %1363 = vmatprep.subr.bf16.mxu1 %v1388_v0  ;;  %v1391_v3 = vld [vmem:[%s2200_s3 + $0x18] sm:$0xff]   ;;  %v1472_v6 = vld [vmem:[%s2198_s1] ss:$0 sm:$0xff]  ;;  %v1393_v39 = vld [vmem:[%s2200_s3 + $0x28] sm:$0xff]  }
   0xf   : > { %1284 = vmatpush3.bf16.msra.mxu0 %v1388_v0  ;;  %1371 = vmatpush3.bf16.msra.mxu1 %v1388_v0  ;;  %v1479_v9 = vld [vmem:[%s2199_s2] ss:$0 sm:$0xff]  ;;  %v1394_v56 = vld [vmem:[%s2200_s3 + $0x30] sm:$0xff]  }
  0x10   : > { %s2252_s22 = smov (!%p215_p3, %s1226_s22), 127  ;;  %1285 = vmatprep.subr.bf16.mxu0 %v1389_v1  ;;  %1364 = vmatprep.subr.bf16.mxu1 %v1389_v1  ;;  %v1392_v21 = vld [vmem:[%s2200_s3 + $0x20] sm:$0xff]  }
  0x11   : > { %s1227_s27 = sshll.u32 %s2252_s22, 3 }
  0x12   : > { %s1462_s30 = scalar_lea.vmem %s2197_s0, %s1227_s27  ;;  %s1727_s25 = scalar_lea.vmem %s2201_s4, %s1227_s27 }
  0x13   : > { %1286 = vmatpush3.bf16.msra.mxu0 %v1389_v1  ;;  %1372 = vmatpush3.bf16.msra.mxu1 %v1389_v1  ;;  %v227_v4 = vld [vmem:[%s1462_s30] sm:$0xff]  ;;  %v228_v5 = vld [vmem:[%s1462_s30 + $0x8] sm:$0xff]  ;;  %v229_v14 = vld [vmem:[%s1462_s30 + $0x10] sm:$0xff] }
  0x14   : > { %1287 = vmatprep.subr.bf16.mxu0 %v1390_v2  ;;  %1365 = vmatprep.subr.bf16.mxu1 %v1390_v2  ;;  %v298_v7 = vmul.f32 %v1472_v6, %v227_v4  ;;  %v299_v8 = vmul.f32 %v1472_v6, %v228_v5  ;;  %v259_v10 = vld [vmem:[%s1462_s30 + $0x100] sm:$0xff]  ;;  %v260_v11 = vld [vmem:[%s1462_s30 + $0x108] sm:$0xff]  ;;  %v230_v15 = vld [vmem:[%s1462_s30 + $0x18] sm:$0xff]  ;;  %v300_v19 = vmul.f32 %v1472_v6, %v229_v14 }
  0x15   : > { %v330_v12 = vmul.f32 %v1472_v6, %v259_v10  ;;  %v331_v13 = vmul.f32 %v1472_v6, %v260_v11  ;;  %v261_v16 = vld [vmem:[%s1462_s30 + $0x110] sm:$0xff]  ;;  %v262_v20 = vld [vmem:[%s1462_s30 + $0x118] sm:$0xff]  ;;  %v301_v24 = vmul.f32 %v1472_v6, %v230_v15  ;;  %v231_v25 = vld [vmem:[%s1462_s30 + $0x20] sm:$0xff] }
  0x16   : > { %v369_v17 = vadd.f32 %v1479_v9, %v298_v7  ;;  %v370_v18 = vadd.f32 %v1479_v9, %v299_v8  ;;  %v332_v28 = vmul.f32 %v1472_v6, %v261_v16  ;;  %v232_v29 = vld [vmem:[%s1462_s30 + $0x28] sm:$0xff]  ;;  %v333_v32 = vmul.f32 %v1472_v6, %v262_v20  ;;  %v263_v33 = vld [vmem:[%s1462_s30 + $0x120] sm:$0xff]  ;;  %v233_v38 = vld [vmem:[%s1462_s30 + $0x30] sm:$0xff] }
  0x17   : > { %1288 = vmatpush3.bf16.msra.mxu0 %v1390_v2  ;;  %1373 = vmatpush3.bf16.msra.mxu1 %v1390_v2  ;;  %v401_v22 = vadd.f32 %v1479_v9, %v330_v12  ;;  %v402_v23 = vadd.f32 %v1479_v9, %v331_v13  ;;  %v264_v34 = vld [vmem:[%s1462_s30 + $0x128] sm:$0xff]  ;;  %v371_v36 = vadd.f32 %v1479_v9, %v300_v19  ;;  %v234_v43 = vld [vmem:[%s1462_s30 + $0x38] sm:$0xff]  ;;  %v265_v47 = vld [vmem:[%s1462_s30 + $0x130] sm:$0xff] }
  0x18   : > { %1289 = vmatprep.subr.bf16.mxu0 %v1391_v3  ;;  %1366 = vmatprep.subr.bf16.mxu1 %v1391_v3  ;;  %v433_v26 = vmax.f32 %v369_v17, 0.0  ;;  %v434_v27 = vmax.f32 %v370_v18, 0.0  ;;  %v302_v37 = vmul.f32 %v1472_v6, %v231_v25  ;;  %v372_v41 = vadd.f32 %v1479_v9, %v301_v24  ;;  %v266_v52 = vld [vmem:[%s1462_s30 + $0x138] sm:$0xff]  ;;  %v235_v61 = vld [vmem:[%s1462_s30 + $0x40] sm:$0xff]  ;;  %v236_v1 = vld [vmem:[%s1462_s30 + $0x48] sm:$0xff] }
  0x19   : > { %v465_v30 = vmax.f32 %v401_v22, 0.0  ;;  %v466_v31 = vmax.f32 %v402_v23, 0.0  ;;  %v303_v42 = vmul.f32 %v1472_v6, %v232_v29  ;;  %v403_v44 = vadd.f32 %v1479_v9, %v332_v28  ;;  %v267_v7 = vld [vmem:[%s1462_s30 + $0x140] sm:$0xff]  ;;  %v268_v8 = vld [vmem:[%s1462_s30 + $0x148] sm:$0xff]  ;;  %v237_v14 = vld [vmem:[%s1462_s30 + $0x50] sm:$0xff] }
  0x1a   : > { %v497_v35 = vpack.c.bf16 %v434_v27, %v433_v26  ;;  %v334_v45 = vmul.f32 %v1472_v6, %v263_v33  ;;  %v335_v46 = vmul.f32 %v1472_v6, %v264_v34  ;;  %v404_v48 = vadd.f32 %v1479_v9, %v333_v32  ;;  %v238_v15 = vld [vmem:[%s1462_s30 + $0x58] sm:$0xff] }
  0x1b   : > { %1290 = vmatpush3.bf16.msra.mxu0 %v1391_v3  ;;  %1374 = vmatpush3.bf16.msra.mxu1 %v1391_v3  ;;  %v513_v40 = vpack.c.bf16 %v466_v31, %v465_v30  ;;  %v373_v49 = vadd.f32 %v1479_v9, %v302_v37  ;;  %v374_v50 = vadd.f32 %v1479_v9, %v303_v42  ;;  %v435_v57 = vmax.f32 %v371_v36, 0.0  ;;  %v1395_v16 = vld [vmem:[%s2200_s3 + $0x38] sm:$0xff]   ;;  %v239_v31 = vld [vmem:[%s1462_s30 + $0x60] sm:$0xff] }
  0x1c   : > { %1291 = vmatprep.subr.bf16.mxu0 %v1392_v21  ;;  %1367 = vmatprep.subr.bf16.mxu1 %v1392_v21  ;;  %v304_v51 = vmul.f32 %v1472_v6, %v233_v38  ;;  %v405_v53 = vadd.f32 %v1479_v9, %v334_v45  ;;  %v406_v54 = vadd.f32 %v1479_v9, %v335_v46  ;;  %v436_v58 = vmax.f32 %v372_v41, 0.0  ;;  %v270_v26 = vld [vmem:[%s1462_s30 + $0x158] sm:$0xff]  ;;  %v241_v45 = vld [vmem:[%s1462_s30 + $0x70] sm:$0xff] }
  0x1d   : > { %1299 = vmatprep.mubr.bf16.mxu0 %v497_v35  ;;  %1331 = vmatprep.mubr.bf16.mxu1 %v513_v40  ;;  %v305_v55 = vmul.f32 %v1472_v6, %v234_v43  ;;  %v336_v60 = vmul.f32 %v1472_v6, %v265_v47  ;;  %v467_v62 = vmax.f32 %v403_v44, 0.0  ;;  %v337_v0 = vmul.f32 %v1472_v6, %v266_v52  ;;  %v240_v35 = vld [vmem:[%s1462_s30 + $0x68] sm:$0xff] }
  0x1e   : > { %v375_v59 = vadd.f32 %v1479_v9, %v304_v51  ;;  %v468_v2 = vmax.f32 %v404_v48, 0.0  ;;  %v437_v3 = vmax.f32 %v373_v49, 0.0  ;;  %v438_v4 = vmax.f32 %v374_v50, 0.0  ;;  %v272_v40 = vld [vmem:[%s1462_s30 + $0x168] sm:$0xff]  ;;  %v242_v50 = vld [vmem:[%s1462_s30 + $0x78] sm:$0xff] }
  0x1f   : > { %1292 = vmatpush3.bf16.msra.mxu0 %v1392_v21  ;;  %1375 = vmatpush3.bf16.msra.mxu1 %v1392_v21  ;;  %v376_v63 = vadd.f32 %v1479_v9, %v305_v55  ;;  %v407_v5 = vadd.f32 %v1479_v9, %v336_v60  ;;  %v469_v10 = vmax.f32 %v405_v53, 0.0  ;;  %v470_v11 = vmax.f32 %v406_v54, 0.0  ;;  %v269_v21 = vld [vmem:[%s1462_s30 + $0x150] sm:$0xff] }
  0x20   : > { %1293 = vmatprep.subr.bf16.mxu0 %v1393_v39  ;;  %1368 = vmatprep.subr.bf16.mxu1 %v1393_v39  ;;  %v408_v12 = vadd.f32 %v1479_v9, %v337_v0  ;;  %v306_v13 = vmul.f32 %v1472_v6, %v235_v61  ;;  %v498_v17 = vpack.c.bf16 %v436_v58, %v435_v57  ;;  %v439_v18 = vmax.f32 %v375_v59, 0.0  ;;  %v273_v59 = vld [vmem:[%s1462_s30 + $0x170] sm:$0xff] }
  0x21   : > { %v440_v19 = vmax.f32 %v376_v63, 0.0  ;;  %v307_v20 = vmul.f32 %v1472_v6, %v236_v1  ;;  %v471_v22 = vmax.f32 %v407_v5, 0.0  ;;  %v338_v24 = vmul.f32 %v1472_v6, %v267_v7  ;;  %v243_v5 = vld [vmem:[%s1462_s30 + $0x80] sm:$0xff] }
  0x22   : > { %v472_v23 = vmax.f32 %v408_v12, 0.0  ;;  %v339_v25 = vmul.f32 %v1472_v6, %v268_v8  ;;  %v514_v27 = vpack.c.bf16 %v468_v2, %v467_v62  ;;  %v499_v28 = vpack.c.bf16 %v438_v4, %v437_v3  ;;  %v274_v4 = vld [vmem:[%s1462_s30 + $0x178] sm:$0xff]  ;;  %v244_v12 = vld [vmem:[%s1462_s30 + $0x88] sm:$0xff] }
  0x23   : > { %1294 = vmatpush3.bf16.msra.mxu0 %v1393_v39  ;;  %1376 = vmatpush3.bf16.msra.mxu1 %v1393_v39  ;;  %v308_v29 = vmul.f32 %v1472_v6, %v237_v14  ;;  %v309_v30 = vmul.f32 %v1472_v6, %v238_v15  ;;  %v515_v32 = vpack.c.bf16 %v470_v11, %v469_v10  ;;  %v271_v39 = vld [vmem:[%s1462_s30 + $0x160] sm:$0xff] }
  0x24   : > { %1295 = vmatprep.subr.bf16.mxu0 %v1394_v56  ;;  %1369 = vmatprep.subr.bf16.mxu1 %v1394_v56  ;;  %v1553_v33 = vadd.f32 %v1479_v9, %v306_v13  ;;  %v340_v34 = vmul.f32 %v1472_v6, %v269_v21  ;;  %v1557_v36 = vpack.c.bf16 %v440_v19, %v439_v18  ;;  %v275_v13 = vld [vmem:[%s1462_s30 + $0x180] sm:$0xff]  ;;  %v276_v18 = vld [vmem:[%s1462_s30 + $0x188] sm:$0xff]  ;;  %v245_v19 = vld [vmem:[%s1462_s30 + $0x90] sm:$0xff] }
  0x25   : > { %v378_v37 = vadd.f32 %v1479_v9, %v307_v20  ;;  %v341_v38 = vmul.f32 %v1472_v6, %v270_v26  ;;  %v1563_v41 = vpack.c.bf16 %v472_v23, %v471_v22  ;;  %v409_v42 = vadd.f32 %v1479_v9, %v338_v24  ;;  %v246_v24 = vld [vmem:[%s1462_s30 + $0x98] sm:$0xff] }
  0x26   : > { %v410_v43 = vadd.f32 %v1479_v9, %v339_v25  ;;  %v310_v44 = vmul.f32 %v1472_v6, %v239_v31  ;;  %v379_v46 = vadd.f32 %v1479_v9, %v308_v29  ;;  %v380_v47 = vadd.f32 %v1479_v9, %v309_v30  ;;  %v277_v29 = vld [vmem:[%s1462_s30 + $0x190] sm:$0xff] }
  0x27   : > { %1296 = vmatpush3.bf16.msra.mxu0 %v1394_v56  ;;  %1377 = vmatpush3.bf16.msra.mxu1 %v1394_v56  ;;  %v411_v48 = vadd.f32 %v1479_v9, %v340_v34  ;;  %v311_v49 = vmul.f32 %v1472_v6, %v240_v35  ;;  %v441_v51 = vmax.f32 %v1553_v33, 0.0  ;;  %v412_v52 = vadd.f32 %v1479_v9, %v341_v38  ;;  %v278_v34 = vld [vmem:[%s1462_s30 + $0x198] sm:$0xff] }
  0x28   : > { %1297 = vmatprep.subr.bf16.mxu0 %v1395_v16  ;;  %1370 = vmatprep.subr.bf16.mxu1 %v1395_v16  ;;  %v342_v53 = vmul.f32 %v1472_v6, %v271_v39  ;;  %v343_v54 = vmul.f32 %v1472_v6, %v272_v40  ;;  %v442_v55 = vmax.f32 %v378_v37, 0.0  ;;  %v381_v56 = vadd.f32 %v1479_v9, %v310_v44  ;;  %v247_v40 = vld [vmem:[%s1462_s30 + $0xa0] sm:$0xff] }
  0x29   : > { %v382_v57 = vadd.f32 %v1479_v9, %v311_v49  ;;  %v312_v58 = vmul.f32 %v1472_v6, %v241_v45  ;;  %v473_v60 = vmax.f32 %v409_v42, 0.0  ;;  %v313_v63 = vmul.f32 %v1472_v6, %v242_v50  ;;  %v279_v50 = vld [vmem:[%s1462_s30 + $0x1a0] sm:$0xff] }
  0x2a   : > { %v413_v61 = vadd.f32 %v1479_v9, %v342_v53  ;;  %v414_v62 = vadd.f32 %v1479_v9, %v343_v54  ;;  %v474_v0 = vmax.f32 %v410_v43, 0.0  ;;  %v443_v1 = vmax.f32 %v379_v46, 0.0  ;;  %v248_v46 = vld [vmem:[%s1462_s30 + $0xa8] sm:$0xff] }
  0x2b   : > { %1298 = vmatpush3.bf16.msra.mxu0 %v1395_v16  ;;  %1378 = vmatpush3.bf16.msra.mxu1 %v1395_v16  ;;  %v444_v2 = vmax.f32 %v380_v47, 0.0  ;;  %v383_v3 = vadd.f32 %v1479_v9, %v312_v58  ;;  %v475_v7 = vmax.f32 %v411_v48, 0.0  ;;  %v476_v8 = vmax.f32 %v412_v52, 0.0 }
  0x2c   : > { %v384_v10 = vadd.f32 %v1479_v9, %v313_v63  ;;  %v344_v11 = vmul.f32 %v1472_v6, %v273_v59  ;;  %v445_v14 = vmax.f32 %v381_v56, 0.0  ;;  %v446_v15 = vmax.f32 %v382_v57, 0.0 }
  0x2d   : > { %v477_v16 = vmax.f32 %v413_v61, 0.0  ;;  %v447_v20 = vmax.f32 %v383_v3, 0.0  ;;  %v345_v22 = vmul.f32 %v1472_v6, %v274_v4  ;;  %v314_v23 = vmul.f32 %v1472_v6, %v243_v5 }
  0x2e   : > { %1300 = vmatmul.mubr.bf16.vlgmr.msra.gmra.mrb[0].mxu0 %v498_v17  ;;  %1332 = vmatmul.mubr.bf16.vlgmr.msra.gmra.mrb[0].mxu1 %v514_v27  ;;  %v478_v17 = vmax.f32 %v414_v62, 0.0  ;;  %v448_v21 = vmax.f32 %v384_v10, 0.0  ;;  %v501_v25 = vpack.c.bf16 %v442_v55, %v441_v51  ;;  %v517_v26 = vpack.c.bf16 %v474_v0, %v473_v60  ;;  %v280_v51 = vld [vmem:[%s1462_s30 + $0x1a8] sm:$0xff]  ;;  %v249_v55 = vld [vmem:[%s1462_s30 + $0xb0] sm:$0xff] }
  0x2f   : > { %1303 = vmatprep.mubr.bf16.mxu0 %v499_v28  ;;  %1335 = vmatprep.mubr.bf16.mxu1 %v515_v32  ;;  %v315_v27 = vmul.f32 %v1472_v6, %v244_v12  ;;  %v346_v28 = vmul.f32 %v1472_v6, %v275_v13  ;;  %v502_v30 = vpack.c.bf16 %v444_v2, %v443_v1  ;;  %v250_v2 = vld [vmem:[%s1462_s30 + $0xb8] sm:$0xff]  ;;  %v281_v10 = vld [vmem:[%s1462_s30 + $0x1b0] sm:$0xff] }
  0x30   : > { %v415_v31 = vadd.f32 %v1479_v9, %v344_v11  ;;  %v347_v32 = vmul.f32 %v1472_v6, %v276_v18  ;;  %v316_v33 = vmul.f32 %v1472_v6, %v245_v19  ;;  %v518_v35 = vpack.c.bf16 %v476_v8, %v475_v7 }
  0x31   : > { %v503_v37 = vpack.c.bf16 %v446_v15, %v445_v14  ;;  %v519_v38 = vpack.c.bf16 %v478_v17, %v477_v16  ;;  %v317_v39 = vmul.f32 %v1472_v6, %v246_v24  ;;  %v1606_v42 = vpack.c.bf16 %v448_v21, %v447_v20  ;;  %v282_v15 = vld [vmem:[%s1462_s30 + $0x1b8] sm:$0xff]  ;;  %v251_v20 = vld [vmem:[%s1462_s30 + $0xc0] sm:$0xff]  ;;  %v252_v21 = vld [vmem:[%s1462_s30 + $0xc8] sm:$0xff] }
  0x32   : > { %v416_v43 = vadd.f32 %v1479_v9, %v345_v22  ;;  %v385_v44 = vadd.f32 %v1479_v9, %v314_v23  ;;  %v348_v45 = vmul.f32 %v1472_v6, %v277_v29  ;;  %v386_v47 = vadd.f32 %v1479_v9, %v315_v27 }
  0x33   : > { %v417_v48 = vadd.f32 %v1479_v9, %v346_v28  ;;  %v349_v49 = vmul.f32 %v1472_v6, %v278_v34  ;;  %v479_v52 = vmax.f32 %v415_v31, 0.0  ;;  %v418_v53 = vadd.f32 %v1479_v9, %v347_v32  ;;  %v284_v32 = vld [vmem:[%s1462_s30 + $0x1c8] sm:$0xff] }
  0x34   : > { %v387_v54 = vadd.f32 %v1479_v9, %v316_v33  ;;  %v419_v56 = vadd.f32 %v1479_v9, %v348_v45  ;;  %v319_v58 = vmul.f32 %v1472_v6, %v248_v46  ;;  %v480_v59 = vmax.f32 %v416_v43, 0.0  ;;  %v286_v45 = vld [vmem:[%s1462_s30 + $0x1d8] sm:$0xff] }
  0x35   : > { %v420_v57 = vadd.f32 %v1479_v9, %v349_v49  ;;  %v350_v61 = vmul.f32 %v1472_v6, %v279_v50  ;;  %v351_v62 = vmul.f32 %v1472_v6, %v280_v51  ;;  %v449_v63 = vmax.f32 %v385_v44, 0.0  ;;  %v255_v50 = vld [vmem:[%s1462_s30 + $0xe0] sm:$0xff] }
  0x36   : > { %1304 = vmatmul.mubr.bf16.gmra.mrb[4].mxu0 %v1557_v36  ;;  %1336 = vmatmul.mubr.bf16.gmra.mrb[4].mxu1 %v1563_v41  ;;  %v318_v36 = vmul.f32 %v1472_v6, %v247_v40  ;;  %v388_v41 = vadd.f32 %v1479_v9, %v317_v39  ;;  %v450_v0 = vmax.f32 %v386_v47, 0.0  ;;  %v390_v1 = vadd.f32 %v1479_v9, %v319_v58  ;;  %v287_v58 = vld [vmem:[%s1462_s30 + $0x1e0] sm:$0xff] }
  0x37   : > { %1307 = vmatprep.mubr.bf16.mxu0 %v501_v25  ;;  %1339 = vmatprep.mubr.bf16.mxu1 %v517_v26  ;;  %v320_v3 = vmul.f32 %v1472_v6, %v249_v55  ;;  %v481_v4 = vmax.f32 %v417_v48, 0.0  ;;  %v482_v5 = vmax.f32 %v418_v53, 0.0  ;;  %v421_v7 = vadd.f32 %v1479_v9, %v350_v61  ;;  %v283_v25 = vld [vmem:[%s1462_s30 + $0x1c0] sm:$0xff]  ;;  %v253_v26 = vld [vmem:[%s1462_s30 + $0xd0] sm:$0xff] }
  0x38   : > { %v389_v60 = vadd.f32 %v1479_v9, %v318_v36  ;;  %v422_v8 = vadd.f32 %v1479_v9, %v351_v62  ;;  %v451_v11 = vmax.f32 %v387_v54, 0.0  ;;  %v452_v12 = vmax.f32 %v388_v41, 0.0  ;;  %v256_v36 = vld [vmem:[%s1462_s30 + $0xe8] sm:$0xff] }
  0x39   : > { %v483_v13 = vmax.f32 %v419_v56, 0.0  ;;  %v484_v14 = vmax.f32 %v420_v57, 0.0  ;;  %v520_v16 = vpack.c.bf16 %v480_v59, %v479_v52  ;;  %v454_v18 = vmax.f32 %v390_v1, 0.0  ;;  %v288_v59 = vld [vmem:[%s1462_s30 + $0x1e8] sm:$0xff] }
  0x3a   : > { %v453_v17 = vmax.f32 %v389_v60, 0.0  ;;  %v321_v19 = vmul.f32 %v1472_v6, %v250_v2  ;;  %v505_v22 = vpack.c.bf16 %v450_v0, %v449_v63  ;;  %v1641_v23 = vadd.f32 %v1479_v9, %v320_v3  ;;  %v257_v0 = vld [vmem:[%s1462_s30 + $0xf0] sm:$0xff] }
  0x3b   : > { %v352_v24 = vmul.f32 %v1472_v6, %v281_v10  ;;  %v521_v27 = vpack.c.bf16 %v482_v5, %v481_v4  ;;  %v485_v28 = vmax.f32 %v421_v7, 0.0  ;;  %v486_v29 = vmax.f32 %v422_v8, 0.0  ;;  %v258_v5 = vld [vmem:[%s1462_s30 + $0xf8] sm:$0xff] }
  0x3c   : > { %v353_v31 = vmul.f32 %v1472_v6, %v282_v15  ;;  %v1649_v33 = vpack.c.bf16 %v452_v12, %v451_v11  ;;  %v1651_v34 = vpack.c.bf16 %v484_v14, %v483_v13  ;;  %v323_v39 = vmul.f32 %v1472_v6, %v252_v21 }
  0x3d   : > { %v1659_v40 = vadd.f32 %v1479_v9, %v321_v19  ;;  %v354_v43 = vmul.f32 %v1472_v6, %v283_v25  ;;  %v324_v44 = vmul.f32 %v1472_v6, %v253_v26  ;;  %v455_v46 = vmax.f32 %v1641_v23, 0.0 }
  0x3e   : > { %1308 = vmatmul.mubr.bf16.gmra.mrb[8].mxu0 %v502_v30  ;;  %1340 = vmatmul.mubr.bf16.gmra.mrb[8].mxu1 %v518_v35  ;;  %v254_v30 = vld [vmem:[%s1462_s30 + $0xd8] sm:$0xff]  ;;  %v322_v35 = vmul.f32 %v1472_v6, %v251_v20  ;;  %v1666_v47 = vadd.f32 %v1479_v9, %v352_v24  ;;  %v355_v48 = vmul.f32 %v1472_v6, %v284_v32 }
  0x3f   : > { %1311 = vmatprep.mubr.bf16.mxu0 %v503_v37  ;;  %1343 = vmatprep.mubr.bf16.mxu1 %v519_v38  ;;  %v285_v37 = vld [vmem:[%s1462_s30 + $0x1d0] sm:$0xff]  ;;  %v1656_v38 = vpack.c.bf16 %v454_v18, %v453_v17  ;;  %v325_v49 = vmul.f32 %v1472_v6, %v254_v30  ;;  %v523_v51 = vpack.c.bf16 %v486_v29, %v485_v28 }
  0x40   : > { %v1672_v52 = vadd.f32 %v1479_v9, %v353_v31  ;;  %v395_v53 = vadd.f32 %v1479_v9, %v324_v44  ;;  %v356_v54 = vmul.f32 %v1472_v6, %v285_v37  ;;  %v1678_v55 = vadd.f32 %v1479_v9, %v322_v35 }
  0x41   : > { %v1681_v41 = vadd.f32 %v1479_v9, %v323_v39  ;;  %v396_v56 = vadd.f32 %v1479_v9, %v325_v49  ;;  %v357_v57 = vmul.f32 %v1472_v6, %v286_v45  ;;  %v425_v60 = vadd.f32 %v1479_v9, %v354_v43 }
  0x42   : > { %v459_v61 = vmax.f32 %v395_v53, 0.0  ;;  %v427_v62 = vadd.f32 %v1479_v9, %v356_v54  ;;  %v326_v63 = vmul.f32 %v1472_v6, %v255_v50  ;;  %v426_v1 = vadd.f32 %v1479_v9, %v355_v48 }
  0x43   : > { %v460_v2 = vmax.f32 %v396_v56, 0.0  ;;  %v428_v3 = vadd.f32 %v1479_v9, %v357_v57  ;;  %v327_v4 = vmul.f32 %v1472_v6, %v256_v36  ;;  %v358_v10 = vmul.f32 %v1472_v6, %v287_v58 }
  0x44   : > { %v491_v7 = vmax.f32 %v427_v62, 0.0  ;;  %v397_v8 = vadd.f32 %v1479_v9, %v326_v63  ;;  %v359_v11 = vmul.f32 %v1472_v6, %v288_v59  ;;  %v328_v15 = vmul.f32 %v1472_v6, %v257_v0 }
  0x45   : > { %v510_v12 = vpack.c.bf16 %v460_v2, %v459_v61  ;;  %v492_v13 = vmax.f32 %v428_v3, 0.0  ;;  %v398_v14 = vadd.f32 %v1479_v9, %v327_v4  ;;  %v429_v18 = vadd.f32 %v1479_v9, %v358_v10 }
  0x46   : > { %1312 = vmatmul.mubr.bf16.gmra.mrb[12].mxu0 %v1606_v42  ;;  %1344 = vmatmul.mubr.bf16.gmra.mrb[12].mxu1 %v520_v16  ;;  %v289_v42 = vld [vmem:[%s1462_s30 + $0x1f0] sm:$0xff]  ;;  %v290_v16 = vld [vmem:[%s1462_s30 + $0x1f8] sm:$0xff]  ;;  %v461_v17 = vmax.f32 %v397_v8, 0.0  ;;  %v430_v19 = vadd.f32 %v1479_v9, %v359_v11  ;;  %v329_v20 = vmul.f32 %v1472_v6, %v258_v5  ;;  %v399_v24 = vadd.f32 %v1479_v9, %v328_v15 }
  0x47   : > { %1315 = vmatprep.mubr.bf16.mxu0 %v505_v22  ;;  %1347 = vmatprep.mubr.bf16.mxu1 %v521_v27  ;;  %v526_v21 = vpack.c.bf16 %v492_v13, %v491_v7  ;;  %v462_v22 = vmax.f32 %v398_v14, 0.0  ;;  %v360_v25 = vmul.f32 %v1472_v6, %v289_v42  ;;  %v493_v26 = vmax.f32 %v429_v18, 0.0 }
  0x48   : > { %v494_v27 = vmax.f32 %v430_v19, 0.0  ;;  %v400_v28 = vadd.f32 %v1479_v9, %v329_v20  ;;  %v361_v29 = vmul.f32 %v1472_v6, %v290_v16  ;;  %v456_v31 = vmax.f32 %v1659_v40, 0.0 }
  0x49   : > { %v511_v32 = vpack.c.bf16 %v462_v22, %v461_v17  ;;  %v463_v30 = vmax.f32 %v399_v24, 0.0  ;;  %v431_v35 = vadd.f32 %v1479_v9, %v360_v25  ;;  %v487_v39 = vmax.f32 %v1666_v47, 0.0 }
  0x4a   : > { %v527_v37 = vpack.c.bf16 %v494_v27, %v493_v26  ;;  %v464_v43 = vmax.f32 %v400_v28, 0.0  ;;  %v432_v44 = vadd.f32 %v1479_v9, %v361_v29  ;;  %v488_v45 = vmax.f32 %v1672_v52, 0.0 }
  0x4b   : > { %v457_v6 = vmax.f32 %v1678_v55, 0.0  ;;  %v458_v40 = vmax.f32 %v1681_v41, 0.0  ;;  %v495_v48 = vmax.f32 %v431_v35, 0.0  ;;  %v489_v49 = vmax.f32 %v425_v60, 0.0 }
  0x4c   : > { %v490_v47 = vmax.f32 %v426_v1, 0.0  ;;  %v512_v50 = vpack.c.bf16 %v464_v43, %v463_v30  ;;  %v496_v53 = vmax.f32 %v432_v44, 0.0 }
  0x4d   : > { %v509_v54 = vpack.c.bf16 %v458_v40, %v457_v6 }
  0x4e   : > { %1316 = vmatmul.mubr.bf16.gmra.mrb[16].mxu0 %v1649_v33  ;;  %1348 = vmatmul.mubr.bf16.gmra.mrb[16].mxu1 %v1651_v34  ;;  %v528_v9 = vpack.c.bf16 %v496_v53, %v495_v48  ;;  %v508_v33 = vpack.c.bf16 %v456_v31, %v455_v46  ;;  %v524_v34 = vpack.c.bf16 %v488_v45, %v487_v39 }
  0x4f   : > { %1319 = vmatprep.mubr.bf16.mxu0 %v1656_v38  ;;  %1351 = vmatprep.mubr.bf16.mxu1 %v523_v51  ;;  %v525_v52 = vpack.c.bf16 %v490_v47, %v489_v49 }
  0x56   : > { %1320 = vmatmul.mubr.bf16.gmra.mrb[20].mxu0 %v508_v33  ;;  %1352 = vmatmul.mubr.bf16.gmra.mrb[20].mxu1 %v524_v34 }
  0x57   : > { %1323 = vmatprep.mubr.bf16.mxu0 %v509_v54  ;;  %1355 = vmatprep.mubr.bf16.mxu1 %v525_v52 }
  0x5e   : > { %1324 = vmatmul.mubr.bf16.gmra.mrb[24].mxu0 %v510_v12  ;;  %1356 = vmatmul.mubr.bf16.gmra.mrb[24].mxu1 %v526_v21 }
  0x5f   : > { %1327 = vmatprep.mubr.bf16.mxu0 %v511_v32  ;;  %1359 = vmatprep.mubr.bf16.mxu1 %v527_v37 }
  0x66   : > { %1328 = vmatmul.mubr.bf16.gmra.mrb[28].mxu0 %v512_v50  ;;  %1360 = vmatmul.mubr.bf16.gmra.mrb[28].mxu1 %v528_v9 }
 0x101   : > { %v1729_v23 = vpop.f32.mrb[0].mxu0  ;;  %v1731_v38 = vpop.f32.mrb[0].mxu1 }
 0x102   : > { %884 = vst [vmem:[%s1727_s25 + $0x10] sm:$0xff] %v1729_v23  ;;  %916 = vst [vmem:[%s1727_s25 + $0x110] sm:$0xff] %v1731_v38  ;;  %v1737_v46 = vpop.f32.mrb[1].mxu0  ;;  %v1739_v51 = vpop.f32.mrb[1].mxu1 }
 0x103   : > { %882 = vst [vmem:[%s1727_s25] sm:$0xff] %v1737_v46  ;;  %914 = vst [vmem:[%s1727_s25 + $0x100] sm:$0xff] %v1739_v51  ;;  %v1745_v36 = vpop.f32.mrb[2].mxu0  ;;  %v1747_v55 = vpop.f32.mrb[2].mxu1 }
 0x104   : > { %885 = vst [vmem:[%s1727_s25 + $0x18] sm:$0xff] %v1745_v36  ;;  %917 = vst [vmem:[%s1727_s25 + $0x118] sm:$0xff] %v1747_v55  ;;  %v1753_v41 = vpop.f32.mrb[3].mxu0  ;;  %v1755_v56 = vpop.f32.mrb[3].mxu1 }
 0x105   : > { %883 = vst [vmem:[%s1727_s25 + $0x8] sm:$0xff] %v1753_v41  ;;  %915 = vst [vmem:[%s1727_s25 + $0x108] sm:$0xff] %v1755_v56 }
 0x109   : > { %v1761_v57 = vpop.f32.mrb[4].mxu0  ;;  %v1763_v58 = vpop.f32.mrb[4].mxu1 }
 0x10a   : > { %888 = vst [vmem:[%s1727_s25 + $0x30] sm:$0xff] %v1761_v57  ;;  %920 = vst [vmem:[%s1727_s25 + $0x130] sm:$0xff] %v1763_v58  ;;  %v1769_v59 = vpop.f32.mrb[5].mxu0  ;;  %v1771_v60 = vpop.f32.mrb[5].mxu1 }
 0x10b   : > { %886 = vst [vmem:[%s1727_s25 + $0x20] sm:$0xff] %v1769_v59  ;;  %918 = vst [vmem:[%s1727_s25 + $0x120] sm:$0xff] %v1771_v60  ;;  %v1777_v61 = vpop.f32.mrb[6].mxu0  ;;  %v1779_v62 = vpop.f32.mrb[6].mxu1 }
 0x10c   : > { %889 = vst [vmem:[%s1727_s25 + $0x38] sm:$0xff] %v1777_v61  ;;  %921 = vst [vmem:[%s1727_s25 + $0x138] sm:$0xff] %v1779_v62  ;;  %v1785_v63 = vpop.f32.mrb[7].mxu0  ;;  %v1787_v0 = vpop.f32.mrb[7].mxu1 }
 0x10d   : > { %887 = vst [vmem:[%s1727_s25 + $0x28] sm:$0xff] %v1785_v63  ;;  %919 = vst [vmem:[%s1727_s25 + $0x128] sm:$0xff] %v1787_v0 }
 0x111   : > { %v1793_v1 = vpop.f32.mrb[8].mxu0  ;;  %v1795_v2 = vpop.f32.mrb[8].mxu1 }
 0x112   : > { %892 = vst [vmem:[%s1727_s25 + $0x50] sm:$0xff] %v1793_v1  ;;  %924 = vst [vmem:[%s1727_s25 + $0x150] sm:$0xff] %v1795_v2  ;;  %v1801_v3 = vpop.f32.mrb[9].mxu0  ;;  %v1803_v4 = vpop.f32.mrb[9].mxu1 }
 0x113   : > { %890 = vst [vmem:[%s1727_s25 + $0x40] sm:$0xff] %v1801_v3  ;;  %922 = vst [vmem:[%s1727_s25 + $0x140] sm:$0xff] %v1803_v4  ;;  %v1809_v5 = vpop.f32.mrb[10].mxu0  ;;  %v1811_v7 = vpop.f32.mrb[10].mxu1 }
 0x114   : > { %893 = vst [vmem:[%s1727_s25 + $0x58] sm:$0xff] %v1809_v5  ;;  %925 = vst [vmem:[%s1727_s25 + $0x158] sm:$0xff] %v1811_v7  ;;  %v1817_v8 = vpop.f32.mrb[11].mxu0  ;;  %v1819_v10 = vpop.f32.mrb[11].mxu1 }
 0x115   : > { %891 = vst [vmem:[%s1727_s25 + $0x48] sm:$0xff] %v1817_v8  ;;  %923 = vst [vmem:[%s1727_s25 + $0x148] sm:$0xff] %v1819_v10 }
 0x119   : > { %v1825_v11 = vpop.f32.mrb[12].mxu0  ;;  %v1827_v42 = vpop.f32.mrb[12].mxu1 }
 0x11a   : > { %896 = vst [vmem:[%s1727_s25 + $0x70] sm:$0xff] %v1825_v11  ;;  %928 = vst [vmem:[%s1727_s25 + $0x170] sm:$0xff] %v1827_v42  ;;  %v1833_v12 = vpop.f32.mrb[13].mxu0  ;;  %v1835_v13 = vpop.f32.mrb[13].mxu1 }
 0x11b   : > { %894 = vst [vmem:[%s1727_s25 + $0x60] sm:$0xff] %v1833_v12  ;;  %926 = vst [vmem:[%s1727_s25 + $0x160] sm:$0xff] %v1835_v13  ;;  %v1841_v14 = vpop.f32.mrb[14].mxu0  ;;  %v1843_v15 = vpop.f32.mrb[14].mxu1 }
 0x11c   : > { %897 = vst [vmem:[%s1727_s25 + $0x78] sm:$0xff] %v1841_v14  ;;  %929 = vst [vmem:[%s1727_s25 + $0x178] sm:$0xff] %v1843_v15  ;;  %v1849_v16 = vpop.f32.mrb[15].mxu0  ;;  %v1851_v17 = vpop.f32.mrb[15].mxu1 }
 0x11d   : > { %895 = vst [vmem:[%s1727_s25 + $0x68] sm:$0xff] %v1849_v16  ;;  %927 = vst [vmem:[%s1727_s25 + $0x168] sm:$0xff] %v1851_v17 }
 0x121   : > { %v1857_v18 = vpop.f32.mrb[16].mxu0  ;;  %v1859_v19 = vpop.f32.mrb[16].mxu1 }
 0x122   : > { %900 = vst [vmem:[%s1727_s25 + $0x90] sm:$0xff] %v1857_v18  ;;  %932 = vst [vmem:[%s1727_s25 + $0x190] sm:$0xff] %v1859_v19  ;;  %v1865_v20 = vpop.f32.mrb[17].mxu0  ;;  %v1867_v21 = vpop.f32.mrb[17].mxu1 }
 0x123   : > { %898 = vst [vmem:[%s1727_s25 + $0x80] sm:$0xff] %v1865_v20  ;;  %930 = vst [vmem:[%s1727_s25 + $0x180] sm:$0xff] %v1867_v21  ;;  %v1873_v22 = vpop.f32.mrb[18].mxu0  ;;  %v1875_v24 = vpop.f32.mrb[18].mxu1 }
 0x124   : > { %901 = vst [vmem:[%s1727_s25 + $0x98] sm:$0xff] %v1873_v22  ;;  %933 = vst [vmem:[%s1727_s25 + $0x198] sm:$0xff] %v1875_v24  ;;  %v1881_v25 = vpop.f32.mrb[19].mxu0  ;;  %v1883_v26 = vpop.f32.mrb[19].mxu1 }
 0x125   : > { %899 = vst [vmem:[%s1727_s25 + $0x88] sm:$0xff] %v1881_v25  ;;  %931 = vst [vmem:[%s1727_s25 + $0x188] sm:$0xff] %v1883_v26 }
 0x129   : > { %v1889_v27 = vpop.f32.mrb[20].mxu0  ;;  %v1891_v28 = vpop.f32.mrb[20].mxu1 }
 0x12a   : > { %2227 = vst [vmem:[#allocation2_spill] sm:$0xff] %v1891_v28  ;;  %904 = vst [vmem:[%s1727_s25 + $0xb0] sm:$0xff] %v1889_v27  ;;  %v1897_v29 = vpop.f32.mrb[21].mxu0  ;;  %v1899_v31 = vpop.f32.mrb[21].mxu1 }
 0x12b   : > { %936 = vst [vmem:[%s1727_s25 + $0x1b0] sm:$0xff] %v1891_v28  ;;  %2228 = vst [vmem:[#allocation3_spill] sm:$0xff] %v1899_v31  ;;  %v1905_v32 = vpop.f32.mrb[22].mxu0  ;;  %v1907_v30 = vpop.f32.mrb[22].mxu1 }
 0x12c   : > { %902 = vst [vmem:[%s1727_s25 + $0xa0] sm:$0xff] %v1897_v29  ;;  %934 = vst [vmem:[%s1727_s25 + $0x1a0] sm:$0xff] %v1899_v31  ;;  %v1913_v35 = vpop.f32.mrb[23].mxu0  ;;  %v1915_v39 = vpop.f32.mrb[23].mxu1 }
 0x12d   : > { %2229 = vst [vmem:[#allocation4_spill] sm:$0xff] %v1907_v30  ;;  %905 = vst [vmem:[%s1727_s25 + $0xb8] sm:$0xff] %v1905_v32 }
 0x12e   : > { %937 = vst [vmem:[%s1727_s25 + $0x1b8] sm:$0xff] %v1907_v30  ;;  %2230 = vst [vmem:[#allocation5_spill] sm:$0xff] %v1915_v39 }
 0x12f   : > { %903 = vst [vmem:[%s1727_s25 + $0xa8] sm:$0xff] %v1913_v35  ;;  %935 = vst [vmem:[%s1727_s25 + $0x1a8] sm:$0xff] %v1915_v39 }
 0x131   : > { %v1921_v37 = vpop.f32.mrb[24].mxu0  ;;  %v1923_v43 = vpop.f32.mrb[24].mxu1 }
 0x132   : > { %2231 = vst [vmem:[#allocation6_spill] sm:$0xff] %v1923_v43  ;;  %908 = vst [vmem:[%s1727_s25 + $0xd0] sm:$0xff] %v1921_v37  ;;  %v1929_v44 = vpop.f32.mrb[25].mxu0  ;;  %v1931_v45 = vpop.f32.mrb[25].mxu1 }
 0x133   : > { %940 = vst [vmem:[%s1727_s25 + $0x1d0] sm:$0xff] %v1923_v43  ;;  %2232 = vst [vmem:[#allocation7_spill] sm:$0xff] %v1931_v45  ;;  %v1937_v6 = vpop.f32.mrb[26].mxu0  ;;  %v1939_v40 = vpop.f32.mrb[26].mxu1 }
 0x134   : > { %906 = vst [vmem:[%s1727_s25 + $0xc0] sm:$0xff] %v1929_v44  ;;  %938 = vst [vmem:[%s1727_s25 + $0x1c0] sm:$0xff] %v1931_v45  ;;  %v1945_v48 = vpop.f32.mrb[27].mxu0  ;;  %v1947_v49 = vpop.f32.mrb[27].mxu1 }
 0x135   : > { %2233 = vst [vmem:[#allocation8_spill] sm:$0xff] %v1939_v40  ;;  %909 = vst [vmem:[%s1727_s25 + $0xd8] sm:$0xff] %v1937_v6 }
 0x136   : > { %941 = vst [vmem:[%s1727_s25 + $0x1d8] sm:$0xff] %v1939_v40  ;;  %2234 = vst [vmem:[#allocation9_spill] sm:$0xff] %v1947_v49 }
 0x137   : > { %907 = vst [vmem:[%s1727_s25 + $0xc8] sm:$0xff] %v1945_v48  ;;  %939 = vst [vmem:[%s1727_s25 + $0x1c8] sm:$0xff] %v1947_v49 }
 0x139   : > { %v1953_v47 = vpop.f32.mrb[28].mxu0  ;;  %v1955_v50 = vpop.f32.mrb[28].mxu1  ;;  %949 = sbr.rel (%p1240_p4) target bundleno = 321 (0x141), region = 40 }
 0x13a   : > { %2235 = vst [vmem:[#allocation10_spill] sm:$0xff] %v1955_v50  ;;  %912 = vst [vmem:[%s1727_s25 + $0xf0] sm:$0xff] %v1953_v47  ;;  %v1961_v53 = vpop.f32.mrb[29].mxu0  ;;  %v1963_v9 = vpop.f32.mrb[29].mxu1 }
 0x13b   : > { %944 = vst [vmem:[%s1727_s25 + $0x1f0] sm:$0xff] %v1955_v50  ;;  %2236 = vst [vmem:[#allocation11_spill] sm:$0xff] %v1963_v9  ;;  %v1969_v33 = vpop.f32.mrb[30].mxu0  ;;  %v1971_v34 = vpop.f32.mrb[30].mxu1  ;;  %v1404_v50 = vmov (!%p1240_p4), 0.0  }
 0x13c   : > { %910 = vst [vmem:[%s1727_s25 + $0xe0] sm:$0xff] %v1961_v53  ;;  %942 = vst [vmem:[%s1727_s25 + $0x1e0] sm:$0xff] %v1963_v9  ;;  %v1977_v54 = vpop.f32.mrb[31].mxu0  ;;  %v1979_v52 = vpop.f32.mrb[31].mxu1 }
 0x13d   : > { %2237 = vst [vmem:[#allocation12_spill] sm:$0xff] %v1971_v34  ;;  %913 = vst [vmem:[%s1727_s25 + $0xf8] sm:$0xff] %v1969_v33 }
 0x13e   : > { %945 = vst [vmem:[%s1727_s25 + $0x1f8] sm:$0xff] %v1971_v34  ;;  %2238 = vst [vmem:[#allocation13_spill] sm:$0xff] %v1979_v52 }
 0x13f   : > { %911 = vst [vmem:[%s1727_s25 + $0xe8] sm:$0xff] %v1977_v54  ;;  %943 = vst [vmem:[%s1727_s25 + $0x1e8] sm:$0xff] %v1979_v52 }
 0x140   : > { %950 = vst [vmem:[%s2202_s5] sm:$0x3] %v1404_v50 }
 0x141 PF: > { %v952_v34 = vadd.f32 %v1753_v41, %v1737_v46  ;;  %v1024_v50 = vmul.f32 %v1737_v46, %v1737_v46  ;;  %v1025_v28 = vmul.f32 %v1753_v41, %v1753_v41  ;;  %v1029_v41 = vmul.f32 %v1785_v63, %v1785_v63 }
 0x143   : > { %v953_v9 = vadd.f32 %v1729_v23, %v952_v34 }
 0x145   : > { %v954_v40 = vadd.f32 %v1745_v36, %v953_v9  ;;  %v1026_v9 = vmul.f32 %v1729_v23, %v1729_v23 }
 0x147   : > { %v955_v43 = vadd.f32 %v954_v40, %v1769_v59 }
 0x149   : > { %v956_v52 = vadd.f32 %v955_v43, %v1785_v63  ;;  %v1027_v43 = vmul.f32 %v1745_v36, %v1745_v36 }
 0x14b   : > { %v957_v49 = vadd.f32 %v1761_v57, %v956_v52  ;;  %v1088_v52 = vadd.f32 %v1025_v28, %v1024_v50  ;;  %v1031_v28 = vmul.f32 %v1777_v61, %v1777_v61 }
 0x14d   : > { %v958_v45 = vadd.f32 %v1777_v61, %v957_v49  ;;  %v1089_v46 = vadd.f32 %v1088_v52, %v1026_v9  ;;  %v1032_v9 = vmul.f32 %v1801_v3, %v1801_v3  ;;  %v1034_v52 = vmul.f32 %v1793_v1, %v1793_v1 }
 0x14f   : > { %v959_v30 = vadd.f32 %v958_v45, %v1801_v3  ;;  %v1028_v45 = vmul.f32 %v1769_v59, %v1769_v59 }
 0x151   : > { %v960_v34 = vadd.f32 %v959_v30, %v1817_v8  ;;  %v1090_v30 = vadd.f32 %v1089_v46, %v1027_v43  ;;  %v1036_v46 = vmul.f32 %v1833_v12, %v1833_v12 }
 0x153   : > { %v961_v40 = vadd.f32 %v1793_v1, %v960_v34  ;;  %v1030_v34 = vmul.f32 %v1761_v57, %v1761_v57  ;;  %v1091_v31 = vadd.f32 %v1090_v30, %v1028_v45  ;;  %v1037_v30 = vmul.f32 %v1849_v16, %v1849_v16 }
 0x155   : > { %v962_v49 = vadd.f32 %v1809_v5, %v961_v40  ;;  %v1092_v50 = vadd.f32 %v1091_v31, %v1029_v41  ;;  %v1035_v31 = vmul.f32 %v1809_v5, %v1809_v5 }
 0x157   : > { %v963_v39 = vadd.f32 %v962_v49, %v1833_v12  ;;  %v1093_v40 = vadd.f32 %v1092_v50, %v1030_v34  ;;  %v1038_v34 = vmul.f32 %v1825_v11, %v1825_v11 }
 0x159   : > { %v964_v23 = vadd.f32 %v963_v39, %v1849_v16  ;;  %v1033_v39 = vmul.f32 %v1817_v8, %v1817_v8  ;;  %v1094_v43 = vadd.f32 %v1093_v40, %v1031_v28  ;;  %v1039_v28 = vmul.f32 %v1841_v14, %v1841_v14 }
 0x15a   : > { %v1041_v40 = vmul.f32 %v1881_v25, %v1881_v25 }
 0x15b   : > { %v965_v36 = vadd.f32 %v1825_v11, %v964_v23  ;;  %v1095_v49 = vadd.f32 %v1094_v43, %v1032_v9 }
 0x15d   : > { %v966_v59 = vadd.f32 %v1841_v14, %v965_v36  ;;  %v1096_v45 = vadd.f32 %v1095_v49, %v1033_v39  ;;  %v1042_v39 = vmul.f32 %v1857_v18, %v1857_v18  ;;  %v1044_v49 = vmul.f32 %v1897_v29, %v1897_v29 }
 0x15f   : > { %v967_v63 = vadd.f32 %v966_v59, %v1865_v20  ;;  %v1097_v41 = vadd.f32 %v1096_v45, %v1034_v52  ;;  %v1040_v59 = vmul.f32 %v1865_v20, %v1865_v20 }
 0x161   : > { %v968_v57 = vadd.f32 %v967_v63, %v1881_v25  ;;  %v1098_v23 = vadd.f32 %v1097_v41, %v1035_v31  ;;  %v1045_v31 = vmul.f32 %v1913_v35, %v1913_v35  ;;  %v1047_v41 = vmul.f32 %v1905_v32, %v1905_v32 }
 0x163   : > { %v969_v61 = vadd.f32 %v1857_v18, %v968_v57  ;;  %v1099_v36 = vadd.f32 %v1098_v23, %v1036_v46  ;;  %v1043_v57 = vmul.f32 %v1873_v22, %v1873_v22 }
 0x165   : > { %v970_v3 = vadd.f32 %v1873_v22, %v969_v61  ;;  %v1100_v50 = vadd.f32 %v1099_v36, %v1037_v30  ;;  %v1048_v30 = vmul.f32 %v1929_v44, %v1929_v44  ;;  %v1050_v36 = vmul.f32 %v1921_v37, %v1921_v37 }
 0x167   : > { %v971_v8 = vadd.f32 %v970_v3, %v1897_v29  ;;  %v1101_v9 = vadd.f32 %v1100_v50, %v1038_v34  ;;  %v1046_v3 = vmul.f32 %v1889_v27, %v1889_v27 }
 0x169   : > { %v972_v1 = vadd.f32 %v971_v8, %v1913_v35  ;;  %v1102_v63 = vadd.f32 %v1101_v9, %v1039_v28  ;;  %v1051_v28 = vmul.f32 %v1937_v6, %v1937_v6  ;;  %v1053_v9 = vmul.f32 %v1977_v54, %v1977_v54 }
 0x16b   : > { %v973_v5 = vadd.f32 %v1889_v27, %v972_v1  ;;  %v1103_v43 = vadd.f32 %v1102_v63, %v1040_v59  ;;  %v1049_v1 = vmul.f32 %v1945_v48, %v1945_v48 }
 0x16d   : > { %v974_v12 = vadd.f32 %v1905_v32, %v973_v5  ;;  %v1104_v52 = vadd.f32 %v1103_v43, %v1041_v40  ;;  %v1054_v40 = vmul.f32 %v1953_v47, %v1953_v47  ;;  %v1056_v43 = vmul.f32 %v1739_v51, %v1739_v51 }
 0x16f   : > { %v975_v16 = vadd.f32 %v974_v12, %v1929_v44  ;;  %v1105_v61 = vadd.f32 %v1104_v52, %v1042_v39  ;;  %v1052_v12 = vmul.f32 %v1961_v53, %v1961_v53 }
 0x171   : > { %v976_v11 = vadd.f32 %v975_v16, %v1945_v48  ;;  %v1106_v45 = vadd.f32 %v1105_v61, %v1043_v57  ;;  %v1057_v57 = vmul.f32 %v1755_v56, %v1755_v56  ;;  %v1059_v61 = vmul.f32 %v1747_v55, %v1747_v55 }
 0x173   : > { %v977_v14 = vadd.f32 %v1921_v37, %v976_v11  ;;  %v1107_v46 = vadd.f32 %v1106_v45, %v1044_v49  ;;  %v1055_v11 = vmul.f32 %v1969_v33, %v1969_v33 }
 0x175   : > { %v978_v20 = vadd.f32 %v1937_v6, %v977_v14  ;;  %v1108_v8 = vadd.f32 %v1107_v46, %v1045_v31  ;;  %v1060_v31 = vmul.f32 %v1771_v60, %v1771_v60  ;;  %v1062_v46 = vmul.f32 %v1763_v58, %v1763_v58 }
 0x177   : > { %v979_v25 = vadd.f32 %v978_v20, %v1961_v53  ;;  %v1109_v23 = vadd.f32 %v1108_v8, %v1046_v3  ;;  %v1058_v20 = vmul.f32 %v1731_v38, %v1731_v38 }
 0x179   : > { %v980_v18 = vadd.f32 %v979_v25, %v1977_v54  ;;  %v1110_v34 = vadd.f32 %v1109_v23, %v1047_v41  ;;  %v1063_v41 = vmul.f32 %v1779_v62, %v1779_v62  ;;  %v1065_v23 = vmul.f32 %v1819_v10, %v1819_v10 }
 0x17b   : > { %v981_v22 = vadd.f32 %v1953_v47, %v980_v18  ;;  %v1111_v5 = vadd.f32 %v1110_v34, %v1048_v30  ;;  %v1061_v18 = vmul.f32 %v1787_v0, %v1787_v0 }
 0x17d   : > { %v982_v29 = vadd.f32 %v1969_v33, %v981_v22  ;;  %v1112_v50 = vadd.f32 %v1111_v5, %v1049_v1  ;;  %v1066_v1 = vmul.f32 %v1795_v2, %v1795_v2  ;;  %v1068_v5 = vmul.f32 %v1835_v13, %v1835_v13 }
 0x17f   : > { %v983_v35 = vadd.f32 %v982_v29, %v1739_v51  ;;  %v1113_v59 = vadd.f32 %v1112_v50, %v1050_v36  ;;  %v1064_v29 = vmul.f32 %v1803_v4, %v1803_v4  ;;  %v1069_v50 = vmul.f32 %v1851_v17, %v1851_v17 }
 0x181   : > { %v984_v27 = vadd.f32 %v983_v35, %v1755_v56  ;;  %v1114_v16 = vadd.f32 %v1113_v59, %v1051_v28  ;;  %v1070_v59 = vmul.f32 %v1827_v42, %v1827_v42 }
 0x183   : > { %v985_v32 = vadd.f32 %v1731_v38, %v984_v27  ;;  %v1115_v63 = vadd.f32 %v1114_v16, %v1052_v12  ;;  %v1067_v27 = vmul.f32 %v1811_v7, %v1811_v7  ;;  %v1071_v16 = vmul.f32 %v1843_v15, %v1843_v15 }
 0x185   : > { %v986_v44 = vadd.f32 %v1747_v55, %v985_v32  ;;  %v1116_v39 = vadd.f32 %v1115_v63, %v1053_v9  ;;  %v1072_v63 = vmul.f32 %v1867_v21, %v1867_v21 }
 0x187   : > { %v987_v48 = vadd.f32 %v986_v44, %v1771_v60  ;;  %v1117_v14 = vadd.f32 %v1116_v39, %v1054_v40  ;;  %v1073_v39 = vmul.f32 %v1883_v26, %v1883_v26 }
 0x189   : > { %v988_v37 = vadd.f32 %v987_v48, %v1787_v0  ;;  %v1118_v52 = vadd.f32 %v1117_v14, %v1055_v11  ;;  %v1074_v14 = vmul.f32 %v1859_v19, %v1859_v19 }
 0x18b   : > { %v989_v6 = vadd.f32 %v1763_v58, %v988_v37  ;;  %v1119_v49 = vadd.f32 %v1118_v52, %v1056_v43  ;;  %v1075_v52 = vmul.f32 %v1875_v24, %v1875_v24 }
 0x18d   : > { %v990_v53 = vadd.f32 %v1779_v62, %v989_v6  ;;  %v1120_v25 = vadd.f32 %v1119_v49, %v1057_v57 }
 0x18f   : > { %v991_v54 = vadd.f32 %v990_v53, %v1803_v4  ;;  %v1121_v45 = vadd.f32 %v1120_v25, %v1058_v20 }
 0x191   : > { %v992_v47 = vadd.f32 %v991_v54, %v1819_v10  ;;  %v1122_v3 = vadd.f32 %v1121_v45, %v1059_v61  ;;  %v2239_v10 = vld [vmem:[#allocation3_spill] sm:$0xff] }
 0x192   : > { %v1076_v49 = vmul.f32 %v2239_v10, %v2239_v10 }
 0x193   : > { %v993_v33 = vadd.f32 %v1795_v2, %v992_v47  ;;  %v1123_v22 = vadd.f32 %v1122_v3, %v1060_v31  ;;  %v2240_v2 = vld [vmem:[#allocation5_spill] sm:$0xff] }
 0x194   : > { %v1077_v25 = vmul.f32 %v2240_v2, %v2240_v2 }
 0x195   : > { %v994_v51 = vadd.f32 %v1811_v7, %v993_v33  ;;  %v1124_v8 = vadd.f32 %v1123_v22, %v1061_v18  ;;  %v2241_v7 = vld [vmem:[#allocation2_spill] sm:$0xff] }
 0x196   : > { %v1078_v45 = vmul.f32 %v2241_v7, %v2241_v7 }
 0x197   : > { %v995_v56 = vadd.f32 %v994_v51, %v1835_v13  ;;  %v1125_v30 = vadd.f32 %v1124_v8, %v1062_v46  ;;  %v2242_v13 = vld [vmem:[#allocation4_spill] sm:$0xff] }
 0x198   : > { %v1079_v3 = vmul.f32 %v2242_v13, %v2242_v13  ;;  %v2250_v46 = vld [vmem:[#allocation12_spill] sm:$0xff] }
 0x199   : > { %v996_v38 = vadd.f32 %v995_v56, %v1851_v17  ;;  %v1126_v35 = vadd.f32 %v1125_v30, %v1063_v41  ;;  %v2243_v17 = vld [vmem:[#allocation7_spill] sm:$0xff] }
 0x19b   : > { %v997_v55 = vadd.f32 %v1827_v42, %v996_v38  ;;  %v1127_v34 = vadd.f32 %v1126_v35, %v1064_v29  ;;  %v2244_v42 = vld [vmem:[#allocation9_spill] sm:$0xff] }
 0x19d   : > { %v998_v60 = vadd.f32 %v1843_v15, %v997_v55  ;;  %v1128_v36 = vadd.f32 %v1127_v34, %v1065_v23  ;;  %v2245_v15 = vld [vmem:[#allocation6_spill] sm:$0xff]  ;;  %v1080_v55 = vmul.f32 %v2243_v17, %v2243_v17 }
 0x19f   : > { %v999_v0 = vadd.f32 %v998_v60, %v1867_v21  ;;  %v1129_v32 = vadd.f32 %v1128_v36, %v1066_v1  ;;  %v2246_v21 = vld [vmem:[#allocation8_spill] sm:$0xff]  ;;  %v1081_v60 = vmul.f32 %v2244_v42, %v2244_v42 }
 0x1a1   : > { %v1000_v58 = vadd.f32 %v999_v0, %v1883_v26  ;;  %v1130_v44 = vadd.f32 %v1129_v32, %v1067_v27  ;;  %v2247_v26 = vld [vmem:[#allocation11_spill] sm:$0xff]  ;;  %v1082_v0 = vmul.f32 %v2245_v15, %v2245_v15  ;;  %v951_v32 = vld [vmem:[%s2202_s5] sm:$0x1] }
 0x1a3   : > { %v1001_v62 = vadd.f32 %v1859_v19, %v1000_v58  ;;  %v1131_v48 = vadd.f32 %v1130_v44, %v1068_v5  ;;  %v2248_v19 = vld [vmem:[#allocation13_spill] sm:$0xff]  ;;  %v1083_v58 = vmul.f32 %v2246_v21, %v2246_v21 }
 0x1a5   : > { %v1002_v4 = vadd.f32 %v1875_v24, %v1001_v62  ;;  %v1132_v37 = vadd.f32 %v1131_v48, %v1069_v50  ;;  %v2249_v24 = vld [vmem:[#allocation10_spill] sm:$0xff]  ;;  %v1084_v62 = vmul.f32 %v2247_v26, %v2247_v26 }
 0x1a7   : > { %v1003_v28 = vadd.f32 %v1002_v4, %v2239_v10  ;;  %v1133_v6 = vadd.f32 %v1132_v37, %v1070_v59  ;;  %v1085_v4 = vmul.f32 %v2248_v19, %v2248_v19 }
 0x1a9   : > { %v1004_v12 = vadd.f32 %v1003_v28, %v2240_v2  ;;  %v1134_v53 = vadd.f32 %v1133_v6, %v1071_v16  ;;  %v1086_v28 = vmul.f32 %v2249_v24, %v2249_v24  ;;  %v1087_v2 = vmul.f32 %v2250_v46, %v2250_v46 }
 0x1ab   : > { %v1005_v9 = vadd.f32 %v2241_v7, %v1004_v12  ;;  %v1135_v54 = vadd.f32 %v1134_v53, %v1072_v63 }
 0x1ad   : > { %v1006_v40 = vadd.f32 %v2242_v13, %v1005_v9  ;;  %v1136_v47 = vadd.f32 %v1135_v54, %v1073_v39 }
 0x1af   : > { %v1007_v11 = vadd.f32 %v1006_v40, %v2243_v17  ;;  %v1137_v33 = vadd.f32 %v1136_v47, %v1074_v14  ;;  %v1023_v40 = vld [vmem:[%s2202_s5 + $0x1] sm:$0x1] }
 0x1b1   : > { %v1008_v43 = vadd.f32 %v1007_v11, %v2244_v42  ;;  %v1138_v51 = vadd.f32 %v1137_v33, %v1075_v52 }
 0x1b3   : > { %v1009_v57 = vadd.f32 %v2245_v15, %v1008_v43  ;;  %v1139_v56 = vadd.f32 %v1138_v51, %v1076_v49 }
 0x1b5   : > { %v1010_v20 = vadd.f32 %v2246_v21, %v1009_v57  ;;  %v1140_v38 = vadd.f32 %v1139_v56, %v1077_v25 }
 0x1b7   : > { %v1011_v61 = vadd.f32 %v1010_v20, %v2247_v26  ;;  %v1141_v41 = vadd.f32 %v1140_v38, %v1078_v45 }
 0x1b9   : > { %v1012_v31 = vadd.f32 %v1011_v61, %v2248_v19  ;;  %v1142_v29 = vadd.f32 %v1141_v41, %v1079_v3 }
 0x1bb   : > { %v1013_v18 = vadd.f32 %v2249_v24, %v1012_v31  ;;  %v1143_v23 = vadd.f32 %v1142_v29, %v1080_v55 }
 0x1bd   : > { %v1014_v22 = vadd.f32 %v2250_v46, %v1013_v18  ;;  %v1144_v1 = vadd.f32 %v1143_v23, %v1081_v60 }
 0x1bf   : > { %v1015_v8 = vrot.slane %v1014_v22, 4  ;;  %v1145_v27 = vadd.f32 %v1144_v1, %v1082_v0 }
 0x1c1   : > { %v1016_v30 = vadd.f32 %v1015_v8, %v1014_v22  ;;  %v1146_v5 = vadd.f32 %v1145_v27, %v1083_v58 }
 0x1c3   : > { %v1017_v35 = vrot.slane %v1016_v30, 2  ;;  %v1147_v50 = vadd.f32 %v1146_v5, %v1084_v62 }
 0x1c5   : > { %v1018_v34 = vadd.f32 %v1017_v35, %v1016_v30  ;;  %v1148_v12 = vadd.f32 %v1147_v50, %v1085_v4 }
 0x1c7   : > { %v1019_v36 = vrot.slane %v1018_v34, 1  ;;  %v1149_v59 = vadd.f32 %v1148_v12, %v1086_v28 }
 0x1c9   : > { %v1020_v10 = vadd.f32 %v1019_v36, %v1018_v34  ;;  %v1150_v48 = vadd.f32 %v1149_v59, %v1087_v2 }
 0x1cb   : > { %v1021_v44 = vadd.f32 %v1020_v10, %v951_v32  ;;  %v1151_v7 = vrot.slane %v1150_v48, 4 }
 0x1cd   : > { %1022 = vst [vmem:[%s2202_s5] sm:$0x1] %v1021_v44  ;;  %v1152_v9 = vadd.f32 %v1151_v7, %v1150_v48 }
 0x1cf   : > { %v1153_v16 = vrot.slane %v1152_v9, 2 }
 0x1d1   : > { %v1154_v37 = vadd.f32 %v1153_v16, %v1152_v9 }
 0x1d3   : > { %v1155_v13 = vrot.slane %v1154_v37, 1 }
 0x1d5   : > { %v1156_v63 = vadd.f32 %v1155_v13, %v1154_v37 }
 0x1d7   : > { %v1157_v6 = vadd.f32 %v1156_v63, %v1023_v40 }
 0x1d9   : > { %1158 = vst [vmem:[%s2202_s5 + $0x1] sm:$0x1] %v1157_v6 }
 0x1da PF: > { %s16_s18 = sadd.s32 1, %s1402_s18  }
 0x1db   : > { %p13_p5 = scmp.ge.s32.totalorder %s16_s18, 4  }
 0x1dd   :  { %15 = sbr.rel (!%p13_p5) target bundleno = 1 (0x1), region = 78 }

// kernel: block_forward.7
= control target key start
LH: loop header
LB: loop body
LE: loop exit
PB: predicated region body
PF: predicated region fallthrough
CT: control target
= control target key end

     0   :  { %s809_s15 = smov 0   ;;  %s1170_s0 = inlined_call_operand.vmem [shape: f32[1024,128], index: 0, kind: input, shape index: {}]   ;;  %s1171_s1 = inlined_call_operand.vmem [shape: f32[1,128], index: 1, kind: input, shape index: {}]   ;;  %s1172_s2 = inlined_call_operand.vmem [shape: f32[1,128], index: 2, kind: input, shape index: {}]   ;;  %s1173_s3 = inlined_call_operand.vmem [shape: f32[1024,128], index: 3, kind: input, shape index: {}]   ;;  %s1174_s4 = inlined_call_operand.vmem [shape: f32[1024,128], index: 4, kind: output, shape index: {}]  }
   0x1 LB: > { %s753_s16 = sadd.s32 4294967295, %s782_s15   ;;  %p757_p0 = scmp.ge.s32.totalorder %s782_s15, 1  ;;  %s782_s15 = sphi %s809_s15, %s14_s15  }
   0x2   : > { %p174_p1 = scmp.lt.s32.totalorder %s782_s15, 3 }
   0x4   : > { %p175_p2 = pnand %p757_p0, %p174_p1 }
   0x5   : > { %s758_s17 = sshll.u32 (!%p175_p2), %s753_s16, 6  ;;  %v822_v0 = vld [vmem:[%s1171_s1] ss:$0 sm:$0xff] (!%p175_p2) }
   0x6   : > { %178 = sbr.rel (%p175_p2) target bundleno = 87 (0x57), region = 36  ;;  %p206_p3 = scmp.lt.s32.totalorder (!%p175_p2), %s758_s17, 127  ;;  %v840_v2 = vld [vmem:[%s1172_s2] ss:$0 sm:$0xff] (!%p175_p2) }
   0xd   : > { %s1176_s17 = smov (!%p206_p3, %s758_s17), 127 }
   0xe   : > { %s817_s18 = sshll.u32 %s1176_s17, 3 }
   0xf   : > { %s828_s23 = scalar_lea.vmem %s1170_s0, %s817_s18  ;;  %s834_s26 = scalar_lea.vmem %s1173_s3, %s817_s18 }
  0x10   : > { %v223_v1 = vld [vmem:[%s828_s23] sm:$0xff]  ;;  %v224_v3 = vld [vmem:[%s828_s23 + $0x8] sm:$0xff]  ;;  %v225_v7 = vld [vmem:[%s828_s23 + $0x10] sm:$0xff]  ;;  %s870_s5 = scalar_lea.vmem %s1174_s4, %s817_s18 }
  0x11   : > { %v294_v4 = vmul.f32 %v822_v0, %v223_v1  ;;  %v429_v5 = vld [vmem:[%s834_s26] sm:$0xff]  ;;  %v295_v6 = vmul.f32 %v822_v0, %v224_v3  ;;  %v430_v8 = vld [vmem:[%s834_s26 + $0x8] sm:$0xff]  ;;  %v296_v9 = vmul.f32 %v822_v0, %v225_v7  ;;  %v226_v10 = vld [vmem:[%s828_s23 + $0x18] sm:$0xff] }
  0x12   : > { %v227_v11 = vld [vmem:[%s828_s23 + $0x20] sm:$0xff]  ;;  %v431_v14 = vld [vmem:[%s834_s26 + $0x10] sm:$0xff]  ;;  %v297_v15 = vmul.f32 %v822_v0, %v226_v10  ;;  %v432_v16 = vld [vmem:[%s834_s26 + $0x18] sm:$0xff] }
  0x13   : > { %v365_v12 = vadd.f32 %v840_v2, %v294_v4  ;;  %v366_v13 = vadd.f32 %v840_v2, %v295_v6  ;;  %v298_v17 = vmul.f32 %v822_v0, %v227_v11  ;;  %v228_v18 = vld [vmem:[%s828_s23 + $0x28] sm:$0xff]  ;;  %v367_v19 = vadd.f32 %v840_v2, %v296_v9  ;;  %v433_v20 = vld [vmem:[%s834_s26 + $0x20] sm:$0xff]  ;;  %v229_v22 = vld [vmem:[%s828_s23 + $0x30] sm:$0xff] }
  0x14   : > { %v299_v21 = vmul.f32 %v822_v0, %v228_v18  ;;  %v230_v23 = vld [vmem:[%s828_s23 + $0x38] sm:$0xff]  ;;  %v368_v26 = vadd.f32 %v840_v2, %v297_v15  ;;  %v434_v28 = vld [vmem:[%s834_s26 + $0x28] sm:$0xff]  ;;  %v300_v31 = vmul.f32 %v822_v0, %v229_v22  ;;  %v231_v33 = vld [vmem:[%s828_s23 + $0x40] sm:$0xff] }
  0x15   : > { %v493_v24 = vadd.f32 %v429_v5, %v365_v12  ;;  %v494_v25 = vadd.f32 %v430_v8, %v366_v13  ;;  %v369_v27 = vadd.f32 %v840_v2, %v298_v17  ;;  %v495_v29 = vadd.f32 %v431_v14, %v367_v19  ;;  %v232_v34 = vld [vmem:[%s828_s23 + $0x48] sm:$0xff]  ;;  %v435_v39 = vld [vmem:[%s834_s26 + $0x30] sm:$0xff]  ;;  %v436_v40 = vld [vmem:[%s834_s26 + $0x38] sm:$0xff] }
  0x16   : > { %v370_v30 = vadd.f32 %v840_v2, %v299_v21  ;;  %v301_v32 = vmul.f32 %v822_v0, %v230_v23  ;;  %v496_v37 = vadd.f32 %v432_v16, %v368_v26  ;;  %v233_v41 = vld [vmem:[%s828_s23 + $0x50] sm:$0xff]  ;;  %v371_v44 = vadd.f32 %v840_v2, %v300_v31  ;;  %v234_v46 = vld [vmem:[%s828_s23 + $0x58] sm:$0xff]  ;;  %v235_v47 = vld [vmem:[%s828_s23 + $0x60] sm:$0xff] }
  0x17   : > { %v557_v35 = vmax.f32 %v493_v24, 0.0  ;;  %v558_v36 = vmax.f32 %v494_v25, 0.0  ;;  %v497_v38 = vadd.f32 %v433_v20, %v369_v27  ;;  %v559_v42 = vmax.f32 %v495_v29, 0.0  ;;  %v236_v52 = vld [vmem:[%s828_s23 + $0x68] sm:$0xff]  ;;  %v437_v56 = vld [vmem:[%s834_s26 + $0x40] sm:$0xff]  ;;  %v439_v61 = vld [vmem:[%s834_s26 + $0x50] sm:$0xff] }
  0x18   : > { %v498_v43 = vadd.f32 %v434_v28, %v370_v30  ;;  %v372_v45 = vadd.f32 %v840_v2, %v301_v32  ;;  %v560_v48 = vmax.f32 %v496_v37, 0.0  ;;  %v302_v50 = vmul.f32 %v822_v0, %v231_v33  ;;  %v438_v57 = vld [vmem:[%s834_s26 + $0x48] sm:$0xff]  ;;  %v237_v1 = vld [vmem:[%s828_s23 + $0x70] sm:$0xff]  ;;  %v238_v3 = vld [vmem:[%s828_s23 + $0x78] sm:$0xff] }
  0x19   : > { %621 = vst [vmem:[%s870_s5] sm:$0xff] %v557_v35  ;;  %622 = vst [vmem:[%s870_s5 + $0x8] sm:$0xff] %v558_v36  ;;  %v561_v49 = vmax.f32 %v497_v38, 0.0  ;;  %v303_v51 = vmul.f32 %v822_v0, %v232_v34  ;;  %v499_v54 = vadd.f32 %v435_v39, %v371_v44  ;;  %v304_v58 = vmul.f32 %v822_v0, %v233_v41  ;;  %v440_v7 = vld [vmem:[%s834_s26 + $0x58] sm:$0xff]  ;;  %v441_v8 = vld [vmem:[%s834_s26 + $0x60] sm:$0xff] }
  0x1a   : > { %623 = vst [vmem:[%s870_s5 + $0x10] sm:$0xff] %v559_v42  ;;  %v562_v53 = vmax.f32 %v498_v43, 0.0  ;;  %v500_v55 = vadd.f32 %v436_v40, %v372_v45  ;;  %624 = vst [vmem:[%s870_s5 + $0x18] sm:$0xff] %v560_v48  ;;  %v373_v59 = vadd.f32 %v840_v2, %v302_v50  ;;  %v305_v62 = vmul.f32 %v822_v0, %v234_v46  ;;  %v442_v14 = vld [vmem:[%s834_s26 + $0x68] sm:$0xff]  ;;  %v239_v19 = vld [vmem:[%s828_s23 + $0x80] sm:$0xff] }
  0x1b   : > { %625 = vst [vmem:[%s870_s5 + $0x20] sm:$0xff] %v561_v49  ;;  %v374_v60 = vadd.f32 %v840_v2, %v303_v51  ;;  %v306_v63 = vmul.f32 %v822_v0, %v235_v47  ;;  %v563_v4 = vmax.f32 %v499_v54, 0.0  ;;  %v375_v6 = vadd.f32 %v840_v2, %v304_v58  ;;  %v240_v20 = vld [vmem:[%s828_s23 + $0x88] sm:$0xff]  ;;  %v443_v25 = vld [vmem:[%s834_s26 + $0x70] sm:$0xff]  ;;  %v444_v26 = vld [vmem:[%s834_s26 + $0x78] sm:$0xff] }
  0x1c   : > { %626 = vst [vmem:[%s870_s5 + $0x28] sm:$0xff] %v562_v53  ;;  %v564_v5 = vmax.f32 %v500_v55, 0.0  ;;  %v307_v9 = vmul.f32 %v822_v0, %v236_v52  ;;  %v501_v10 = vadd.f32 %v437_v56, %v373_v59  ;;  %v376_v12 = vadd.f32 %v840_v2, %v305_v62  ;;  %v241_v27 = vld [vmem:[%s828_s23 + $0x90] sm:$0xff]  ;;  %v242_v32 = vld [vmem:[%s828_s23 + $0x98] sm:$0xff]  ;;  %v243_v33 = vld [vmem:[%s828_s23 + $0xa0] sm:$0xff] }
  0x1d   : > { %v502_v11 = vadd.f32 %v438_v57, %v374_v60  ;;  %v377_v13 = vadd.f32 %v840_v2, %v306_v63  ;;  %627 = vst [vmem:[%s870_s5 + $0x30] sm:$0xff] %v563_v4  ;;  %v503_v15 = vadd.f32 %v439_v61, %v375_v6  ;;  %v308_v17 = vmul.f32 %v822_v0, %v237_v1  ;;  %v244_v38 = vld [vmem:[%s828_s23 + $0xa8] sm:$0xff]  ;;  %v445_v42 = vld [vmem:[%s834_s26 + $0x80] sm:$0xff]  ;;  %v447_v47 = vld [vmem:[%s834_s26 + $0x90] sm:$0xff] }
  0x1e   : > { %628 = vst [vmem:[%s870_s5 + $0x38] sm:$0xff] %v564_v5  ;;  %v378_v16 = vadd.f32 %v840_v2, %v307_v9  ;;  %v309_v18 = vmul.f32 %v822_v0, %v238_v3  ;;  %v565_v21 = vmax.f32 %v501_v10, 0.0  ;;  %v504_v23 = vadd.f32 %v440_v7, %v376_v12  ;;  %v446_v43 = vld [vmem:[%s834_s26 + $0x88] sm:$0xff]  ;;  %v245_v50 = vld [vmem:[%s828_s23 + $0xb0] sm:$0xff]  ;;  %v246_v51 = vld [vmem:[%s828_s23 + $0xb8] sm:$0xff] }
  0x1f   : > { %v566_v22 = vmax.f32 %v502_v11, 0.0  ;;  %v505_v24 = vadd.f32 %v441_v8, %v377_v13  ;;  %v567_v28 = vmax.f32 %v503_v15, 0.0  ;;  %v379_v30 = vadd.f32 %v840_v2, %v308_v17  ;;  %v448_v55 = vld [vmem:[%s834_s26 + $0x98] sm:$0xff]  ;;  %v449_v56 = vld [vmem:[%s834_s26 + $0xa0] sm:$0xff]  ;;  %v450_v62 = vld [vmem:[%s834_s26 + $0xa8] sm:$0xff] }
  0x20   : > { %v506_v29 = vadd.f32 %v442_v14, %v378_v16  ;;  %v380_v31 = vadd.f32 %v840_v2, %v309_v18  ;;  %629 = vst [vmem:[%s870_s5 + $0x40] sm:$0xff] %v565_v21  ;;  %v568_v34 = vmax.f32 %v504_v23, 0.0  ;;  %v310_v36 = vmul.f32 %v822_v0, %v239_v19  ;;  %v247_v5 = vld [vmem:[%s828_s23 + $0xc0] sm:$0xff]  ;;  %v248_v6 = vld [vmem:[%s828_s23 + $0xc8] sm:$0xff]  ;;  %v451_v11 = vld [vmem:[%s834_s26 + $0xb0] sm:$0xff] }
  0x21   : > { %630 = vst [vmem:[%s870_s5 + $0x48] sm:$0xff] %v566_v22  ;;  %v569_v35 = vmax.f32 %v505_v24, 0.0  ;;  %v311_v37 = vmul.f32 %v822_v0, %v240_v20  ;;  %631 = vst [vmem:[%s870_s5 + $0x50] sm:$0xff] %v567_v28  ;;  %v507_v40 = vadd.f32 %v443_v25, %v379_v30  ;;  %v312_v44 = vmul.f32 %v822_v0, %v241_v27  ;;  %v452_v12 = vld [vmem:[%s834_s26 + $0xb8] sm:$0xff]  ;;  %v249_v13 = vld [vmem:[%s828_s23 + $0xd0] sm:$0xff] }
  0x22   : > { %v570_v39 = vmax.f32 %v506_v29, 0.0  ;;  %v508_v41 = vadd.f32 %v444_v26, %v380_v31  ;;  %632 = vst [vmem:[%s870_s5 + $0x58] sm:$0xff] %v568_v34  ;;  %v381_v45 = vadd.f32 %v840_v2, %v310_v36  ;;  %v313_v48 = vmul.f32 %v822_v0, %v242_v32  ;;  %v250_v18 = vld [vmem:[%s828_s23 + $0xd8] sm:$0xff]  ;;  %v251_v19 = vld [vmem:[%s828_s23 + $0xe0] sm:$0xff]  ;;  %v252_v24 = vld [vmem:[%s828_s23 + $0xe8] sm:$0xff] }
  0x23   : > { %633 = vst [vmem:[%s870_s5 + $0x60] sm:$0xff] %v569_v35  ;;  %v382_v46 = vadd.f32 %v840_v2, %v311_v37  ;;  %v314_v49 = vmul.f32 %v822_v0, %v243_v33  ;;  %v571_v52 = vmax.f32 %v507_v40, 0.0  ;;  %v383_v54 = vadd.f32 %v840_v2, %v312_v44  ;;  %v453_v28 = vld [vmem:[%s834_s26 + $0xc0] sm:$0xff]  ;;  %v454_v29 = vld [vmem:[%s834_s26 + $0xc8] sm:$0xff]  ;;  %v455_v33 = vld [vmem:[%s834_s26 + $0xd0] sm:$0xff] }
  0x24   : > { %634 = vst [vmem:[%s870_s5 + $0x68] sm:$0xff] %v570_v39  ;;  %v572_v53 = vmax.f32 %v508_v41, 0.0  ;;  %v315_v57 = vmul.f32 %v822_v0, %v244_v38  ;;  %v509_v58 = vadd.f32 %v445_v42, %v381_v45  ;;  %v384_v60 = vadd.f32 %v840_v2, %v313_v48  ;;  %v253_v36 = vld [vmem:[%s828_s23 + $0xf0] sm:$0xff]  ;;  %v254_v37 = vld [vmem:[%s828_s23 + $0xf8] sm:$0xff]  ;;  %v457_v42 = vld [vmem:[%s834_s26 + $0xe0] sm:$0xff] }
  0x25   : > { %v510_v59 = vadd.f32 %v446_v43, %v382_v46  ;;  %v385_v61 = vadd.f32 %v840_v2, %v314_v49  ;;  %635 = vst [vmem:[%s870_s5 + $0x70] sm:$0xff] %v571_v52  ;;  %v511_v63 = vadd.f32 %v447_v47, %v383_v54  ;;  %v316_v3 = vmul.f32 %v822_v0, %v245_v50  ;;  %v456_v41 = vld [vmem:[%s834_s26 + $0xd8] sm:$0xff]  ;;  %v458_v48 = vld [vmem:[%s834_s26 + $0xe8] sm:$0xff] }
  0x26   : > { %636 = vst [vmem:[%s870_s5 + $0x78] sm:$0xff] %v572_v53  ;;  %v386_v1 = vadd.f32 %v840_v2, %v315_v57  ;;  %v317_v4 = vmul.f32 %v822_v0, %v246_v51  ;;  %v573_v7 = vmax.f32 %v509_v58, 0.0  ;;  %v512_v9 = vadd.f32 %v448_v55, %v384_v60  ;;  %v255_v53 = vld [vmem:[%s828_s23 + $0x100] sm:$0xff]  ;;  %v256_v54 = vld [vmem:[%s828_s23 + $0x108] sm:$0xff]  ;;  %v460_v60 = vld [vmem:[%s834_s26 + $0xf8] sm:$0xff] }
  0x27   : > { %v574_v8 = vmax.f32 %v510_v59, 0.0  ;;  %v513_v10 = vadd.f32 %v449_v56, %v385_v61  ;;  %v575_v14 = vmax.f32 %v511_v63, 0.0  ;;  %v387_v16 = vadd.f32 %v840_v2, %v316_v3  ;;  %v459_v59 = vld [vmem:[%s834_s26 + $0xf0] sm:$0xff] }
  0x28   : > { %v514_v15 = vadd.f32 %v450_v62, %v386_v1  ;;  %v388_v17 = vadd.f32 %v840_v2, %v317_v4  ;;  %637 = vst [vmem:[%s870_s5 + $0x80] sm:$0xff] %v573_v7  ;;  %v576_v20 = vmax.f32 %v512_v9, 0.0  ;;  %v318_v22 = vmul.f32 %v822_v0, %v247_v5  ;;  %v257_v61 = vld [vmem:[%s828_s23 + $0x110] sm:$0xff]  ;;  %v258_v4 = vld [vmem:[%s828_s23 + $0x118] sm:$0xff]  ;;  %v259_v5 = vld [vmem:[%s828_s23 + $0x120] sm:$0xff] }
  0x29   : > { %638 = vst [vmem:[%s870_s5 + $0x88] sm:$0xff] %v574_v8  ;;  %v577_v21 = vmax.f32 %v513_v10, 0.0  ;;  %v319_v23 = vmul.f32 %v822_v0, %v248_v6  ;;  %639 = vst [vmem:[%s870_s5 + $0x90] sm:$0xff] %v575_v14  ;;  %v515_v26 = vadd.f32 %v451_v11, %v387_v16  ;;  %v320_v30 = vmul.f32 %v822_v0, %v249_v13  ;;  %v260_v10 = vld [vmem:[%s828_s23 + $0x128] sm:$0xff]  ;;  %v461_v14 = vld [vmem:[%s834_s26 + $0x100] sm:$0xff] }
  0x2a   : > { %v578_v25 = vmax.f32 %v514_v15, 0.0  ;;  %v516_v27 = vadd.f32 %v452_v12, %v388_v17  ;;  %640 = vst [vmem:[%s870_s5 + $0x98] sm:$0xff] %v576_v20  ;;  %v389_v31 = vadd.f32 %v840_v2, %v318_v22  ;;  %v321_v34 = vmul.f32 %v822_v0, %v250_v18  ;;  %v462_v15 = vld [vmem:[%s834_s26 + $0x108] sm:$0xff]  ;;  %v261_v22 = vld [vmem:[%s828_s23 + $0x130] sm:$0xff] }
  0x2b   : > { %641 = vst [vmem:[%s870_s5 + $0xa0] sm:$0xff] %v577_v21  ;;  %v390_v32 = vadd.f32 %v840_v2, %v319_v23  ;;  %v322_v35 = vmul.f32 %v822_v0, %v251_v19  ;;  %v579_v38 = vmax.f32 %v515_v26, 0.0  ;;  %v391_v40 = vadd.f32 %v840_v2, %v320_v30  ;;  %v463_v19 = vld [vmem:[%s834_s26 + $0x110] sm:$0xff]  ;;  %v262_v23 = vld [vmem:[%s828_s23 + $0x138] sm:$0xff] }
  0x2c   : > { %642 = vst [vmem:[%s870_s5 + $0xa8] sm:$0xff] %v578_v25  ;;  %v580_v39 = vmax.f32 %v516_v27, 0.0  ;;  %v323_v43 = vmul.f32 %v822_v0, %v252_v24  ;;  %v517_v44 = vadd.f32 %v453_v28, %v389_v31  ;;  %v392_v46 = vadd.f32 %v840_v2, %v321_v34  ;;  %v464_v27 = vld [vmem:[%s834_s26 + $0x118] sm:$0xff]  ;;  %v465_v28 = vld [vmem:[%s834_s26 + $0x120] sm:$0xff]  ;;  %v466_v34 = vld [vmem:[%s834_s26 + $0x128] sm:$0xff] }
  0x2d   : > { %v518_v45 = vadd.f32 %v454_v29, %v390_v32  ;;  %v393_v47 = vadd.f32 %v840_v2, %v322_v35  ;;  %643 = vst [vmem:[%s870_s5 + $0xb0] sm:$0xff] %v579_v38  ;;  %v519_v49 = vadd.f32 %v455_v33, %v391_v40  ;;  %v324_v51 = vmul.f32 %v822_v0, %v253_v36  ;;  %v264_v40 = vld [vmem:[%s828_s23 + $0x148] sm:$0xff] }
  0x2e   : > { %644 = vst [vmem:[%s870_s5 + $0xb8] sm:$0xff] %v580_v39  ;;  %v394_v50 = vadd.f32 %v840_v2, %v323_v43  ;;  %v325_v52 = vmul.f32 %v822_v0, %v254_v37  ;;  %v581_v55 = vmax.f32 %v517_v44, 0.0  ;;  %v520_v57 = vadd.f32 %v456_v41, %v392_v46  ;;  %v263_v39 = vld [vmem:[%s828_s23 + $0x140] sm:$0xff]  ;;  %v468_v46 = vld [vmem:[%s834_s26 + $0x138] sm:$0xff] }
  0x2f   : > { %v582_v56 = vmax.f32 %v518_v45, 0.0  ;;  %v521_v58 = vadd.f32 %v457_v42, %v393_v47  ;;  %v583_v62 = vmax.f32 %v519_v49, 0.0  ;;  %v395_v1 = vadd.f32 %v840_v2, %v324_v51  ;;  %v467_v45 = vld [vmem:[%s834_s26 + $0x130] sm:$0xff] }
  0x30   : > { %v522_v63 = vadd.f32 %v458_v48, %v394_v50  ;;  %v396_v3 = vadd.f32 %v840_v2, %v325_v52  ;;  %645 = vst [vmem:[%s870_s5 + $0xc0] sm:$0xff] %v581_v55  ;;  %v584_v6 = vmax.f32 %v520_v57, 0.0  ;;  %v326_v8 = vmul.f32 %v822_v0, %v255_v53  ;;  %v265_v47 = vld [vmem:[%s828_s23 + $0x150] sm:$0xff]  ;;  %v266_v52 = vld [vmem:[%s828_s23 + $0x158] sm:$0xff]  ;;  %v267_v53 = vld [vmem:[%s828_s23 + $0x160] sm:$0xff] }
  0x31   : > { %646 = vst [vmem:[%s870_s5 + $0xc8] sm:$0xff] %v582_v56  ;;  %v585_v7 = vmax.f32 %v521_v58, 0.0  ;;  %v327_v9 = vmul.f32 %v822_v0, %v256_v54  ;;  %647 = vst [vmem:[%s870_s5 + $0xd0] sm:$0xff] %v583_v62  ;;  %v523_v12 = vadd.f32 %v459_v59, %v395_v1  ;;  %v328_v16 = vmul.f32 %v822_v0, %v257_v61  ;;  %v268_v58 = vld [vmem:[%s828_s23 + $0x168] sm:$0xff]  ;;  %v469_v62 = vld [vmem:[%s834_s26 + $0x140] sm:$0xff] }
  0x32   : > { %v586_v11 = vmax.f32 %v522_v63, 0.0  ;;  %v524_v13 = vadd.f32 %v460_v60, %v396_v3  ;;  %648 = vst [vmem:[%s870_s5 + $0xd8] sm:$0xff] %v584_v6  ;;  %v397_v17 = vadd.f32 %v840_v2, %v326_v8  ;;  %v329_v20 = vmul.f32 %v822_v0, %v258_v4  ;;  %v470_v63 = vld [vmem:[%s834_s26 + $0x148] sm:$0xff]  ;;  %v269_v8 = vld [vmem:[%s828_s23 + $0x170] sm:$0xff] }
  0x33   : > { %649 = vst [vmem:[%s870_s5 + $0xe0] sm:$0xff] %v585_v7  ;;  %v398_v18 = vadd.f32 %v840_v2, %v327_v9  ;;  %v330_v21 = vmul.f32 %v822_v0, %v259_v5  ;;  %v587_v24 = vmax.f32 %v523_v12, 0.0  ;;  %v399_v26 = vadd.f32 %v840_v2, %v328_v16  ;;  %v471_v5 = vld [vmem:[%s834_s26 + $0x150] sm:$0xff]  ;;  %v270_v9 = vld [vmem:[%s828_s23 + $0x178] sm:$0xff] }
  0x34   : > { %650 = vst [vmem:[%s870_s5 + $0xe8] sm:$0xff] %v586_v11  ;;  %v588_v25 = vmax.f32 %v524_v13, 0.0  ;;  %v331_v29 = vmul.f32 %v822_v0, %v260_v10  ;;  %v525_v30 = vadd.f32 %v461_v14, %v397_v17  ;;  %v400_v32 = vadd.f32 %v840_v2, %v329_v20  ;;  %v472_v13 = vld [vmem:[%s834_s26 + $0x158] sm:$0xff]  ;;  %v473_v14 = vld [vmem:[%s834_s26 + $0x160] sm:$0xff]  ;;  %v474_v20 = vld [vmem:[%s834_s26 + $0x168] sm:$0xff] }
  0x35   : > { %v526_v31 = vadd.f32 %v462_v15, %v398_v18  ;;  %v401_v33 = vadd.f32 %v840_v2, %v330_v21  ;;  %651 = vst [vmem:[%s870_s5 + $0xf0] sm:$0xff] %v587_v24  ;;  %v527_v35 = vadd.f32 %v463_v19, %v399_v26  ;;  %v332_v37 = vmul.f32 %v822_v0, %v261_v22  ;;  %v272_v26 = vld [vmem:[%s828_s23 + $0x188] sm:$0xff] }
  0x36   : > { %652 = vst [vmem:[%s870_s5 + $0xf8] sm:$0xff] %v588_v25  ;;  %v402_v36 = vadd.f32 %v840_v2, %v331_v29  ;;  %v333_v38 = vmul.f32 %v822_v0, %v262_v23  ;;  %v589_v41 = vmax.f32 %v525_v30, 0.0  ;;  %v528_v43 = vadd.f32 %v464_v27, %v400_v32  ;;  %v271_v25 = vld [vmem:[%s828_s23 + $0x180] sm:$0xff]  ;;  %v476_v32 = vld [vmem:[%s834_s26 + $0x178] sm:$0xff] }
  0x37   : > { %v590_v42 = vmax.f32 %v526_v31, 0.0  ;;  %v529_v44 = vadd.f32 %v465_v28, %v401_v33  ;;  %v591_v48 = vmax.f32 %v527_v35, 0.0  ;;  %v403_v50 = vadd.f32 %v840_v2, %v332_v37  ;;  %v475_v31 = vld [vmem:[%s834_s26 + $0x170] sm:$0xff] }
  0x38   : > { %v530_v49 = vadd.f32 %v466_v34, %v402_v36  ;;  %v404_v51 = vadd.f32 %v840_v2, %v333_v38  ;;  %653 = vst [vmem:[%s870_s5 + $0x100] sm:$0xff] %v589_v41  ;;  %v592_v54 = vmax.f32 %v528_v43, 0.0  ;;  %v334_v56 = vmul.f32 %v822_v0, %v263_v39  ;;  %v273_v33 = vld [vmem:[%s828_s23 + $0x190] sm:$0xff]  ;;  %v274_v38 = vld [vmem:[%s828_s23 + $0x198] sm:$0xff]  ;;  %v275_v39 = vld [vmem:[%s828_s23 + $0x1a0] sm:$0xff] }
  0x39   : > { %654 = vst [vmem:[%s870_s5 + $0x108] sm:$0xff] %v590_v42  ;;  %v593_v55 = vmax.f32 %v529_v44, 0.0  ;;  %v335_v57 = vmul.f32 %v822_v0, %v264_v40  ;;  %655 = vst [vmem:[%s870_s5 + $0x110] sm:$0xff] %v591_v48  ;;  %v531_v60 = vadd.f32 %v467_v45, %v403_v50  ;;  %v336_v1 = vmul.f32 %v822_v0, %v265_v47  ;;  %v276_v44 = vld [vmem:[%s828_s23 + $0x1a8] sm:$0xff]  ;;  %v477_v48 = vld [vmem:[%s834_s26 + $0x180] sm:$0xff] }
  0x3a   : > { %v594_v59 = vmax.f32 %v530_v49, 0.0  ;;  %v532_v61 = vadd.f32 %v468_v46, %v404_v51  ;;  %656 = vst [vmem:[%s870_s5 + $0x118] sm:$0xff] %v592_v54  ;;  %v405_v3 = vadd.f32 %v840_v2, %v334_v56  ;;  %v337_v6 = vmul.f32 %v822_v0, %v266_v52  ;;  %v478_v49 = vld [vmem:[%s834_s26 + $0x188] sm:$0xff]  ;;  %v277_v56 = vld [vmem:[%s828_s23 + $0x1b0] sm:$0xff] }
  0x3b   : > { %657 = vst [vmem:[%s870_s5 + $0x120] sm:$0xff] %v593_v55  ;;  %v406_v4 = vadd.f32 %v840_v2, %v335_v57  ;;  %v338_v7 = vmul.f32 %v822_v0, %v267_v53  ;;  %v595_v10 = vmax.f32 %v531_v60, 0.0  ;;  %v407_v12 = vadd.f32 %v840_v2, %v336_v1  ;;  %v479_v53 = vld [vmem:[%s834_s26 + $0x190] sm:$0xff]  ;;  %v278_v57 = vld [vmem:[%s828_s23 + $0x1b8] sm:$0xff] }
  0x3c   : > { %658 = vst [vmem:[%s870_s5 + $0x128] sm:$0xff] %v594_v59  ;;  %v596_v11 = vmax.f32 %v532_v61, 0.0  ;;  %v339_v15 = vmul.f32 %v822_v0, %v268_v58  ;;  %v533_v16 = vadd.f32 %v469_v62, %v405_v3  ;;  %v408_v18 = vadd.f32 %v840_v2, %v337_v6  ;;  %v480_v61 = vld [vmem:[%s834_s26 + $0x198] sm:$0xff]  ;;  %v481_v62 = vld [vmem:[%s834_s26 + $0x1a0] sm:$0xff]  ;;  %v482_v6 = vld [vmem:[%s834_s26 + $0x1a8] sm:$0xff] }
  0x3d   : > { %v534_v17 = vadd.f32 %v470_v63, %v406_v4  ;;  %v409_v19 = vadd.f32 %v840_v2, %v338_v7  ;;  %659 = vst [vmem:[%s870_s5 + $0x130] sm:$0xff] %v595_v10  ;;  %v535_v21 = vadd.f32 %v471_v5, %v407_v12  ;;  %v340_v23 = vmul.f32 %v822_v0, %v269_v8  ;;  %v280_v12 = vld [vmem:[%s828_s23 + $0x1c8] sm:$0xff] }
  0x3e   : > { %660 = vst [vmem:[%s870_s5 + $0x138] sm:$0xff] %v596_v11  ;;  %v410_v22 = vadd.f32 %v840_v2, %v339_v15  ;;  %v341_v24 = vmul.f32 %v822_v0, %v270_v9  ;;  %v597_v27 = vmax.f32 %v533_v16, 0.0  ;;  %v536_v29 = vadd.f32 %v472_v13, %v408_v18  ;;  %v279_v11 = vld [vmem:[%s828_s23 + $0x1c0] sm:$0xff]  ;;  %v484_v18 = vld [vmem:[%s834_s26 + $0x1b8] sm:$0xff] }
  0x3f   : > { %v598_v28 = vmax.f32 %v534_v17, 0.0  ;;  %v537_v30 = vadd.f32 %v473_v14, %v409_v19  ;;  %v599_v34 = vmax.f32 %v535_v21, 0.0  ;;  %v411_v36 = vadd.f32 %v840_v2, %v340_v23  ;;  %v483_v17 = vld [vmem:[%s834_s26 + $0x1b0] sm:$0xff] }
  0x40   : > { %v538_v35 = vadd.f32 %v474_v20, %v410_v22  ;;  %v412_v37 = vadd.f32 %v840_v2, %v341_v24  ;;  %661 = vst [vmem:[%s870_s5 + $0x140] sm:$0xff] %v597_v27  ;;  %v600_v40 = vmax.f32 %v536_v29, 0.0  ;;  %v342_v42 = vmul.f32 %v822_v0, %v271_v25  ;;  %v281_v19 = vld [vmem:[%s828_s23 + $0x1d0] sm:$0xff]  ;;  %v282_v24 = vld [vmem:[%s828_s23 + $0x1d8] sm:$0xff]  ;;  %v283_v25 = vld [vmem:[%s828_s23 + $0x1e0] sm:$0xff] }
  0x41   : > { %662 = vst [vmem:[%s870_s5 + $0x148] sm:$0xff] %v598_v28  ;;  %v601_v41 = vmax.f32 %v537_v30, 0.0  ;;  %v343_v43 = vmul.f32 %v822_v0, %v272_v26  ;;  %663 = vst [vmem:[%s870_s5 + $0x150] sm:$0xff] %v599_v34  ;;  %v539_v46 = vadd.f32 %v475_v31, %v411_v36  ;;  %v344_v50 = vmul.f32 %v822_v0, %v273_v33  ;;  %v284_v30 = vld [vmem:[%s828_s23 + $0x1e8] sm:$0xff]  ;;  %v485_v34 = vld [vmem:[%s834_s26 + $0x1c0] sm:$0xff] }
  0x42   : > { %v602_v45 = vmax.f32 %v538_v35, 0.0  ;;  %v540_v47 = vadd.f32 %v476_v32, %v412_v37  ;;  %664 = vst [vmem:[%s870_s5 + $0x158] sm:$0xff] %v600_v40  ;;  %v413_v51 = vadd.f32 %v840_v2, %v342_v42  ;;  %v345_v54 = vmul.f32 %v822_v0, %v274_v38  ;;  %v486_v35 = vld [vmem:[%s834_s26 + $0x1c8] sm:$0xff]  ;;  %v285_v42 = vld [vmem:[%s828_s23 + $0x1f0] sm:$0xff] }
  0x43   : > { %665 = vst [vmem:[%s870_s5 + $0x160] sm:$0xff] %v601_v41  ;;  %v414_v52 = vadd.f32 %v840_v2, %v343_v43  ;;  %v346_v55 = vmul.f32 %v822_v0, %v275_v39  ;;  %v603_v58 = vmax.f32 %v539_v46, 0.0  ;;  %v415_v60 = vadd.f32 %v840_v2, %v344_v50  ;;  %v487_v39 = vld [vmem:[%s834_s26 + $0x1d0] sm:$0xff]  ;;  %v286_v43 = vld [vmem:[%s828_s23 + $0x1f8] sm:$0xff] }
  0x44   : > { %666 = vst [vmem:[%s870_s5 + $0x168] sm:$0xff] %v602_v45  ;;  %v604_v59 = vmax.f32 %v540_v47, 0.0  ;;  %v347_v63 = vmul.f32 %v822_v0, %v276_v44  ;;  %v541_v1 = vadd.f32 %v477_v48, %v413_v51  ;;  %v416_v4 = vadd.f32 %v840_v2, %v345_v54  ;;  %v488_v47 = vld [vmem:[%s834_s26 + $0x1d8] sm:$0xff]  ;;  %v489_v48 = vld [vmem:[%s834_s26 + $0x1e0] sm:$0xff]  ;;  %v490_v54 = vld [vmem:[%s834_s26 + $0x1e8] sm:$0xff] }
  0x45   : > { %v542_v3 = vadd.f32 %v478_v49, %v414_v52  ;;  %v417_v5 = vadd.f32 %v840_v2, %v346_v55  ;;  %667 = vst [vmem:[%s870_s5 + $0x170] sm:$0xff] %v603_v58  ;;  %v543_v7 = vadd.f32 %v479_v53, %v415_v60  ;;  %v348_v9 = vmul.f32 %v822_v0, %v277_v56 }
  0x46   : > { %668 = vst [vmem:[%s870_s5 + $0x178] sm:$0xff] %v604_v59  ;;  %v418_v8 = vadd.f32 %v840_v2, %v347_v63  ;;  %v349_v10 = vmul.f32 %v822_v0, %v278_v57  ;;  %v605_v13 = vmax.f32 %v541_v1, 0.0  ;;  %v544_v15 = vadd.f32 %v480_v61, %v416_v4  ;;  %v491_v63 = vld [vmem:[%s834_s26 + $0x1f0] sm:$0xff]  ;;  %v492_v1 = vld [vmem:[%s834_s26 + $0x1f8] sm:$0xff] }
  0x47   : > { %v606_v14 = vmax.f32 %v542_v3, 0.0  ;;  %v545_v16 = vadd.f32 %v481_v62, %v417_v5  ;;  %v607_v20 = vmax.f32 %v543_v7, 0.0  ;;  %v419_v22 = vadd.f32 %v840_v2, %v348_v9 }
  0x48   : > { %v546_v21 = vadd.f32 %v482_v6, %v418_v8  ;;  %v420_v23 = vadd.f32 %v840_v2, %v349_v10  ;;  %669 = vst [vmem:[%s870_s5 + $0x180] sm:$0xff] %v605_v13  ;;  %v608_v26 = vmax.f32 %v544_v15, 0.0  ;;  %v350_v28 = vmul.f32 %v822_v0, %v279_v11 }
  0x49   : > { %670 = vst [vmem:[%s870_s5 + $0x188] sm:$0xff] %v606_v14  ;;  %v609_v27 = vmax.f32 %v545_v16, 0.0  ;;  %v351_v29 = vmul.f32 %v822_v0, %v280_v12  ;;  %671 = vst [vmem:[%s870_s5 + $0x190] sm:$0xff] %v607_v20  ;;  %v547_v32 = vadd.f32 %v483_v17, %v419_v22  ;;  %v352_v36 = vmul.f32 %v822_v0, %v281_v19 }
  0x4a   : > { %v610_v31 = vmax.f32 %v546_v21, 0.0  ;;  %v548_v33 = vadd.f32 %v484_v18, %v420_v23  ;;  %672 = vst [vmem:[%s870_s5 + $0x198] sm:$0xff] %v608_v26  ;;  %v421_v37 = vadd.f32 %v840_v2, %v350_v28  ;;  %v353_v40 = vmul.f32 %v822_v0, %v282_v24 }
  0x4b   : > { %673 = vst [vmem:[%s870_s5 + $0x1a0] sm:$0xff] %v609_v27  ;;  %v422_v38 = vadd.f32 %v840_v2, %v351_v29  ;;  %v354_v41 = vmul.f32 %v822_v0, %v283_v25  ;;  %v611_v44 = vmax.f32 %v547_v32, 0.0  ;;  %v423_v46 = vadd.f32 %v840_v2, %v352_v36 }
  0x4c   : > { %674 = vst [vmem:[%s870_s5 + $0x1a8] sm:$0xff] %v610_v31  ;;  %v612_v45 = vmax.f32 %v548_v33, 0.0  ;;  %v355_v49 = vmul.f32 %v822_v0, %v284_v30  ;;  %v549_v50 = vadd.f32 %v485_v34, %v421_v37  ;;  %v424_v52 = vadd.f32 %v840_v2, %v353_v40 }
  0x4d   : > { %v550_v51 = vadd.f32 %v486_v35, %v422_v38  ;;  %v425_v53 = vadd.f32 %v840_v2, %v354_v41  ;;  %675 = vst [vmem:[%s870_s5 + $0x1b0] sm:$0xff] %v611_v44  ;;  %v551_v55 = vadd.f32 %v487_v39, %v423_v46  ;;  %v356_v57 = vmul.f32 %v822_v0, %v285_v42 }
  0x4e   : > { %676 = vst [vmem:[%s870_s5 + $0x1b8] sm:$0xff] %v612_v45  ;;  %v426_v56 = vadd.f32 %v840_v2, %v355_v49  ;;  %v357_v58 = vmul.f32 %v822_v0, %v286_v43  ;;  %v613_v59 = vmax.f32 %v549_v50, 0.0  ;;  %v552_v61 = vadd.f32 %v488_v47, %v424_v52 }
  0x4f   : > { %v614_v60 = vmax.f32 %v550_v51, 0.0  ;;  %v553_v62 = vadd.f32 %v489_v48, %v425_v53  ;;  %v615_v3 = vmax.f32 %v551_v55, 0.0  ;;  %v427_v5 = vadd.f32 %v840_v2, %v356_v57 }
  0x50   : > { %v554_v4 = vadd.f32 %v490_v54, %v426_v56  ;;  %v428_v6 = vadd.f32 %v840_v2, %v357_v58  ;;  %677 = vst [vmem:[%s870_s5 + $0x1c0] sm:$0xff] %v613_v59  ;;  %v616_v0 = vmax.f32 %v552_v61, 0.0 }
  0x51   : > { %678 = vst [vmem:[%s870_s5 + $0x1c8] sm:$0xff] %v614_v60  ;;  %v617_v7 = vmax.f32 %v553_v62, 0.0  ;;  %679 = vst [vmem:[%s870_s5 + $0x1d0] sm:$0xff] %v615_v3  ;;  %v555_v9 = vadd.f32 %v491_v63, %v427_v5 }
  0x52   : > { %v618_v8 = vmax.f32 %v554_v4, 0.0  ;;  %v556_v10 = vadd.f32 %v492_v1, %v428_v6  ;;  %680 = vst [vmem:[%s870_s5 + $0x1d8] sm:$0xff] %v616_v0 }
  0x53   : > { %681 = vst [vmem:[%s870_s5 + $0x1e0] sm:$0xff] %v617_v7  ;;  %v619_v11 = vmax.f32 %v555_v9, 0.0 }
  0x54   : > { %682 = vst [vmem:[%s870_s5 + $0x1e8] sm:$0xff] %v618_v8  ;;  %v620_v12 = vmax.f32 %v556_v10, 0.0 }
  0x55   : > { %683 = vst [vmem:[%s870_s5 + $0x1f0] sm:$0xff] %v619_v11 }
  0x56   : > { %684 = vst [vmem:[%s870_s5 + $0x1f8] sm:$0xff] %v620_v12 }
  0x57 PF: > { %s14_s15 = sadd.s32 1, %s782_s15  }
  0x58   : > { %p11_p4 = scmp.ge.s32.totalorder %s14_s15, 4  }
  0x5a   :  { %13 = sbr.rel (!%p11_p4) target bundleno = 1 (0x1), region = 69 }

// kernel: block_forward.4
= control target key start
LH: loop header
LB: loop body
LE: loop exit
PB: predicated region body
PF: predicated region fallthrough
CT: control target
= control target key end

     0   :  { %s1387_s12 = smov 0   ;;  %s1935_s0 = inlined_call_operand.vmem [shape: bf16[1024,128], index: 0, kind: input, shape index: {}]   ;;  %s1936_s1 = inlined_call_operand.vmem [shape: bf16[128,128], index: 1, kind: input, shape index: {}]   ;;  %s1937_s2 = inlined_call_operand.vmem [shape: f32[1024,128], index: 2, kind: output, shape index: {0}]   ;;  %s1938_s3 = inlined_call_operand.vmem [shape: f32[2,128], index: 3, kind: output, shape index: {1}]  }
   0x1 LB: > { %s1121_s13 = sadd.s32 4294967295, %s1364_s12   ;;  %p1125_p0 = scmp.ge.s32.totalorder %s1364_s12, 1  ;;  %s1364_s12 = sphi %s1387_s12, %s14_s12  }
   0x2   : > { %p136_p1 = scmp.lt.s32.totalorder %s1364_s12, 3 }
   0x4   : > { %p137_p2 = pnand %p1125_p0, %p136_p1 }
   0x6   : > { %140 = sbr.rel (%p137_p2) target bundleno = 474 (0x1da), region = 28 }
   0xd   : > { %v1318_v0 = vld [vmem:[%s1936_s1] sm:$0xff]   ;;  %s1126_s16 = sshll.u32 %s1121_s13, 6  ;;  %v1319_v1 = vld [vmem:[%s1936_s1 + $0x8] sm:$0xff]   ;;  %v1320_v2 = vld [vmem:[%s1936_s1 + $0x10] sm:$0xff]   ;;  %p1170_p4 = scmp.ne.s32.totalorder %s1121_s13, 0 }
   0xe   : > { %p161_p3 = scmp.lt.s32.totalorder %s1126_s16, 127  ;;  %1213 = vmatprep.subr.bf16.mxu0 %v1318_v0  ;;  %1293 = vmatprep.subr.bf16.mxu1 %v1318_v0  ;;  %v1321_v3 = vld [vmem:[%s1936_s1 + $0x18] sm:$0xff]   ;;  %v1322_v6 = vld [vmem:[%s1936_s1 + $0x20] sm:$0xff]   ;;  %v1323_v7 = vld [vmem:[%s1936_s1 + $0x28] sm:$0xff]  }
   0xf   : > { %1214 = vmatpush3.bf16.msra.mxu0 %v1318_v0  ;;  %1301 = vmatpush3.bf16.msra.mxu1 %v1318_v0  ;;  %v1324_v8 = vld [vmem:[%s1936_s1 + $0x30] sm:$0xff]   ;;  %v1325_v9 = vld [vmem:[%s1936_s1 + $0x38] sm:$0xff]  }
  0x10   : > { %s1988_s16 = smov (!%p161_p3, %s1126_s16), 127  ;;  %1215 = vmatprep.subr.bf16.mxu0 %v1319_v1  ;;  %1294 = vmatprep.subr.bf16.mxu1 %v1319_v1 }
  0x11   : > { %s1127_s21 = sshll.u32 %s1988_s16, 2  ;;  %s1129_s8 = sshll.u32 %s1988_s16, 3 }
  0x12   : > { %s1412_s24 = scalar_lea.vmem %s1935_s0, %s1127_s21  ;;  %s1465_s11 = scalar_lea.vmem %s1937_s2, %s1129_s8 }
  0x13   : > { %1216 = vmatpush3.bf16.msra.mxu0 %v1319_v1  ;;  %1302 = vmatpush3.bf16.msra.mxu1 %v1319_v1  ;;  %v1326_v4 = vld [vmem:[%s1412_s24] sm:$0xff]   ;;  %v1328_v10 = vld [vmem:[%s1412_s24 + $0x8] sm:$0xff]   ;;  %v1330_v12 = vld [vmem:[%s1412_s24 + $0x10] sm:$0xff]  }
  0x14   : > { %1217 = vmatprep.subr.bf16.mxu0 %v1320_v2  ;;  %1295 = vmatprep.subr.bf16.mxu1 %v1320_v2  ;;  %v1327_v5 = vld [vmem:[%s1412_s24 + $0x80] sm:$0xff]   ;;  %v1329_v11 = vld [vmem:[%s1412_s24 + $0x88] sm:$0xff]   ;;  %v1331_v13 = vld [vmem:[%s1412_s24 + $0x90] sm:$0xff]  }
  0x15   : > { %1229 = vmatprep.mubr.bf16.mxu0 %v1326_v4  ;;  %1261 = vmatprep.mubr.bf16.mxu1 %v1327_v5  ;;  %v1332_v14 = vld [vmem:[%s1412_s24 + $0x18] sm:$0xff]   ;;  %v1334_v16 = vld [vmem:[%s1412_s24 + $0x20] sm:$0xff]   ;;  %v1336_v18 = vld [vmem:[%s1412_s24 + $0x28] sm:$0xff]  }
  0x16   : > { %v1333_v15 = vld [vmem:[%s1412_s24 + $0x98] sm:$0xff]   ;;  %v1335_v17 = vld [vmem:[%s1412_s24 + $0xa0] sm:$0xff]   ;;  %v1337_v19 = vld [vmem:[%s1412_s24 + $0xa8] sm:$0xff]  }
  0x17   : > { %1218 = vmatpush3.bf16.msra.mxu0 %v1320_v2  ;;  %1303 = vmatpush3.bf16.msra.mxu1 %v1320_v2  ;;  %v1338_v20 = vld [vmem:[%s1412_s24 + $0x30] sm:$0xff]   ;;  %v1340_v22 = vld [vmem:[%s1412_s24 + $0x38] sm:$0xff]   ;;  %v1342_v24 = vld [vmem:[%s1412_s24 + $0x40] sm:$0xff]  }
  0x18   : > { %1219 = vmatprep.subr.bf16.mxu0 %v1321_v3  ;;  %1296 = vmatprep.subr.bf16.mxu1 %v1321_v3  ;;  %v1339_v21 = vld [vmem:[%s1412_s24 + $0xb0] sm:$0xff]   ;;  %v1341_v23 = vld [vmem:[%s1412_s24 + $0xb8] sm:$0xff]   ;;  %v1343_v25 = vld [vmem:[%s1412_s24 + $0xc0] sm:$0xff]  }
  0x19   : > { %v1344_v26 = vld [vmem:[%s1412_s24 + $0x48] sm:$0xff]   ;;  %v1346_v28 = vld [vmem:[%s1412_s24 + $0x50] sm:$0xff]   ;;  %v1348_v30 = vld [vmem:[%s1412_s24 + $0x58] sm:$0xff]  }
  0x1a   : > { %v1345_v27 = vld [vmem:[%s1412_s24 + $0xc8] sm:$0xff]   ;;  %v1347_v29 = vld [vmem:[%s1412_s24 + $0xd0] sm:$0xff]   ;;  %v1349_v31 = vld [vmem:[%s1412_s24 + $0xd8] sm:$0xff]  }
  0x1b   : > { %1220 = vmatpush3.bf16.msra.mxu0 %v1321_v3  ;;  %1304 = vmatpush3.bf16.msra.mxu1 %v1321_v3  ;;  %v1350_v32 = vld [vmem:[%s1412_s24 + $0x60] sm:$0xff]   ;;  %v1352_v34 = vld [vmem:[%s1412_s24 + $0x68] sm:$0xff]   ;;  %v1354_v36 = vld [vmem:[%s1412_s24 + $0x70] sm:$0xff]  }
  0x1c   : > { %1221 = vmatprep.subr.bf16.mxu0 %v1322_v6  ;;  %1297 = vmatprep.subr.bf16.mxu1 %v1322_v6  ;;  %v1351_v33 = vld [vmem:[%s1412_s24 + $0xe0] sm:$0xff]   ;;  %v1353_v35 = vld [vmem:[%s1412_s24 + $0xe8] sm:$0xff]   ;;  %v1355_v37 = vld [vmem:[%s1412_s24 + $0xf0] sm:$0xff]  }
  0x1d   : > { %v1356_v38 = vld [vmem:[%s1412_s24 + $0x78] sm:$0xff]  }
  0x1e   : > { %v1357_v39 = vld [vmem:[%s1412_s24 + $0xf8] sm:$0xff]  }
  0x1f   : > { %1222 = vmatpush3.bf16.msra.mxu0 %v1322_v6  ;;  %1305 = vmatpush3.bf16.msra.mxu1 %v1322_v6 }
  0x20   : > { %1223 = vmatprep.subr.bf16.mxu0 %v1323_v7  ;;  %1298 = vmatprep.subr.bf16.mxu1 %v1323_v7 }
  0x23   : > { %1224 = vmatpush3.bf16.msra.mxu0 %v1323_v7  ;;  %1306 = vmatpush3.bf16.msra.mxu1 %v1323_v7 }
  0x24   : > { %1225 = vmatprep.subr.bf16.mxu0 %v1324_v8  ;;  %1299 = vmatprep.subr.bf16.mxu1 %v1324_v8 }
  0x27   : > { %1226 = vmatpush3.bf16.msra.mxu0 %v1324_v8  ;;  %1307 = vmatpush3.bf16.msra.mxu1 %v1324_v8 }
  0x28   : > { %1227 = vmatprep.subr.bf16.mxu0 %v1325_v9  ;;  %1300 = vmatprep.subr.bf16.mxu1 %v1325_v9 }
  0x2b   : > { %1228 = vmatpush3.bf16.msra.mxu0 %v1325_v9  ;;  %1308 = vmatpush3.bf16.msra.mxu1 %v1325_v9 }
  0x2e   : > { %1230 = vmatmul.mubr.bf16.vlgmr.msra.gmra.mrb[0].mxu0 %v1328_v10  ;;  %1262 = vmatmul.mubr.bf16.vlgmr.msra.gmra.mrb[0].mxu1 %v1329_v11 }
  0x2f   : > { %1233 = vmatprep.mubr.bf16.mxu0 %v1330_v12  ;;  %1265 = vmatprep.mubr.bf16.mxu1 %v1331_v13 }
  0x36   : > { %1234 = vmatmul.mubr.bf16.gmra.mrb[4].mxu0 %v1332_v14  ;;  %1266 = vmatmul.mubr.bf16.gmra.mrb[4].mxu1 %v1333_v15 }
  0x37   : > { %1237 = vmatprep.mubr.bf16.mxu0 %v1334_v16  ;;  %1269 = vmatprep.mubr.bf16.mxu1 %v1335_v17 }
  0x3e   : > { %1238 = vmatmul.mubr.bf16.gmra.mrb[8].mxu0 %v1336_v18  ;;  %1270 = vmatmul.mubr.bf16.gmra.mrb[8].mxu1 %v1337_v19 }
  0x3f   : > { %1241 = vmatprep.mubr.bf16.mxu0 %v1338_v20  ;;  %1273 = vmatprep.mubr.bf16.mxu1 %v1339_v21 }
  0x46   : > { %1242 = vmatmul.mubr.bf16.gmra.mrb[12].mxu0 %v1340_v22  ;;  %1274 = vmatmul.mubr.bf16.gmra.mrb[12].mxu1 %v1341_v23 }
  0x47   : > { %1245 = vmatprep.mubr.bf16.mxu0 %v1342_v24  ;;  %1277 = vmatprep.mubr.bf16.mxu1 %v1343_v25 }
  0x4e   : > { %1246 = vmatmul.mubr.bf16.gmra.mrb[16].mxu0 %v1344_v26  ;;  %1278 = vmatmul.mubr.bf16.gmra.mrb[16].mxu1 %v1345_v27 }
  0x4f   : > { %1249 = vmatprep.mubr.bf16.mxu0 %v1346_v28  ;;  %1281 = vmatprep.mubr.bf16.mxu1 %v1347_v29 }
  0x56   : > { %1250 = vmatmul.mubr.bf16.gmra.mrb[20].mxu0 %v1348_v30  ;;  %1282 = vmatmul.mubr.bf16.gmra.mrb[20].mxu1 %v1349_v31 }
  0x57   : > { %1253 = vmatprep.mubr.bf16.mxu0 %v1350_v32  ;;  %1285 = vmatprep.mubr.bf16.mxu1 %v1351_v33 }
  0x5e   : > { %1254 = vmatmul.mubr.bf16.gmra.mrb[24].mxu0 %v1352_v34  ;;  %1286 = vmatmul.mubr.bf16.gmra.mrb[24].mxu1 %v1353_v35 }
  0x5f   : > { %1257 = vmatprep.mubr.bf16.mxu0 %v1354_v36  ;;  %1289 = vmatprep.mubr.bf16.mxu1 %v1355_v37 }
  0x66   : > { %1258 = vmatmul.mubr.bf16.gmra.mrb[28].mxu0 %v1356_v38  ;;  %1290 = vmatmul.mubr.bf16.gmra.mrb[28].mxu1 %v1357_v39 }
 0x101   : > { %v1467_v40 = vpop.f32.mrb[0].mxu0  ;;  %v1469_v41 = vpop.f32.mrb[0].mxu1 }
 0x102   : > { %784 = vst [vmem:[%s1465_s11 + $0x10] sm:$0xff] %v1467_v40  ;;  %816 = vst [vmem:[%s1465_s11 + $0x110] sm:$0xff] %v1469_v41  ;;  %v1475_v42 = vpop.f32.mrb[1].mxu0  ;;  %v1477_v43 = vpop.f32.mrb[1].mxu1 }
 0x103   : > { %782 = vst [vmem:[%s1465_s11] sm:$0xff] %v1475_v42  ;;  %814 = vst [vmem:[%s1465_s11 + $0x100] sm:$0xff] %v1477_v43  ;;  %v1483_v44 = vpop.f32.mrb[2].mxu0  ;;  %v1485_v45 = vpop.f32.mrb[2].mxu1 }
 0x104   : > { %785 = vst [vmem:[%s1465_s11 + $0x18] sm:$0xff] %v1483_v44  ;;  %817 = vst [vmem:[%s1465_s11 + $0x118] sm:$0xff] %v1485_v45  ;;  %v1491_v46 = vpop.f32.mrb[3].mxu0  ;;  %v1493_v47 = vpop.f32.mrb[3].mxu1 }
 0x105   : > { %783 = vst [vmem:[%s1465_s11 + $0x8] sm:$0xff] %v1491_v46  ;;  %815 = vst [vmem:[%s1465_s11 + $0x108] sm:$0xff] %v1493_v47 }
 0x109   : > { %v1499_v48 = vpop.f32.mrb[4].mxu0  ;;  %v1501_v49 = vpop.f32.mrb[4].mxu1 }
 0x10a   : > { %788 = vst [vmem:[%s1465_s11 + $0x30] sm:$0xff] %v1499_v48  ;;  %820 = vst [vmem:[%s1465_s11 + $0x130] sm:$0xff] %v1501_v49  ;;  %v1507_v50 = vpop.f32.mrb[5].mxu0  ;;  %v1509_v51 = vpop.f32.mrb[5].mxu1 }
 0x10b   : > { %786 = vst [vmem:[%s1465_s11 + $0x20] sm:$0xff] %v1507_v50  ;;  %818 = vst [vmem:[%s1465_s11 + $0x120] sm:$0xff] %v1509_v51  ;;  %v1515_v52 = vpop.f32.mrb[6].mxu0  ;;  %v1517_v53 = vpop.f32.mrb[6].mxu1 }
 0x10c   : > { %789 = vst [vmem:[%s1465_s11 + $0x38] sm:$0xff] %v1515_v52  ;;  %821 = vst [vmem:[%s1465_s11 + $0x138] sm:$0xff] %v1517_v53  ;;  %v1523_v54 = vpop.f32.mrb[7].mxu0  ;;  %v1525_v55 = vpop.f32.mrb[7].mxu1 }
 0x10d   : > { %787 = vst [vmem:[%s1465_s11 + $0x28] sm:$0xff] %v1523_v54  ;;  %819 = vst [vmem:[%s1465_s11 + $0x128] sm:$0xff] %v1525_v55 }
 0x111   : > { %v1531_v56 = vpop.f32.mrb[8].mxu0  ;;  %v1533_v57 = vpop.f32.mrb[8].mxu1 }
 0x112   : > { %792 = vst [vmem:[%s1465_s11 + $0x50] sm:$0xff] %v1531_v56  ;;  %824 = vst [vmem:[%s1465_s11 + $0x150] sm:$0xff] %v1533_v57  ;;  %v1539_v58 = vpop.f32.mrb[9].mxu0  ;;  %v1541_v59 = vpop.f32.mrb[9].mxu1 }
 0x113   : > { %790 = vst [vmem:[%s1465_s11 + $0x40] sm:$0xff] %v1539_v58  ;;  %822 = vst [vmem:[%s1465_s11 + $0x140] sm:$0xff] %v1541_v59  ;;  %v1547_v60 = vpop.f32.mrb[10].mxu0  ;;  %v1549_v61 = vpop.f32.mrb[10].mxu1 }
 0x114   : > { %793 = vst [vmem:[%s1465_s11 + $0x58] sm:$0xff] %v1547_v60  ;;  %825 = vst [vmem:[%s1465_s11 + $0x158] sm:$0xff] %v1549_v61  ;;  %v1555_v62 = vpop.f32.mrb[11].mxu0  ;;  %v1557_v63 = vpop.f32.mrb[11].mxu1 }
 0x115   : > { %791 = vst [vmem:[%s1465_s11 + $0x48] sm:$0xff] %v1555_v62  ;;  %823 = vst [vmem:[%s1465_s11 + $0x148] sm:$0xff] %v1557_v63 }
 0x119   : > { %v1563_v0 = vpop.f32.mrb[12].mxu0  ;;  %v1565_v1 = vpop.f32.mrb[12].mxu1 }
 0x11a   : > { %796 = vst [vmem:[%s1465_s11 + $0x70] sm:$0xff] %v1563_v0  ;;  %828 = vst [vmem:[%s1465_s11 + $0x170] sm:$0xff] %v1565_v1  ;;  %v1571_v2 = vpop.f32.mrb[13].mxu0  ;;  %v1573_v3 = vpop.f32.mrb[13].mxu1 }
 0x11b   : > { %794 = vst [vmem:[%s1465_s11 + $0x60] sm:$0xff] %v1571_v2  ;;  %826 = vst [vmem:[%s1465_s11 + $0x160] sm:$0xff] %v1573_v3  ;;  %v1579_v4 = vpop.f32.mrb[14].mxu0  ;;  %v1581_v5 = vpop.f32.mrb[14].mxu1 }
 0x11c   : > { %797 = vst [vmem:[%s1465_s11 + $0x78] sm:$0xff] %v1579_v4  ;;  %829 = vst [vmem:[%s1465_s11 + $0x178] sm:$0xff] %v1581_v5  ;;  %v1587_v6 = vpop.f32.mrb[15].mxu0  ;;  %v1589_v7 = vpop.f32.mrb[15].mxu1 }
 0x11d   : > { %795 = vst [vmem:[%s1465_s11 + $0x68] sm:$0xff] %v1587_v6  ;;  %827 = vst [vmem:[%s1465_s11 + $0x168] sm:$0xff] %v1589_v7 }
 0x121   : > { %v1595_v8 = vpop.f32.mrb[16].mxu0  ;;  %v1597_v9 = vpop.f32.mrb[16].mxu1 }
 0x122   : > { %800 = vst [vmem:[%s1465_s11 + $0x90] sm:$0xff] %v1595_v8  ;;  %832 = vst [vmem:[%s1465_s11 + $0x190] sm:$0xff] %v1597_v9  ;;  %v1603_v10 = vpop.f32.mrb[17].mxu0  ;;  %v1605_v11 = vpop.f32.mrb[17].mxu1 }
 0x123   : > { %798 = vst [vmem:[%s1465_s11 + $0x80] sm:$0xff] %v1603_v10  ;;  %830 = vst [vmem:[%s1465_s11 + $0x180] sm:$0xff] %v1605_v11  ;;  %v1611_v12 = vpop.f32.mrb[18].mxu0  ;;  %v1613_v13 = vpop.f32.mrb[18].mxu1 }
 0x124   : > { %801 = vst [vmem:[%s1465_s11 + $0x98] sm:$0xff] %v1611_v12  ;;  %833 = vst [vmem:[%s1465_s11 + $0x198] sm:$0xff] %v1613_v13  ;;  %v1619_v14 = vpop.f32.mrb[19].mxu0  ;;  %v1621_v15 = vpop.f32.mrb[19].mxu1 }
 0x125   : > { %799 = vst [vmem:[%s1465_s11 + $0x88] sm:$0xff] %v1619_v14  ;;  %831 = vst [vmem:[%s1465_s11 + $0x188] sm:$0xff] %v1621_v15 }
 0x129   : > { %v1627_v16 = vpop.f32.mrb[20].mxu0  ;;  %v1629_v17 = vpop.f32.mrb[20].mxu1 }
 0x12a   : > { %1963 = vst [vmem:[#allocation2_spill] sm:$0xff] %v1629_v17  ;;  %804 = vst [vmem:[%s1465_s11 + $0xb0] sm:$0xff] %v1627_v16  ;;  %v1635_v18 = vpop.f32.mrb[21].mxu0  ;;  %v1637_v19 = vpop.f32.mrb[21].mxu1 }
 0x12b   : > { %836 = vst [vmem:[%s1465_s11 + $0x1b0] sm:$0xff] %v1629_v17  ;;  %1964 = vst [vmem:[#allocation3_spill] sm:$0xff] %v1637_v19  ;;  %v1643_v20 = vpop.f32.mrb[22].mxu0  ;;  %v1645_v21 = vpop.f32.mrb[22].mxu1 }
 0x12c   : > { %802 = vst [vmem:[%s1465_s11 + $0xa0] sm:$0xff] %v1635_v18  ;;  %834 = vst [vmem:[%s1465_s11 + $0x1a0] sm:$0xff] %v1637_v19  ;;  %v1651_v22 = vpop.f32.mrb[23].mxu0  ;;  %v1653_v23 = vpop.f32.mrb[23].mxu1 }
 0x12d   : > { %1965 = vst [vmem:[#allocation4_spill] sm:$0xff] %v1645_v21  ;;  %805 = vst [vmem:[%s1465_s11 + $0xb8] sm:$0xff] %v1643_v20 }
 0x12e   : > { %837 = vst [vmem:[%s1465_s11 + $0x1b8] sm:$0xff] %v1645_v21  ;;  %1966 = vst [vmem:[#allocation5_spill] sm:$0xff] %v1653_v23 }
 0x12f   : > { %803 = vst [vmem:[%s1465_s11 + $0xa8] sm:$0xff] %v1651_v22  ;;  %835 = vst [vmem:[%s1465_s11 + $0x1a8] sm:$0xff] %v1653_v23 }
 0x131   : > { %v1659_v24 = vpop.f32.mrb[24].mxu0  ;;  %v1661_v25 = vpop.f32.mrb[24].mxu1 }
 0x132   : > { %1967 = vst [vmem:[#allocation6_spill] sm:$0xff] %v1661_v25  ;;  %808 = vst [vmem:[%s1465_s11 + $0xd0] sm:$0xff] %v1659_v24  ;;  %v1667_v26 = vpop.f32.mrb[25].mxu0  ;;  %v1669_v27 = vpop.f32.mrb[25].mxu1 }
 0x133   : > { %840 = vst [vmem:[%s1465_s11 + $0x1d0] sm:$0xff] %v1661_v25  ;;  %1968 = vst [vmem:[#allocation7_spill] sm:$0xff] %v1669_v27  ;;  %v1675_v28 = vpop.f32.mrb[26].mxu0  ;;  %v1677_v29 = vpop.f32.mrb[26].mxu1 }
 0x134   : > { %806 = vst [vmem:[%s1465_s11 + $0xc0] sm:$0xff] %v1667_v26  ;;  %838 = vst [vmem:[%s1465_s11 + $0x1c0] sm:$0xff] %v1669_v27  ;;  %v1683_v30 = vpop.f32.mrb[27].mxu0  ;;  %v1685_v31 = vpop.f32.mrb[27].mxu1 }
 0x135   : > { %1969 = vst [vmem:[#allocation8_spill] sm:$0xff] %v1677_v29  ;;  %809 = vst [vmem:[%s1465_s11 + $0xd8] sm:$0xff] %v1675_v28 }
 0x136   : > { %841 = vst [vmem:[%s1465_s11 + $0x1d8] sm:$0xff] %v1677_v29  ;;  %1970 = vst [vmem:[#allocation9_spill] sm:$0xff] %v1685_v31 }
 0x137   : > { %807 = vst [vmem:[%s1465_s11 + $0xc8] sm:$0xff] %v1683_v30  ;;  %839 = vst [vmem:[%s1465_s11 + $0x1c8] sm:$0xff] %v1685_v31 }
 0x139   : > { %v1691_v32 = vpop.f32.mrb[28].mxu0  ;;  %v1693_v33 = vpop.f32.mrb[28].mxu1  ;;  %849 = sbr.rel (%p1170_p4) target bundleno = 321 (0x141), region = 32 }
 0x13a   : > { %1971 = vst [vmem:[#allocation10_spill] sm:$0xff] %v1693_v33  ;;  %812 = vst [vmem:[%s1465_s11 + $0xf0] sm:$0xff] %v1691_v32  ;;  %v1699_v34 = vpop.f32.mrb[29].mxu0  ;;  %v1701_v35 = vpop.f32.mrb[29].mxu1 }
 0x13b   : > { %844 = vst [vmem:[%s1465_s11 + $0x1f0] sm:$0xff] %v1693_v33  ;;  %1972 = vst [vmem:[#allocation11_spill] sm:$0xff] %v1701_v35  ;;  %v1707_v36 = vpop.f32.mrb[30].mxu0  ;;  %v1709_v37 = vpop.f32.mrb[30].mxu1  ;;  %v1366_v33 = vmov (!%p1170_p4), 0.0  }
 0x13c   : > { %810 = vst [vmem:[%s1465_s11 + $0xe0] sm:$0xff] %v1699_v34  ;;  %842 = vst [vmem:[%s1465_s11 + $0x1e0] sm:$0xff] %v1701_v35  ;;  %v1715_v38 = vpop.f32.mrb[31].mxu0  ;;  %v1717_v39 = vpop.f32.mrb[31].mxu1 }
 0x13d   : > { %1973 = vst [vmem:[#allocation12_spill] sm:$0xff] %v1709_v37  ;;  %813 = vst [vmem:[%s1465_s11 + $0xf8] sm:$0xff] %v1707_v36 }
 0x13e   : > { %845 = vst [vmem:[%s1465_s11 + $0x1f8] sm:$0xff] %v1709_v37  ;;  %1974 = vst [vmem:[#allocation13_spill] sm:$0xff] %v1717_v39 }
 0x13f   : > { %811 = vst [vmem:[%s1465_s11 + $0xe8] sm:$0xff] %v1715_v38  ;;  %843 = vst [vmem:[%s1465_s11 + $0x1e8] sm:$0xff] %v1717_v39 }
 0x140   : > { %850 = vst [vmem:[%s1938_s3] sm:$0x3] %v1366_v33 }
 0x141 PF: > { %v852_v37 = vadd.f32 %v1491_v46, %v1475_v42  ;;  %v924_v33 = vmul.f32 %v1475_v42, %v1475_v42  ;;  %v925_v17 = vmul.f32 %v1491_v46, %v1491_v46  ;;  %v929_v46 = vmul.f32 %v1523_v54, %v1523_v54 }
 0x143   : > { %v853_v35 = vadd.f32 %v1467_v40, %v852_v37 }
 0x145   : > { %v854_v29 = vadd.f32 %v1483_v44, %v853_v35  ;;  %v926_v35 = vmul.f32 %v1467_v40, %v1467_v40 }
 0x147   : > { %v855_v25 = vadd.f32 %v854_v29, %v1507_v50 }
 0x149   : > { %v856_v39 = vadd.f32 %v855_v25, %v1523_v54  ;;  %v927_v25 = vmul.f32 %v1483_v44, %v1483_v44 }
 0x14b   : > { %v857_v31 = vadd.f32 %v1499_v48, %v856_v39  ;;  %v988_v39 = vadd.f32 %v925_v17, %v924_v33  ;;  %v931_v17 = vmul.f32 %v1515_v52, %v1515_v52 }
 0x14d   : > { %v858_v27 = vadd.f32 %v1515_v52, %v857_v31  ;;  %v989_v42 = vadd.f32 %v988_v39, %v926_v35  ;;  %v932_v35 = vmul.f32 %v1539_v58, %v1539_v58  ;;  %v934_v39 = vmul.f32 %v1531_v56, %v1531_v56 }
 0x14f   : > { %v859_v21 = vadd.f32 %v858_v27, %v1539_v58  ;;  %v928_v27 = vmul.f32 %v1507_v50, %v1507_v50 }
 0x151   : > { %v860_v37 = vadd.f32 %v859_v21, %v1555_v62  ;;  %v990_v21 = vadd.f32 %v989_v42, %v927_v25  ;;  %v936_v42 = vmul.f32 %v1571_v2, %v1571_v2 }
 0x153   : > { %v861_v29 = vadd.f32 %v1531_v56, %v860_v37  ;;  %v930_v37 = vmul.f32 %v1499_v48, %v1499_v48  ;;  %v991_v19 = vadd.f32 %v990_v21, %v928_v27  ;;  %v937_v21 = vmul.f32 %v1587_v6, %v1587_v6 }
 0x155   : > { %v862_v31 = vadd.f32 %v1547_v60, %v861_v29  ;;  %v992_v33 = vadd.f32 %v991_v19, %v929_v46  ;;  %v935_v19 = vmul.f32 %v1547_v60, %v1547_v60 }
 0x157   : > { %v863_v23 = vadd.f32 %v862_v31, %v1571_v2  ;;  %v993_v29 = vadd.f32 %v992_v33, %v930_v37  ;;  %v938_v37 = vmul.f32 %v1563_v0, %v1563_v0 }
 0x159   : > { %v864_v40 = vadd.f32 %v863_v23, %v1587_v6  ;;  %v933_v23 = vmul.f32 %v1555_v62, %v1555_v62  ;;  %v994_v25 = vadd.f32 %v993_v29, %v931_v17  ;;  %v939_v17 = vmul.f32 %v1579_v4, %v1579_v4 }
 0x15a   : > { %v941_v29 = vmul.f32 %v1619_v14, %v1619_v14 }
 0x15b   : > { %v865_v44 = vadd.f32 %v1563_v0, %v864_v40  ;;  %v995_v31 = vadd.f32 %v994_v25, %v932_v35 }
 0x15d   : > { %v866_v50 = vadd.f32 %v1579_v4, %v865_v44  ;;  %v996_v27 = vadd.f32 %v995_v31, %v933_v23  ;;  %v942_v23 = vmul.f32 %v1595_v8, %v1595_v8  ;;  %v944_v31 = vmul.f32 %v1635_v18, %v1635_v18 }
 0x15f   : > { %v867_v54 = vadd.f32 %v866_v50, %v1603_v10  ;;  %v997_v46 = vadd.f32 %v996_v27, %v934_v39  ;;  %v940_v50 = vmul.f32 %v1603_v10, %v1603_v10 }
 0x161   : > { %v868_v48 = vadd.f32 %v867_v54, %v1619_v14  ;;  %v998_v40 = vadd.f32 %v997_v46, %v935_v19  ;;  %v945_v19 = vmul.f32 %v1651_v22, %v1651_v22  ;;  %v947_v46 = vmul.f32 %v1643_v20, %v1643_v20 }
 0x163   : > { %v869_v52 = vadd.f32 %v1595_v8, %v868_v48  ;;  %v999_v44 = vadd.f32 %v998_v40, %v936_v42  ;;  %v943_v48 = vmul.f32 %v1611_v12, %v1611_v12 }
 0x165   : > { %v870_v58 = vadd.f32 %v1611_v12, %v869_v52  ;;  %v1000_v33 = vadd.f32 %v999_v44, %v937_v21  ;;  %v948_v21 = vmul.f32 %v1667_v26, %v1667_v26  ;;  %v950_v44 = vmul.f32 %v1659_v24, %v1659_v24 }
 0x167   : > { %v871_v62 = vadd.f32 %v870_v58, %v1635_v18  ;;  %v1001_v35 = vadd.f32 %v1000_v33, %v938_v37  ;;  %v946_v58 = vmul.f32 %v1627_v16, %v1627_v16 }
 0x169   : > { %v872_v56 = vadd.f32 %v871_v62, %v1651_v22  ;;  %v1002_v54 = vadd.f32 %v1001_v35, %v939_v17  ;;  %v951_v17 = vmul.f32 %v1675_v28, %v1675_v28  ;;  %v953_v35 = vmul.f32 %v1715_v38, %v1715_v38 }
 0x16b   : > { %v873_v60 = vadd.f32 %v1627_v16, %v872_v56  ;;  %v1003_v25 = vadd.f32 %v1002_v54, %v940_v50  ;;  %v949_v56 = vmul.f32 %v1683_v30, %v1683_v30 }
 0x16d   : > { %v874_v2 = vadd.f32 %v1643_v20, %v873_v60  ;;  %v1004_v39 = vadd.f32 %v1003_v25, %v941_v29  ;;  %v954_v29 = vmul.f32 %v1691_v32, %v1691_v32  ;;  %v956_v25 = vmul.f32 %v1477_v43, %v1477_v43 }
 0x16f   : > { %v875_v6 = vadd.f32 %v874_v2, %v1667_v26  ;;  %v1005_v52 = vadd.f32 %v1004_v39, %v942_v23  ;;  %v952_v2 = vmul.f32 %v1699_v34, %v1699_v34 }
 0x171   : > { %v876_v0 = vadd.f32 %v875_v6, %v1683_v30  ;;  %v1006_v27 = vadd.f32 %v1005_v52, %v943_v48  ;;  %v957_v48 = vmul.f32 %v1493_v47, %v1493_v47  ;;  %v959_v52 = vmul.f32 %v1485_v45, %v1485_v45 }
 0x173   : > { %v877_v4 = vadd.f32 %v1659_v24, %v876_v0  ;;  %v1007_v42 = vadd.f32 %v1006_v27, %v944_v31  ;;  %v955_v0 = vmul.f32 %v1707_v36, %v1707_v36 }
 0x175   : > { %v878_v10 = vadd.f32 %v1675_v28, %v877_v4  ;;  %v1008_v62 = vadd.f32 %v1007_v42, %v945_v19  ;;  %v960_v19 = vmul.f32 %v1509_v51, %v1509_v51  ;;  %v962_v42 = vmul.f32 %v1501_v49, %v1501_v49 }
 0x177   : > { %v879_v14 = vadd.f32 %v878_v10, %v1699_v34  ;;  %v1009_v40 = vadd.f32 %v1008_v62, %v946_v58  ;;  %v958_v10 = vmul.f32 %v1469_v41, %v1469_v41 }
 0x179   : > { %v880_v8 = vadd.f32 %v879_v14, %v1715_v38  ;;  %v1010_v37 = vadd.f32 %v1009_v40, %v947_v46  ;;  %v963_v46 = vmul.f32 %v1517_v53, %v1517_v53  ;;  %v965_v40 = vmul.f32 %v1557_v63, %v1557_v63 }
 0x17b   : > { %v881_v12 = vadd.f32 %v1691_v32, %v880_v8  ;;  %v1011_v60 = vadd.f32 %v1010_v37, %v948_v21  ;;  %v961_v8 = vmul.f32 %v1525_v55, %v1525_v55 }
 0x17d   : > { %v882_v18 = vadd.f32 %v1707_v36, %v881_v12  ;;  %v1012_v33 = vadd.f32 %v1011_v60, %v949_v56  ;;  %v966_v56 = vmul.f32 %v1533_v57, %v1533_v57  ;;  %v968_v60 = vmul.f32 %v1573_v3, %v1573_v3 }
 0x17f   : > { %v883_v22 = vadd.f32 %v882_v18, %v1477_v43  ;;  %v1013_v50 = vadd.f32 %v1012_v33, %v950_v44  ;;  %v964_v18 = vmul.f32 %v1541_v59, %v1541_v59  ;;  %v969_v33 = vmul.f32 %v1589_v7, %v1589_v7 }
 0x181   : > { %v884_v16 = vadd.f32 %v883_v22, %v1493_v47  ;;  %v1014_v6 = vadd.f32 %v1013_v50, %v951_v17  ;;  %v970_v50 = vmul.f32 %v1565_v1, %v1565_v1 }
 0x183   : > { %v885_v20 = vadd.f32 %v1469_v41, %v884_v16  ;;  %v1015_v54 = vadd.f32 %v1014_v6, %v952_v2  ;;  %v967_v16 = vmul.f32 %v1549_v61, %v1549_v61  ;;  %v971_v6 = vmul.f32 %v1581_v5, %v1581_v5 }
 0x185   : > { %v886_v26 = vadd.f32 %v1485_v45, %v885_v20  ;;  %v1016_v23 = vadd.f32 %v1015_v54, %v953_v35  ;;  %v972_v54 = vmul.f32 %v1605_v11, %v1605_v11 }
 0x187   : > { %v887_v30 = vadd.f32 %v886_v26, %v1509_v51  ;;  %v1017_v4 = vadd.f32 %v1016_v23, %v954_v29  ;;  %v973_v23 = vmul.f32 %v1621_v15, %v1621_v15 }
 0x189   : > { %v888_v24 = vadd.f32 %v887_v30, %v1525_v55  ;;  %v1018_v39 = vadd.f32 %v1017_v4, %v955_v0  ;;  %v974_v4 = vmul.f32 %v1597_v9, %v1597_v9 }
 0x18b   : > { %v889_v28 = vadd.f32 %v1501_v49, %v888_v24  ;;  %v1019_v31 = vadd.f32 %v1018_v39, %v956_v25  ;;  %v975_v39 = vmul.f32 %v1613_v13, %v1613_v13 }
 0x18d   : > { %v890_v34 = vadd.f32 %v1517_v53, %v889_v28  ;;  %v1020_v14 = vadd.f32 %v1019_v31, %v957_v48 }
 0x18f   : > { %v891_v38 = vadd.f32 %v890_v34, %v1541_v59  ;;  %v1021_v27 = vadd.f32 %v1020_v14, %v958_v10 }
 0x191   : > { %v892_v32 = vadd.f32 %v891_v38, %v1557_v63  ;;  %v1022_v58 = vadd.f32 %v1021_v27, %v959_v52  ;;  %v1975_v63 = vld [vmem:[#allocation3_spill] sm:$0xff] }
 0x192   : > { %v976_v31 = vmul.f32 %v1975_v63, %v1975_v63 }
 0x193   : > { %v893_v36 = vadd.f32 %v1533_v57, %v892_v32  ;;  %v1023_v12 = vadd.f32 %v1022_v58, %v960_v19  ;;  %v1976_v57 = vld [vmem:[#allocation5_spill] sm:$0xff] }
 0x194   : > { %v977_v14 = vmul.f32 %v1976_v57, %v1976_v57 }
 0x195   : > { %v894_v43 = vadd.f32 %v1549_v61, %v893_v36  ;;  %v1024_v62 = vadd.f32 %v1023_v12, %v961_v8  ;;  %v1977_v61 = vld [vmem:[#allocation2_spill] sm:$0xff] }
 0x196   : > { %v978_v27 = vmul.f32 %v1977_v61, %v1977_v61 }
 0x197   : > { %v895_v47 = vadd.f32 %v894_v43, %v1573_v3  ;;  %v1025_v21 = vadd.f32 %v1024_v62, %v962_v42  ;;  %v1978_v3 = vld [vmem:[#allocation4_spill] sm:$0xff] }
 0x198   : > { %v979_v58 = vmul.f32 %v1978_v3, %v1978_v3  ;;  %v1986_v42 = vld [vmem:[#allocation12_spill] sm:$0xff] }
 0x199   : > { %v896_v41 = vadd.f32 %v895_v47, %v1589_v7  ;;  %v1026_v22 = vadd.f32 %v1025_v21, %v963_v46  ;;  %v1979_v7 = vld [vmem:[#allocation7_spill] sm:$0xff] }
 0x19b   : > { %v897_v45 = vadd.f32 %v1565_v1, %v896_v41  ;;  %v1027_v37 = vadd.f32 %v1026_v22, %v964_v18  ;;  %v1980_v1 = vld [vmem:[#allocation9_spill] sm:$0xff] }
 0x19d   : > { %v898_v51 = vadd.f32 %v1581_v5, %v897_v45  ;;  %v1028_v44 = vadd.f32 %v1027_v37, %v965_v40  ;;  %v1981_v5 = vld [vmem:[#allocation6_spill] sm:$0xff]  ;;  %v980_v45 = vmul.f32 %v1979_v7, %v1979_v7 }
 0x19f   : > { %v899_v55 = vadd.f32 %v898_v51, %v1605_v11  ;;  %v1029_v20 = vadd.f32 %v1028_v44, %v966_v56  ;;  %v1982_v11 = vld [vmem:[#allocation8_spill] sm:$0xff]  ;;  %v981_v51 = vmul.f32 %v1980_v1, %v1980_v1 }
 0x1a1   : > { %v900_v49 = vadd.f32 %v899_v55, %v1621_v15  ;;  %v1030_v26 = vadd.f32 %v1029_v20, %v967_v16  ;;  %v1983_v15 = vld [vmem:[#allocation11_spill] sm:$0xff]  ;;  %v982_v55 = vmul.f32 %v1981_v5, %v1981_v5  ;;  %v851_v20 = vld [vmem:[%s1938_s3] sm:$0x1] }
 0x1a3   : > { %v901_v53 = vadd.f32 %v1597_v9, %v900_v49  ;;  %v1031_v30 = vadd.f32 %v1030_v26, %v968_v60  ;;  %v1984_v9 = vld [vmem:[#allocation13_spill] sm:$0xff]  ;;  %v983_v49 = vmul.f32 %v1982_v11, %v1982_v11 }
 0x1a5   : > { %v902_v59 = vadd.f32 %v1613_v13, %v901_v53  ;;  %v1032_v24 = vadd.f32 %v1031_v30, %v969_v33  ;;  %v1985_v13 = vld [vmem:[#allocation10_spill] sm:$0xff]  ;;  %v984_v53 = vmul.f32 %v1983_v15, %v1983_v15 }
 0x1a7   : > { %v903_v17 = vadd.f32 %v902_v59, %v1975_v63  ;;  %v1033_v28 = vadd.f32 %v1032_v24, %v970_v50  ;;  %v985_v59 = vmul.f32 %v1984_v9, %v1984_v9 }
 0x1a9   : > { %v904_v2 = vadd.f32 %v903_v17, %v1976_v57  ;;  %v1034_v34 = vadd.f32 %v1033_v28, %v971_v6  ;;  %v986_v17 = vmul.f32 %v1985_v13, %v1985_v13  ;;  %v987_v57 = vmul.f32 %v1986_v42, %v1986_v42 }
 0x1ab   : > { %v905_v35 = vadd.f32 %v1977_v61, %v904_v2  ;;  %v1035_v38 = vadd.f32 %v1034_v34, %v972_v54 }
 0x1ad   : > { %v906_v29 = vadd.f32 %v1978_v3, %v905_v35  ;;  %v1036_v32 = vadd.f32 %v1035_v38, %v973_v23 }
 0x1af   : > { %v907_v0 = vadd.f32 %v906_v29, %v1979_v7  ;;  %v1037_v36 = vadd.f32 %v1036_v32, %v974_v4  ;;  %v923_v29 = vld [vmem:[%s1938_s3 + $0x1] sm:$0x1] }
 0x1b1   : > { %v908_v25 = vadd.f32 %v907_v0, %v1980_v1  ;;  %v1038_v43 = vadd.f32 %v1037_v36, %v975_v39 }
 0x1b3   : > { %v909_v48 = vadd.f32 %v1981_v5, %v908_v25  ;;  %v1039_v47 = vadd.f32 %v1038_v43, %v976_v31 }
 0x1b5   : > { %v910_v10 = vadd.f32 %v1982_v11, %v909_v48  ;;  %v1040_v41 = vadd.f32 %v1039_v47, %v977_v14 }
 0x1b7   : > { %v911_v52 = vadd.f32 %v910_v10, %v1983_v15  ;;  %v1041_v46 = vadd.f32 %v1040_v41, %v978_v27 }
 0x1b9   : > { %v912_v19 = vadd.f32 %v911_v52, %v1984_v9  ;;  %v1042_v18 = vadd.f32 %v1041_v46, %v979_v58 }
 0x1bb   : > { %v913_v8 = vadd.f32 %v1985_v13, %v912_v19  ;;  %v1043_v40 = vadd.f32 %v1042_v18, %v980_v45 }
 0x1bd   : > { %v914_v12 = vadd.f32 %v1986_v42, %v913_v8  ;;  %v1044_v56 = vadd.f32 %v1043_v40, %v981_v51 }
 0x1bf   : > { %v915_v62 = vrot.slane %v914_v12, 4  ;;  %v1045_v16 = vadd.f32 %v1044_v56, %v982_v55 }
 0x1c1   : > { %v916_v21 = vadd.f32 %v915_v62, %v914_v12  ;;  %v1046_v60 = vadd.f32 %v1045_v16, %v983_v49 }
 0x1c3   : > { %v917_v22 = vrot.slane %v916_v21, 2  ;;  %v1047_v33 = vadd.f32 %v1046_v60, %v984_v53 }
 0x1c5   : > { %v918_v37 = vadd.f32 %v917_v22, %v916_v21  ;;  %v1048_v2 = vadd.f32 %v1047_v33, %v985_v59 }
 0x1c7   : > { %v919_v44 = vrot.slane %v918_v37, 1  ;;  %v1049_v50 = vadd.f32 %v1048_v2, %v986_v17 }
 0x1c9   : > { %v920_v63 = vadd.f32 %v919_v44, %v918_v37  ;;  %v1050_v30 = vadd.f32 %v1049_v50, %v987_v57 }
 0x1cb   : > { %v921_v26 = vadd.f32 %v920_v63, %v851_v20  ;;  %v1051_v61 = vrot.slane %v1050_v30, 4 }
 0x1cd   : > { %922 = vst [vmem:[%s1938_s3] sm:$0x1] %v921_v26  ;;  %v1052_v35 = vadd.f32 %v1051_v61, %v1050_v30 }
 0x1cf   : > { %v1053_v6 = vrot.slane %v1052_v35, 2 }
 0x1d1   : > { %v1054_v24 = vadd.f32 %v1053_v6, %v1052_v35 }
 0x1d3   : > { %v1055_v3 = vrot.slane %v1054_v24, 1 }
 0x1d5   : > { %v1056_v54 = vadd.f32 %v1055_v3, %v1054_v24 }
 0x1d7   : > { %v1057_v28 = vadd.f32 %v1056_v54, %v923_v29 }
 0x1d9   : > { %1058 = vst [vmem:[%s1938_s3 + $0x1] sm:$0x1] %v1057_v28 }
 0x1da PF: > { %s14_s12 = sadd.s32 1, %s1364_s12  }
 0x1db   : > { %p11_p5 = scmp.ge.s32.totalorder %s14_s12, 4  }
 0x1dd   :  { %13 = sbr.rel (!%p11_p5) target bundleno = 1 (0x1), region = 70 }

// kernel: block_forward.5
= control target key start
LH: loop header
LB: loop body
LE: loop exit
PB: predicated region body
PF: predicated region fallthrough
CT: control target
= control target key end

     0   :  { %s5281_s18 = smov 0   ;;  %s6261_s0 = inlined_call_operand.vmem [shape: f32[4,16,16,128], index: 0, kind: input, shape index: {}]   ;;  %s6262_s1 = inlined_call_operand.vmem [shape: f32[1,128], index: 1, kind: input, shape index: {}]   ;;  %s6263_s2 = inlined_call_operand.vmem [shape: f32[1,128], index: 2, kind: input, shape index: {}]   ;;  %s6264_s3 = inlined_call_operand.vmem [shape: bf16[3,3,128,128], index: 3, kind: input, shape index: {}]   ;;  %s6265_s4 = inlined_call_operand.vmem [shape: f32[4,256,128], index: 4, kind: output, shape index: {0}]   ;;  %s6266_s5 = inlined_call_operand.vmem [shape: f32[2,128], index: 5, kind: output, shape index: {1}]  }
   0x1 LB: > { %s5287_s19 = sadd.s32 4294967295, %s5247_s18   ;;  %p3954_p0 = scmp.ge.s32.totalorder %s5247_s18, 1  ;;  %s5247_s18 = sphi %s5281_s18, %s16_s18  }
   0x2   : > { %p185_p1 = scmp.lt.s32.totalorder %s5247_s18, 5 }
   0x4   : > { %p186_p2 = pnand %p3954_p0, %p185_p1 }
   0x5   : > { %p213_p3 = scmp.lt.s32.totalorder (!%p186_p2), %s5287_s19, 3  ;;  %p3959_p4 = scmp.ne.s32.totalorder (!%p186_p2), %s5287_s19, 0 }
   0x6   : > { %189 = sbr.rel (%p186_p2) target bundleno = 662 (0x296), region = 36 }
   0xd   : > { %s214_s20 = scalar_select %p213_p3, %s5287_s19, 3 }
   0xe   : > { %227 = sbr.rel (%p3959_p4) target bundleno = 51 (0x33), region = 40  ;;  %v5249_v0 = vmov (!%p3959_p4), 0.0  }
   0xf   : > { %s4165_s21 = sshll.u32 %s214_s20, 8  ;;  %228 = vst [vmem:[#allocation2] sm:$0xff] (!%p3959_p4), %v5249_v0  ;;  %229 = vst [vmem:[#allocation2 + $0x8] sm:$0xff] (!%p3959_p4), %v5249_v0 }
  0x10   : > { %s5296_s24 = scalar_lea.vmem %s6261_s0, %s4165_s21  ;;  %s5301_s27 = scalar_lea.vmem %s6265_s4, %s4165_s21  ;;  %230 = vst [vmem:[#allocation2 + $0x10] sm:$0xff] (!%p3959_p4), %v5249_v0  ;;  %231 = vst [vmem:[#allocation2 + $0x18] sm:$0xff] (!%p3959_p4), %v5249_v0 }
  0x11   : > { %232 = vst [vmem:[#allocation2 + $0x20] sm:$0xff] (!%p3959_p4), %v5249_v0  ;;  %233 = vst [vmem:[#allocation2 + $0x28] sm:$0xff] (!%p3959_p4), %v5249_v0 }
  0x12   : > { %234 = vst [vmem:[#allocation2 + $0x30] sm:$0xff] (!%p3959_p4), %v5249_v0  ;;  %235 = vst [vmem:[#allocation2 + $0x38] sm:$0xff] (!%p3959_p4), %v5249_v0 }
  0x13   : > { %236 = vst [vmem:[#allocation2 + $0x40] sm:$0xff] (!%p3959_p4), %v5249_v0  ;;  %237 = vst [vmem:[#allocation2 + $0x48] sm:$0xff] (!%p3959_p4), %v5249_v0 }
  0x14   : > { %238 = vst [vmem:[#allocation2 + $0x50] sm:$0xff] (!%p3959_p4), %v5249_v0  ;;  %239 = vst [vmem:[#allocation2 + $0x58] sm:$0xff] (!%p3959_p4), %v5249_v0 }
  0x15   : > { %240 = vst [vmem:[#allocation2 + $0x60] sm:$0xff] %v5249_v0  ;;  %241 = vst [vmem:[#allocation2 + $0x68] sm:$0xff] %v5249_v0 }
  0x16   : > { %242 = vst [vmem:[#allocation2 + $0x70] sm:$0xff] %v5249_v0  ;;  %243 = vst [vmem:[#allocation2 + $0x78] sm:$0xff] %v5249_v0 }
  0x17   : > { %244 = vst [vmem:[#allocation2 + $0x80] sm:$0xff] %v5249_v0  ;;  %245 = vst [vmem:[#allocation2 + $0x88] sm:$0xff] %v5249_v0 }
  0x18   : > { %246 = vst [vmem:[#allocation2 + $0x90] sm:$0xff] %v5249_v0  ;;  %247 = vst [vmem:[#allocation2 + $0x98] sm:$0xff] %v5249_v0 }
  0x19   : > { %248 = vst [vmem:[#allocation2 + $0xa0] sm:$0xff] %v5249_v0  ;;  %249 = vst [vmem:[#allocation2 + $0xa8] sm:$0xff] %v5249_v0 }
  0x1a   : > { %250 = vst [vmem:[#allocation2 + $0xb0] sm:$0xff] %v5249_v0  ;;  %251 = vst [vmem:[#allocation2 + $0xb8] sm:$0xff] %v5249_v0 }
  0x1b   : > { %252 = vst [vmem:[#allocation2 + $0xc0] sm:$0xff] %v5249_v0  ;;  %253 = vst [vmem:[#allocation2 + $0xc8] sm:$0xff] %v5249_v0 }
  0x1c   : > { %254 = vst [vmem:[#allocation2 + $0xd0] sm:$0xff] %v5249_v0  ;;  %255 = vst [vmem:[#allocation2 + $0xd8] sm:$0xff] %v5249_v0 }
  0x1d   : > { %256 = vst [vmem:[#allocation2 + $0xe0] sm:$0xff] %v5249_v0  ;;  %257 = vst [vmem:[#allocation2 + $0xe8] sm:$0xff] %v5249_v0 }
  0x1e   : > { %258 = vst [vmem:[#allocation2 + $0xf0] sm:$0xff] %v5249_v0  ;;  %259 = vst [vmem:[#allocation2 + $0xf8] sm:$0xff] %v5249_v0 }
  0x1f   : > { %260 = vst [vmem:[#allocation2 + $0x100] sm:$0xff] %v5249_v0  ;;  %261 = vst [vmem:[#allocation2 + $0x108] sm:$0xff] %v5249_v0 }
  0x20   : > { %262 = vst [vmem:[#allocation2 + $0x110] sm:$0xff] %v5249_v0  ;;  %263 = vst [vmem:[#allocation2 + $0x118] sm:$0xff] %v5249_v0 }
  0x21   : > { %264 = vst [vmem:[#allocation2 + $0x120] sm:$0xff] %v5249_v0  ;;  %265 = vst [vmem:[#allocation2 + $0x128] sm:$0xff] %v5249_v0 }
  0x22   : > { %266 = vst [vmem:[#allocation2 + $0x130] sm:$0xff] %v5249_v0  ;;  %267 = vst [vmem:[#allocation2 + $0x138] sm:$0xff] %v5249_v0 }
  0x23   : > { %268 = vst [vmem:[#allocation2 + $0x140] sm:$0xff] %v5249_v0  ;;  %269 = vst [vmem:[#allocation2 + $0x148] sm:$0xff] %v5249_v0 }
  0x24   : > { %270 = vst [vmem:[#allocation2 + $0x150] sm:$0xff] %v5249_v0  ;;  %271 = vst [vmem:[#allocation2 + $0x158] sm:$0xff] %v5249_v0 }
  0x25   : > { %272 = vst [vmem:[#allocation2 + $0x160] sm:$0xff] %v5249_v0  ;;  %273 = vst [vmem:[#allocation2 + $0x168] sm:$0xff] %v5249_v0 }
  0x26   : > { %274 = vst [vmem:[#allocation2 + $0x170] sm:$0xff] %v5249_v0  ;;  %275 = vst [vmem:[#allocation2 + $0x178] sm:$0xff] %v5249_v0 }
  0x27   : > { %276 = vst [vmem:[#allocation2 + $0x180] sm:$0xff] %v5249_v0  ;;  %277 = vst [vmem:[#allocation2 + $0x188] sm:$0xff] %v5249_v0 }
  0x28   : > { %278 = vst [vmem:[#allocation2 + $0x190] sm:$0xff] %v5249_v0  ;;  %279 = vst [vmem:[#allocation2 + $0x198] sm:$0xff] %v5249_v0 }
  0x29   : > { %280 = vst [vmem:[#allocation2 + $0x1a0] sm:$0xff] %v5249_v0  ;;  %281 = vst [vmem:[#allocation2 + $0x1a8] sm:$0xff] %v5249_v0 }
  0x2a   : > { %282 = vst [vmem:[#allocation2 + $0x1b0] sm:$0xff] %v5249_v0  ;;  %283 = vst [vmem:[#allocation2 + $0x1b8] sm:$0xff] %v5249_v0 }
  0x2b   : > { %284 = vst [vmem:[#allocation2 + $0x1c0] sm:$0xff] %v5249_v0  ;;  %285 = vst [vmem:[#allocation2 + $0x1c8] sm:$0xff] %v5249_v0 }
  0x2c   : > { %286 = vst [vmem:[#allocation2 + $0x1d0] sm:$0xff] %v5249_v0  ;;  %287 = vst [vmem:[#allocation2 + $0x1d8] sm:$0xff] %v5249_v0 }
  0x2d   : > { %288 = vst [vmem:[#allocation2 + $0x1e0] sm:$0xff] %v5249_v0  ;;  %289 = vst [vmem:[#allocation2 + $0x1e8] sm:$0xff] %v5249_v0 }
  0x2e   : > { %290 = vst [vmem:[#allocation2 + $0x1f0] sm:$0xff] %v5249_v0  ;;  %291 = vst [vmem:[#allocation2 + $0x1f8] sm:$0xff] %v5249_v0 }
  0x2f   : > { %292 = vst [vmem:[#allocation2 + $0x200] sm:$0xff] %v5249_v0  ;;  %293 = vst [vmem:[#allocation2 + $0x208] sm:$0xff] %v5249_v0 }
  0x30   : > { %294 = vst [vmem:[#allocation2 + $0x210] sm:$0xff] %v5249_v0  ;;  %295 = vst [vmem:[#allocation2 + $0x218] sm:$0xff] %v5249_v0 }
  0x31   : > { %296 = vst [vmem:[#allocation2 + $0x220] sm:$0xff] %v5249_v0  ;;  %297 = vst [vmem:[#allocation2 + $0x228] sm:$0xff] %v5249_v0 }
  0x32   : > { %298 = vst [vmem:[#allocation2 + $0x230] sm:$0xff] %v5249_v0  ;;  %299 = vst [vmem:[#allocation2 + $0x238] sm:$0xff] %v5249_v0 }
  0x33 PF: > { %v5161_v1 = vld [vmem:[%s6264_s3] sm:$0xff]   ;;  %v5163_v3 = vld [vmem:[%s6264_s3 + $0x8] sm:$0xff]   ;;  %v5165_v5 = vld [vmem:[%s6264_s3 + $0x10] sm:$0xff]  }
  0x34   : > { %v5162_v2 = vld [vmem:[%s6264_s3 + $0x100] sm:$0xff]   ;;  %4383 = vmatprep.subr.bf16.mxu1 %v5161_v1  ;;  %v5164_v4 = vld [vmem:[%s6264_s3 + $0x108] sm:$0xff]   ;;  %v5166_v6 = vld [vmem:[%s6264_s3 + $0x110] sm:$0xff]  }
  0x35   : > { %4575 = vmatprep.subr.bf16.mxu0 %v5162_v2  ;;  %4384 = vmatpush3.bf16.msra.mxu1 %v5161_v1  ;;  %v5167_v7 = vld [vmem:[%s6264_s3 + $0x18] sm:$0xff]   ;;  %v5169_v9 = vld [vmem:[%s6264_s3 + $0x20] sm:$0xff]   ;;  %v5171_v11 = vld [vmem:[%s6264_s3 + $0x28] sm:$0xff]  }
  0x36   : > { %4576 = vmatpush3.bf16.msra.mxu0 %v5162_v2  ;;  %4385 = vmatprep.subr.bf16.mxu1 %v5163_v3  ;;  %v5168_v8 = vld [vmem:[%s6264_s3 + $0x118] sm:$0xff]   ;;  %v5170_v10 = vld [vmem:[%s6264_s3 + $0x120] sm:$0xff]   ;;  %v5172_v12 = vld [vmem:[%s6264_s3 + $0x128] sm:$0xff]  }
  0x37   : > { %4577 = vmatprep.subr.bf16.mxu0 %v5164_v4  ;;  %v475_v13 = vld [vmem:[#allocation2 + $0x7] sm:$0xff]  ;;  %v476_v14 = vld [vmem:[#allocation2 + $0xf] sm:$0xff]  ;;  %v5419_v18 = vld [vmem:[%s6262_s1] ss:$0 sm:$0xff] }
  0x38   : > { %v300_v15 = vld [vmem:[%s5296_s24] sm:$0xff]  ;;  %v507_v16 = vpack.c.bf16 %v476_v14, %v475_v13  ;;  %v301_v17 = vld [vmem:[%s5296_s24 + $0x8] sm:$0xff]  ;;  %v302_v22 = vld [vmem:[%s5296_s24 + $0x10] sm:$0xff] }
  0x39   : > { %4386 = vmatpush3.bf16.msra.mxu1 %v5163_v3  ;;  %v5424_v19 = vld [vmem:[%s6263_s2] ss:$0 sm:$0xff]  ;;  %v339_v20 = vmul.f32 %v5419_v18, %v300_v15  ;;  %v340_v21 = vmul.f32 %v5419_v18, %v301_v17  ;;  %v303_v23 = vld [vmem:[%s5296_s24 + $0x18] sm:$0xff]  ;;  %v5173_v24 = vld [vmem:[%s6264_s3 + $0x30] sm:$0xff]   ;;  %v341_v27 = vmul.f32 %v5419_v18, %v302_v22 }
  0x3a   : > { %4578 = vmatpush3.bf16.msra.mxu0 %v5164_v4  ;;  %4387 = vmatprep.subr.bf16.mxu1 %v5165_v5  ;;  %v5174_v28 = vld [vmem:[%s6264_s3 + $0x130] sm:$0xff]   ;;  %v342_v29 = vmul.f32 %v5419_v18, %v303_v23  ;;  %v304_v30 = vld [vmem:[%s5296_s24 + $0x20] sm:$0xff]  ;;  %v305_v34 = vld [vmem:[%s5296_s24 + $0x28] sm:$0xff] }
  0x3b   : > { %4579 = vmatprep.subr.bf16.mxu0 %v5166_v6  ;;  %4399 = vmatprep.mubr.bf16.mxu1 %v507_v16  ;;  %v378_v25 = vadd.f32 %v5424_v19, %v339_v20  ;;  %v379_v26 = vadd.f32 %v5424_v19, %v340_v21  ;;  %v380_v33 = vadd.f32 %v5424_v19, %v341_v27  ;;  %v306_v38 = vld [vmem:[%s5296_s24 + $0x30] sm:$0xff]  ;;  %v307_v39 = vld [vmem:[%s5296_s24 + $0x38] sm:$0xff]  ;;  %v308_v51 = vld [vmem:[%s5296_s24 + $0x40] sm:$0xff] }
  0x3c   : > { %v343_v35 = vmul.f32 %v5419_v18, %v304_v30  ;;  %v381_v36 = vadd.f32 %v5424_v19, %v342_v29  ;;  %v344_v37 = vmul.f32 %v5419_v18, %v305_v34  ;;  %v5175_v40 = vld [vmem:[%s6264_s3 + $0x38] sm:$0xff]   ;;  %v345_v44 = vmul.f32 %v5419_v18, %v306_v38  ;;  %v309_v52 = vld [vmem:[%s5296_s24 + $0x48] sm:$0xff]  ;;  %v5177_v53 = vld [vmem:[%s6264_s3 + $0x40] sm:$0xff]  }
  0x3d   : > { %4388 = vmatpush3.bf16.msra.mxu1 %v5165_v5  ;;  %v410_v31 = vmax.f32 %v378_v25, 0.0  ;;  %v411_v32 = vmax.f32 %v379_v26, 0.0  ;;  %v412_v42 = vmax.f32 %v380_v33, 0.0  ;;  %v5176_v45 = vld [vmem:[%s6264_s3 + $0x138] sm:$0xff]   ;;  %v346_v48 = vmul.f32 %v5419_v18, %v307_v39  ;;  %v310_v57 = vld [vmem:[%s5296_s24 + $0x50] sm:$0xff]  ;;  %v5178_v62 = vld [vmem:[%s6264_s3 + $0x140] sm:$0xff]  }
  0x3e   : > { %4580 = vmatpush3.bf16.msra.mxu0 %v5166_v6  ;;  %4389 = vmatprep.subr.bf16.mxu1 %v5167_v7  ;;  %v382_v43 = vadd.f32 %v5424_v19, %v343_v35  ;;  %v413_v46 = vmax.f32 %v381_v36, 0.0  ;;  %v383_v47 = vadd.f32 %v5424_v19, %v344_v37  ;;  %v5462_v50 = vadd.f32 %v5424_v19, %v345_v44  ;;  %v311_v60 = vld [vmem:[%s5296_s24 + $0x58] sm:$0xff]  ;;  %v312_v5 = vld [vmem:[%s5296_s24 + $0x60] sm:$0xff]  ;;  %v313_v6 = vld [vmem:[%s5296_s24 + $0x68] sm:$0xff] }
  0x3f   : > { %4581 = vmatprep.subr.bf16.mxu0 %v5168_v8  ;;  %443 = vst [vmem:[#allocation2 + $0x28] sm:$0xff] %v410_v31  ;;  %444 = vst [vmem:[#allocation2 + $0x30] sm:$0xff] %v411_v32  ;;  %v5451_v41 = vpack.c.bf16 %v411_v32, %v410_v31  ;;  %v5470_v55 = vadd.f32 %v5424_v19, %v346_v48  ;;  %v347_v56 = vmul.f32 %v5419_v18, %v308_v51  ;;  %v5179_v14 = vld [vmem:[%s6264_s3 + $0x148] sm:$0xff]   ;;  %v314_v20 = vld [vmem:[%s5296_s24 + $0x70] sm:$0xff] }
  0x40   : > { %445 = vst [vmem:[#allocation2 + $0x48] sm:$0xff] %v412_v42  ;;  %v414_v49 = vmax.f32 %v382_v43, 0.0  ;;  %446 = vst [vmem:[#allocation2 + $0x50] sm:$0xff] %v413_v46  ;;  %v415_v54 = vmax.f32 %v383_v47, 0.0  ;;  %v416_v58 = vmax.f32 %v5462_v50, 0.0  ;;  %v348_v59 = vmul.f32 %v5419_v18, %v309_v52  ;;  %v5180_v27 = vld [vmem:[%s6264_s3 + $0x48] sm:$0xff]  }
  0x41   : > { %4390 = vmatpush3.bf16.msra.mxu1 %v5167_v7  ;;  %4591 = vmatprep.mubr.bf16.mxu0 %v5451_v41  ;;  %v349_v61 = vmul.f32 %v5419_v18, %v310_v57  ;;  %v417_v63 = vmax.f32 %v5470_v55, 0.0  ;;  %v5483_v0 = vadd.f32 %v5424_v19, %v347_v56  ;;  %v350_v1 = vmul.f32 %v5419_v18, %v311_v60  ;;  %v5183_v35 = vld [vmem:[%s6264_s3 + $0x50] sm:$0xff]   ;;  %v319_v56 = vld [vmem:[%s5296_s24 + $0x98] sm:$0xff] }
  0x42   : > { %4582 = vmatpush3.bf16.msra.mxu0 %v5168_v8  ;;  %4391 = vmatprep.subr.bf16.mxu1 %v5169_v9  ;;  %447 = vst [vmem:[#allocation2 + $0x68] sm:$0xff] %v414_v49  ;;  %448 = vst [vmem:[#allocation2 + $0x70] sm:$0xff] %v415_v54  ;;  %v5486_v2 = vpack.c.bf16 %v413_v46, %v412_v42  ;;  %v5491_v3 = vadd.f32 %v5424_v19, %v348_v59  ;;  %v5181_v38 = vld [vmem:[%s6264_s3 + $0x150] sm:$0xff]   ;;  %v316_v42 = vld [vmem:[%s5296_s24 + $0x80] sm:$0xff] }
  0x43   : > { %4583 = vmatprep.subr.bf16.mxu0 %v5170_v10  ;;  %449 = vst [vmem:[#allocation2 + $0x88] sm:$0xff] %v416_v58  ;;  %v5494_v4 = vadd.f32 %v5424_v19, %v349_v61  ;;  %450 = vst [vmem:[#allocation2 + $0x90] sm:$0xff] %v417_v63  ;;  %v352_v17 = vmul.f32 %v5419_v18, %v313_v6  ;;  %v353_v25 = vmul.f32 %v5419_v18, %v314_v20  ;;  %v317_v46 = vld [vmem:[%s5296_s24 + $0x88] sm:$0xff]  ;;  %v5186_v60 = vld [vmem:[%s6264_s3 + $0x58] sm:$0xff]  }
  0x44   : > { %v419_v15 = vmax.f32 %v5491_v3, 0.0  ;;  %v355_v47 = vmul.f32 %v5419_v18, %v316_v42  ;;  %v5565_v48 = vpack.c.bf16 %v417_v63, %v416_v58  ;;  %v356_v51 = vmul.f32 %v5419_v18, %v317_v46  ;;  %v321_v3 = vld [vmem:[%s5296_s24 + $0xa8] sm:$0xff]  ;;  %v5187_v46 = vld [vmem:[%s6264_s3 + $0x170] sm:$0xff]  }
  0x45   : > { %4392 = vmatpush3.bf16.msra.mxu1 %v5169_v9  ;;  %v5498_v9 = vpack.c.bf16 %v415_v54, %v414_v49  ;;  %v420_v16 = vmax.f32 %v5494_v4, 0.0  ;;  %v5536_v33 = vadd.f32 %v5424_v19, %v353_v25  ;;  %v5182_v54 = vld [vmem:[%s6264_s3 + $0x158] sm:$0xff]  }
  0x46   : > { %4584 = vmatpush3.bf16.msra.mxu0 %v5170_v10  ;;  %4393 = vmatprep.subr.bf16.mxu1 %v5171_v11  ;;  %v477_v7 = vld [vmem:[#allocation2 + $0x27] sm:$0xff]  ;;  %v478_v8 = vld [vmem:[#allocation2 + $0x2f] sm:$0xff]  ;;  %v418_v10 = vmax.f32 %v5483_v0, 0.0  ;;  %452 = vst [vmem:[#allocation2 + $0xb0] sm:$0xff] %v419_v15  ;;  %v394_v50 = vadd.f32 %v5424_v19, %v355_v47  ;;  %v395_v55 = vadd.f32 %v5424_v19, %v356_v51 }
  0x47   : > { %4585 = vmatprep.subr.bf16.mxu0 %v5172_v12  ;;  %v508_v13 = vpack.c.bf16 %v478_v8, %v477_v7  ;;  %v479_v21 = vld [vmem:[#allocation2 + $0x47] sm:$0xff]  ;;  %v480_v26 = vld [vmem:[#allocation2 + $0x4f] sm:$0xff]  ;;  %453 = vst [vmem:[#allocation2 + $0xc8] sm:$0xff] %v420_v16 }
  0x48   : > { %451 = vst [vmem:[#allocation2 + $0xa8] sm:$0xff] %v418_v10  ;;  %v5530_v30 = vpack.c.bf16 %v480_v26, %v479_v21  ;;  %v5572_v52 = vpack.c.bf16 %v419_v15, %v418_v10  ;;  %v426_v61 = vmax.f32 %v394_v50, 0.0  ;;  %v427_v63 = vmax.f32 %v395_v55, 0.0  ;;  %v2260_v47 = vld [vmem:[#allocation2 + $0x29] sm:$0xff] }
  0x49   : > { %4394 = vmatpush3.bf16.msra.mxu1 %v5171_v11  ;;  %v5504_v11 = vadd.f32 %v5424_v19, %v350_v1  ;;  %v481_v31 = vld [vmem:[#allocation2 + $0x67] sm:$0xff]  ;;  %v482_v34 = vld [vmem:[#allocation2 + $0x6f] sm:$0xff]  ;;  %v360_v10 = vmul.f32 %v5419_v18, %v321_v3 }
  0x4a   : > { %4586 = vmatpush3.bf16.msra.mxu0 %v5172_v12  ;;  %4395 = vmatprep.subr.bf16.mxu1 %v5173_v24  ;;  %v351_v12 = vmul.f32 %v5419_v18, %v312_v5  ;;  %v483_v39 = vld [vmem:[#allocation2 + $0x87] sm:$0xff]  ;;  %v5554_v43 = vpack.c.bf16 %v482_v34, %v481_v31  ;;  %v484_v44 = vld [vmem:[#allocation2 + $0x8f] sm:$0xff]  ;;  %459 = vst [vmem:[#allocation2 + $0x128] sm:$0xff] %v426_v61  ;;  %460 = vst [vmem:[#allocation2 + $0x130] sm:$0xff] %v427_v63 }
  0x4b   : > { %4587 = vmatprep.subr.bf16.mxu0 %v5174_v28  ;;  %v421_v22 = vmax.f32 %v5504_v11, 0.0  ;;  %v5567_v49 = vpack.c.bf16 %v484_v44, %v483_v39  ;;  %v320_v1 = vld [vmem:[%s5296_s24 + $0xa0] sm:$0xff]  ;;  %v323_v31 = vld [vmem:[%s5296_s24 + $0xb8] sm:$0xff]  ;;  %v325_v39 = vld [vmem:[%s5296_s24 + $0xc8] sm:$0xff] }
  0x4c   : > { %v5516_v23 = vadd.f32 %v5424_v19, %v351_v12  ;;  %v359_v8 = vmul.f32 %v5419_v18, %v320_v1  ;;  %v5184_v12 = vld [vmem:[%s6264_s3 + $0x160] sm:$0xff]   ;;  %v364_v44 = vmul.f32 %v5419_v18, %v325_v39  ;;  %v5192_v1 = vld [vmem:[%s6264_s3 + $0x70] sm:$0xff]  }
  0x4d   : > { %4396 = vmatpush3.bf16.msra.mxu1 %v5173_v24  ;;  %v315_v24 = vld [vmem:[%s5296_s24 + $0x78] sm:$0xff]  ;;  %454 = vst [vmem:[#allocation2 + $0xd0] sm:$0xff] %v421_v22  ;;  %v5614_v25 = vpack.c.bf16 %v421_v22, %v420_v16 }
  0x4e   : > { %4588 = vmatpush3.bf16.msra.mxu0 %v5174_v28  ;;  %4397 = vmatprep.subr.bf16.mxu1 %v5175_v40  ;;  %v5526_v28 = vadd.f32 %v5424_v19, %v352_v17  ;;  %v354_v29 = vmul.f32 %v5419_v18, %v315_v24  ;;  %v422_v32 = vmax.f32 %v5516_v23, 0.0  ;;  %v487_v5 = vld [vmem:[#allocation2 + $0xc7] sm:$0xff]  ;;  %v398_v21 = vadd.f32 %v5424_v19, %v359_v8 }
  0x4f   : > { %4589 = vmatprep.subr.bf16.mxu0 %v5176_v45  ;;  %v485_v58 = vld [vmem:[#allocation2 + $0xa7] sm:$0xff]  ;;  %v486_v59 = vld [vmem:[#allocation2 + $0xaf] sm:$0xff]  ;;  %v399_v24 = vadd.f32 %v5424_v19, %v360_v10 }
  0x50   : > { %v423_v36 = vmax.f32 %v5526_v28, 0.0  ;;  %v5544_v37 = vadd.f32 %v5424_v19, %v354_v29  ;;  %455 = vst [vmem:[#allocation2 + $0xe8] sm:$0xff] %v422_v32  ;;  %v5603_v15 = vpack.c.bf16 %v486_v59, %v485_v58  ;;  %v5189_v17 = vld [vmem:[%s6264_s3 + $0x60] sm:$0xff]   ;;  %v5185_v29 = vld [vmem:[%s6264_s3 + $0x168] sm:$0xff]   ;;  %v430_v16 = vmax.f32 %v398_v21, 0.0  ;;  %v2261_v59 = vld [vmem:[#allocation2 + $0x31] sm:$0xff] }
  0x51   : > { %4398 = vmatpush3.bf16.msra.mxu1 %v5175_v40  ;;  %v424_v40 = vmax.f32 %v5536_v33, 0.0  ;;  %v431_v22 = vmax.f32 %v399_v24, 0.0  ;;  %v5190_v28 = vld [vmem:[%s6264_s3 + $0x68] sm:$0xff]   ;;  %v5194_v21 = vld [vmem:[%s6264_s3 + $0x78] sm:$0xff]  }
  0x52   : > { %4590 = vmatpush3.bf16.msra.mxu0 %v5176_v45  ;;  %4431 = vmatprep.subr.bf16.mxu1 %v5177_v53  ;;  %456 = vst [vmem:[#allocation2 + $0xf0] sm:$0xff] %v423_v36  ;;  %v425_v45 = vmax.f32 %v5544_v37, 0.0  ;;  %v5626_v4 = vpack.c.bf16 %v423_v36, %v422_v32  ;;  %463 = vst [vmem:[#allocation2 + $0x168] sm:$0xff] %v430_v16  ;;  %v329_v10 = vld [vmem:[%s5296_s24 + $0xe8] sm:$0xff] }
  0x53   : > { %4623 = vmatprep.subr.bf16.mxu0 %v5178_v62  ;;  %457 = vst [vmem:[#allocation2 + $0x108] sm:$0xff] %v424_v40  ;;  %464 = vst [vmem:[#allocation2 + $0x170] sm:$0xff] %v431_v22  ;;  %v5648_v50 = vpack.c.bf16 %v431_v22, %v430_v16  ;;  %v368_v37 = vmul.f32 %v5419_v18, %v329_v10 }
  0x54   : > { %4400 = vmatmul.mubr.bf16.vlgmr.msra.gmra.mrb[0].mxu1 %v508_v13  ;;  %458 = vst [vmem:[#allocation2 + $0x110] sm:$0xff] %v425_v45  ;;  %v488_v6 = vld [vmem:[#allocation2 + $0xcf] sm:$0xff] }
  0x55   : > { %4592 = vmatmul.mubr.bf16.vlgmr.msra.gmra.mrb[0].mxu0 %v5486_v2  ;;  %4432 = vmatpush3.bf16.msra.mxu1 %v5177_v53  ;;  %v318_v53 = vld [vmem:[%s5296_s24 + $0x90] sm:$0xff]  ;;  %v5616_v26 = vpack.c.bf16 %v488_v6, %v487_v5  ;;  %v328_v6 = vld [vmem:[%s5296_s24 + $0xe0] sm:$0xff]  ;;  %v407_v22 = vadd.f32 %v5424_v19, %v368_v37 }
  0x56   : > { %4624 = vmatpush3.bf16.msra.mxu0 %v5178_v62  ;;  %4595 = vmatprep.mubr.bf16.mxu0 %v5498_v9  ;;  %v357_v57 = vmul.f32 %v5419_v18, %v318_v53  ;;  %v358_v62 = vmul.f32 %v5419_v18, %v319_v56 }
  0x57   : > { %4625 = vmatprep.subr.bf16.mxu0 %v5179_v14  ;;  %4403 = vmatprep.mubr.bf16.mxu1 %v5530_v30  ;;  %v489_v11 = vld [vmem:[#allocation2 + $0xe7] sm:$0xff] }
  0x58   : > { %4433 = vmatprep.subr.bf16.mxu1 %v5180_v27  ;;  %v396_v0 = vadd.f32 %v5424_v19, %v357_v57  ;;  %v397_v7 = vadd.f32 %v5424_v19, %v358_v62  ;;  %v403_v57 = vadd.f32 %v5424_v19, %v364_v44  ;;  %v327_v62 = vld [vmem:[%s5296_s24 + $0xd8] sm:$0xff]  ;;  %v5191_v44 = vld [vmem:[%s6264_s3 + $0x180] sm:$0xff]  }
  0x59   : > { %4434 = vmatpush3.bf16.msra.mxu1 %v5180_v27  ;;  %v322_v27 = vld [vmem:[%s5296_s24 + $0xb0] sm:$0xff]  ;;  %v366_v5 = vmul.f32 %v5419_v18, %v327_v62 }
  0x5a   : > { %4626 = vmatpush3.bf16.msra.mxu0 %v5179_v14  ;;  %4435 = vmatprep.subr.bf16.mxu1 %v5183_v35  ;;  %v428_v13 = vmax.f32 %v396_v0, 0.0  ;;  %v5601_v14 = vpack.c.bf16 %v427_v63, %v426_v61  ;;  %v429_v20 = vmax.f32 %v397_v7, 0.0  ;;  %v361_v34 = vmul.f32 %v5419_v18, %v322_v27  ;;  %v490_v23 = vld [vmem:[#allocation2 + $0xef] sm:$0xff]  ;;  %v491_v53 = vld [vmem:[#allocation2 + $0x107] sm:$0xff] }
  0x5b   : > { %4627 = vmatprep.subr.bf16.mxu0 %v5181_v38  ;;  %v5653_v58 = vpack.c.bf16 %v490_v23, %v489_v11  ;;  %v326_v61 = vld [vmem:[%s5296_s24 + $0xd0] sm:$0xff]  ;;  %v435_v0 = vmax.f32 %v403_v57, 0.0  ;;  %v5667_v7 = vpack.c.bf16 %v425_v45, %v424_v40  ;;  %v405_v33 = vadd.f32 %v5424_v19, %v366_v5  ;;  %v5188_v40 = vld [vmem:[%s6264_s3 + $0x178] sm:$0xff]  }
  0x5c   : > { %4404 = vmatmul.mubr.bf16.gmra.mrb[4].mxu1 %v5554_v43  ;;  %461 = vst [vmem:[#allocation2 + $0x148] sm:$0xff] %v428_v13  ;;  %462 = vst [vmem:[#allocation2 + $0x150] sm:$0xff] %v429_v20  ;;  %v5633_v42 = vpack.c.bf16 %v429_v20, %v428_v13  ;;  %v400_v32 = vadd.f32 %v5424_v19, %v361_v34  ;;  %v365_v3 = vmul.f32 %v5419_v18, %v326_v61  ;;  %v2262_v27 = vld [vmem:[#allocation2 + $0x49] sm:$0xff] }
  0x5d   : > { %4596 = vmatmul.mubr.bf16.gmra.mrb[4].mxu0 %v5565_v48  ;;  %4407 = vmatprep.mubr.bf16.mxu1 %v5567_v49  ;;  %468 = vst [vmem:[#allocation2 + $0x1b0] sm:$0xff] %v435_v0  ;;  %v437_v16 = vmax.f32 %v405_v33, 0.0  ;;  %v494_v34 = vld [vmem:[#allocation2 + $0x12f] sm:$0xff]  ;;  %v5197_v33 = vld [vmem:[%s6264_s3 + $0x198] sm:$0xff]  }
  0x5e   : > { %4628 = vmatpush3.bf16.msra.mxu0 %v5181_v38  ;;  %4599 = vmatprep.mubr.bf16.mxu0 %v5572_v52  ;;  %v324_v38 = vld [vmem:[%s5296_s24 + $0xc0] sm:$0xff]  ;;  %v432_v55 = vmax.f32 %v400_v32, 0.0  ;;  %v404_v20 = vadd.f32 %v5424_v19, %v365_v3  ;;  %v2266_v57 = vld [vmem:[#allocation2 + $0x89] sm:$0xff] }
  0x5f   : > { %4629 = vmatprep.subr.bf16.mxu0 %v5182_v54  ;;  %4436 = vmatpush3.bf16.msra.mxu1 %v5183_v35  ;;  %v362_v35 = vmul.f32 %v5419_v18, %v323_v31  ;;  %v363_v36 = vmul.f32 %v5419_v18, %v324_v38  ;;  %v493_v31 = vld [vmem:[#allocation2 + $0x127] sm:$0xff]  ;;  %470 = vst [vmem:[#allocation2 + $0x1d0] sm:$0xff] %v437_v16  ;;  %v498_v61 = vld [vmem:[#allocation2 + $0x16f] sm:$0xff] }
  0x60   : > { %4437 = vmatprep.subr.bf16.mxu1 %v5186_v60  ;;  %465 = vst [vmem:[#allocation2 + $0x188] sm:$0xff] %v432_v55  ;;  %v436_v11 = vmax.f32 %v404_v20, 0.0  ;;  %v5195_v3 = vld [vmem:[%s6264_s3 + $0x190] sm:$0xff]  }
  0x61   : > { %v401_v51 = vadd.f32 %v5424_v19, %v362_v35  ;;  %v402_v56 = vadd.f32 %v5424_v19, %v363_v36  ;;  %v2264_v35 = vld [vmem:[#allocation2 + $0x69] sm:$0xff]  ;;  %v2265_v36 = vld [vmem:[#allocation2 + $0x71] sm:$0xff] }
  0x62   : > { %4630 = vmatpush3.bf16.msra.mxu0 %v5182_v54  ;;  %v492_v54 = vld [vmem:[#allocation2 + $0x10f] sm:$0xff]  ;;  %469 = vst [vmem:[#allocation2 + $0x1c8] sm:$0xff] %v436_v11  ;;  %v5694_v32 = vpack.c.bf16 %v437_v16, %v436_v11 }
  0x63   : > { %4631 = vmatprep.subr.bf16.mxu0 %v5184_v12  ;;  %4438 = vmatpush3.bf16.msra.mxu1 %v5186_v60  ;;  %v433_v60 = vmax.f32 %v401_v51, 0.0  ;;  %v434_v63 = vmax.f32 %v402_v56, 0.0  ;;  %v5669_v8 = vpack.c.bf16 %v492_v54, %v491_v53  ;;  %v495_v39 = vld [vmem:[#allocation2 + $0x147] sm:$0xff]  ;;  %v496_v23 = vld [vmem:[#allocation2 + $0x14f] sm:$0xff] }
  0x64   : > { %4408 = vmatmul.mubr.bf16.gmra.mrb[8].mxu1 %v5603_v15  ;;  %4439 = vmatprep.subr.bf16.mxu1 %v5189_v17  ;;  %v5710_v54 = vpack.c.bf16 %v496_v23, %v495_v39  ;;  %v5193_v56 = vld [vmem:[%s6264_s3 + $0x188] sm:$0xff]   ;;  %v2273_v16 = vld [vmem:[#allocation2 + $0xf1] sm:$0xff] }
  0x65   : > { %4600 = vmatmul.mubr.bf16.gmra.mrb[8].mxu0 %v5614_v25  ;;  %4411 = vmatprep.mubr.bf16.mxu1 %v5616_v26  ;;  %466 = vst [vmem:[#allocation2 + $0x190] sm:$0xff] %v433_v60  ;;  %v5673_v13 = vpack.c.bf16 %v433_v60, %v432_v55  ;;  %467 = vst [vmem:[#allocation2 + $0x1a8] sm:$0xff] %v434_v63  ;;  %v5687_v24 = vpack.c.bf16 %v435_v0, %v434_v63  ;;  %v497_v60 = vld [vmem:[#allocation2 + $0x167] sm:$0xff] }
  0x66   : > { %4632 = vmatpush3.bf16.msra.mxu0 %v5184_v12  ;;  %4603 = vmatprep.mubr.bf16.mxu0 %v5626_v4  ;;  %v367_v12 = vmul.f32 %v5419_v18, %v328_v6  ;;  %v5712_v55 = vpack.c.bf16 %v2265_v36, %v2264_v35  ;;  %v2268_v0 = vld [vmem:[#allocation2 + $0xa9] sm:$0xff]  ;;  %v5725_v5 = vpack.c.bf16 %v498_v61, %v497_v60  ;;  %v5199_v35 = vld [vmem:[%s6264_s3 + $0x1a0] sm:$0xff]   ;;  %v2275_v60 = vld [vmem:[#allocation2 + $0x111] sm:$0xff] }
  0x67   : > { %4633 = vmatprep.subr.bf16.mxu0 %v5185_v29  ;;  %4440 = vmatpush3.bf16.msra.mxu1 %v5189_v17  ;;  %v5675_v17 = vpack.c.bf16 %v2261_v59, %v2260_v47  ;;  %v5699_v47 = vpack.c.bf16 %v494_v34, %v493_v31  ;;  %v2267_v59 = vld [vmem:[#allocation2 + $0x91] sm:$0xff]  ;;  %v499_v62 = vld [vmem:[#allocation2 + $0x187] sm:$0xff] }
  0x68   : > { %4441 = vmatprep.subr.bf16.mxu1 %v5190_v28  ;;  %v406_v45 = vadd.f32 %v5424_v19, %v367_v12  ;;  %v5727_v6 = vpack.c.bf16 %v2267_v59, %v2266_v57  ;;  %v2272_v11 = vld [vmem:[#allocation2 + $0xe9] sm:$0xff] }
  0x69   : > { %v504_v34 = vld [vmem:[#allocation2 + $0x1cf] sm:$0xff] }
  0x6a   : > { %4634 = vmatpush3.bf16.msra.mxu0 %v5185_v29  ;;  %v2263_v29 = vld [vmem:[#allocation2 + $0x51] sm:$0xff]  ;;  %v438_v38 = vmax.f32 %v406_v45, 0.0  ;;  %v5201_v57 = vld [vmem:[%s6264_s3 + $0x1a8] sm:$0xff]  }
  0x6b   : > { %4635 = vmatprep.subr.bf16.mxu0 %v5187_v46  ;;  %4442 = vmatpush3.bf16.msra.mxu1 %v5190_v28  ;;  %v439_v28 = vmax.f32 %v407_v22, 0.0  ;;  %v5708_v53 = vpack.c.bf16 %v2263_v29, %v2262_v27  ;;  %v2271_v45 = vld [vmem:[#allocation2 + $0xd1] sm:$0xff]  ;;  %v503_v29 = vld [vmem:[#allocation2 + $0x1c7] sm:$0xff] }
  0x6c   : > { %4412 = vmatmul.mubr.bf16.gmra.mrb[12].mxu1 %v5653_v58  ;;  %4443 = vmatprep.subr.bf16.mxu1 %v5192_v1  ;;  %471 = vst [vmem:[#allocation2 + $0x1e8] sm:$0xff] %v438_v38  ;;  %v500_v63 = vld [vmem:[#allocation2 + $0x18f] sm:$0xff]  ;;  %v501_v20 = vld [vmem:[#allocation2 + $0x1a7] sm:$0xff]  ;;  %v331_v27 = vld [vmem:[%s5296_s24 + $0xf8] sm:$0xff] }
  0x6d   : > { %4604 = vmatmul.mubr.bf16.gmra.mrb[12].mxu0 %v5667_v7  ;;  %4415 = vmatprep.mubr.bf16.mxu1 %v5669_v8  ;;  %472 = vst [vmem:[#allocation2 + $0x1f0] sm:$0xff] %v439_v28  ;;  %v5706_v51 = vpack.c.bf16 %v439_v28, %v438_v38  ;;  %v5729_v10 = vpack.c.bf16 %v500_v63, %v499_v62  ;;  %v502_v37 = vld [vmem:[#allocation2 + $0x1af] sm:$0xff] }
  0x6e   : > { %4636 = vmatpush3.bf16.msra.mxu0 %v5187_v46  ;;  %4639 = vmatprep.mubr.bf16.mxu0 %v5675_v17  ;;  %v5704_v46 = vld [vmem:[%s6264_s3 + $0x80] sm:$0xff]   ;;  %v370_v31 = vmul.f32 %v5419_v18, %v331_v27  ;;  %v5753_v23 = vpack.c.bf16 %v502_v37, %v501_v20  ;;  %v2274_v59 = vld [vmem:[#allocation2 + $0x109] sm:$0xff]  ;;  %v2279_v27 = vld [vmem:[#allocation2 + $0x151] sm:$0xff] }
  0x6f   : > { %4637 = vmatprep.subr.bf16.mxu0 %v5188_v40  ;;  %4444 = vmatpush3.bf16.msra.mxu1 %v5192_v1  ;;  %v2269_v1 = vld [vmem:[#allocation2 + $0xb1] sm:$0xff]  ;;  %v780_v61 = vld [vmem:[#allocation2 + $0x8] sm:$0xff] }
  0x70   : > { %4445 = vmatprep.subr.bf16.mxu1 %v5194_v21  ;;  %v5731_v12 = vpack.c.bf16 %v2269_v1, %v2268_v0  ;;  %v5751_v39 = vadd.f32 %v5424_v19, %v370_v31  ;;  %v781_v63 = vld [vmem:[#allocation2 + $0x10] sm:$0xff] }
  0x71   : > { %v2276_v0 = vld [vmem:[#allocation2 + $0x129] sm:$0xff]  ;;  %v2277_v1 = vld [vmem:[#allocation2 + $0x131] sm:$0xff]  ;;  %v812_v37 = vpack.c.bf16 %v781_v63, %v780_v61 }
  0x72   : > { %4638 = vmatpush3.bf16.msra.mxu0 %v5188_v40  ;;  %v2270_v40 = vld [vmem:[#allocation2 + $0xc9] sm:$0xff] }
  0x73   : > { %4671 = vmatprep.subr.bf16.mxu0 %v5191_v44  ;;  %4446 = vmatpush3.bf16.msra.mxu1 %v5194_v21  ;;  %v330_v21 = vld [vmem:[%s5296_s24 + $0xf0] sm:$0xff]  ;;  %v5755_v28 = vpack.c.bf16 %v2271_v45, %v2270_v40  ;;  %v5781_v40 = vpack.c.bf16 %v2277_v1, %v2276_v0  ;;  %v5204_v45 = vld [vmem:[%s6264_s3 + $0x1b8] sm:$0xff]   ;;  %v5205_v1 = vld [vmem:[%s6264_s3 + $0xa0] sm:$0xff]  }
  0x74   : > { %4416 = vmatmul.mubr.bf16.gmra.mrb[16].mxu1 %v5699_v47  ;;  %4479 = vmatprep.subr.bf16.mxu1 %v5704_v46  ;;  %v369_v22 = vmul.f32 %v5419_v18, %v330_v21  ;;  %v5757_v18 = vpack.c.bf16 %v504_v34, %v503_v29  ;;  %v506_v62 = vld [vmem:[#allocation2 + $0x1ef] sm:$0xff] }
  0x75   : > { %4640 = vmatmul.mubr.bf16.vlgmr.msra.gmra.mrb[0].mxu0 %v5708_v53  ;;  %4419 = vmatprep.mubr.bf16.mxu1 %v5710_v54  ;;  %v2278_v21 = vld [vmem:[#allocation2 + $0x149] sm:$0xff]  ;;  %v2289_v0 = vld [vmem:[#allocation2 + $0x1f1] sm:$0xff] }
  0x76   : > { %4643 = vmatprep.mubr.bf16.mxu0 %v5712_v55  ;;  %4672 = vmatpush3.bf16.msra.mxu0 %v5191_v44  ;;  %v5748_v38 = vadd.f32 %v5424_v19, %v369_v22  ;;  %v441_v44 = vmax.f32 %v5751_v39, 0.0  ;;  %v505_v19 = vld [vmem:[#allocation2 + $0x1e7] sm:$0xff]  ;;  %v5794_v22 = vpack.c.bf16 %v2279_v27, %v2278_v21 }
  0x77   : > { %4673 = vmatprep.subr.bf16.mxu0 %v5193_v56  ;;  %v5777_v20 = vpack.c.bf16 %v506_v62, %v505_v19  ;;  %v2280_v29 = vld [vmem:[#allocation2 + $0x169] sm:$0xff]  ;;  %v2287_v62 = vld [vmem:[#allocation2 + $0x1d1] sm:$0xff] }
  0x78   : > { %v440_v36 = vmax.f32 %v5748_v38, 0.0  ;;  %474 = vst [vmem:[#allocation2 + $0x210] sm:$0xff] %v441_v44  ;;  %v5198_v34 = vld [vmem:[%s6264_s3 + $0x88] sm:$0xff]   ;;  %v5200_v19 = vld [vmem:[%s6264_s3 + $0x90] sm:$0xff]   ;;  %v5212_v38 = vld [vmem:[%s6264_s3 + $0xc0] sm:$0xff]  }
  0x79   : > { %v2288_v63 = vld [vmem:[#allocation2 + $0x1e9] sm:$0xff] }
  0x7a   : > { %4674 = vmatpush3.bf16.msra.mxu0 %v5193_v56  ;;  %v5761_v56 = vpack.c.bf16 %v2273_v16, %v2272_v11  ;;  %473 = vst [vmem:[#allocation2 + $0x208] sm:$0xff] %v440_v36  ;;  %v2281_v11 = vld [vmem:[#allocation2 + $0x171] sm:$0xff]  ;;  %v5792_v16 = vld [vmem:[%s6264_s3 + $0x1c0] sm:$0xff]   ;;  %v5209_v39 = vld [vmem:[%s6264_s3 + $0x1c8] sm:$0xff]  }
  0x7b   : > { %4675 = vmatprep.subr.bf16.mxu0 %v5195_v3  ;;  %v5796_v31 = vpack.c.bf16 %v2281_v11, %v2280_v29 }
  0x7c   : > { %4420 = vmatmul.mubr.bf16.gmra.mrb[20].mxu1 %v5725_v5 }
  0x7d   : > { %4644 = vmatmul.mubr.bf16.gmra.mrb[4].mxu0 %v5727_v6  ;;  %4423 = vmatprep.mubr.bf16.mxu1 %v5729_v10 }
  0x7e   : > { %4647 = vmatprep.mubr.bf16.mxu0 %v5731_v12  ;;  %4676 = vmatpush3.bf16.msra.mxu0 %v5195_v3  ;;  %v5203_v3 = vld [vmem:[%s6264_s3 + $0x1b0] sm:$0xff]  }
  0x7f   : > { %4677 = vmatprep.subr.bf16.mxu0 %v5197_v33  ;;  %v2291_v21 = vld [vmem:[#allocation2 + $0x211] sm:$0xff] }
  0x82   : > { %4678 = vmatpush3.bf16.msra.mxu0 %v5197_v33  ;;  %v5779_v33 = vpack.c.bf16 %v2275_v60, %v2274_v59  ;;  %v2284_v59 = vld [vmem:[#allocation2 + $0x1a9] sm:$0xff]  ;;  %v2285_v60 = vld [vmem:[#allocation2 + $0x1b1] sm:$0xff] }
  0x83   : > { %4679 = vmatprep.subr.bf16.mxu0 %v5199_v35 }
  0x84   : > { %4424 = vmatmul.mubr.bf16.gmra.mrb[24].mxu1 %v5753_v23 }
  0x85   : > { %4648 = vmatmul.mubr.bf16.gmra.mrb[8].mxu0 %v5755_v28  ;;  %4427 = vmatprep.mubr.bf16.mxu1 %v5757_v18 }
  0x86   : > { %4651 = vmatprep.mubr.bf16.mxu0 %v5761_v56  ;;  %4680 = vmatpush3.bf16.msra.mxu0 %v5199_v35  ;;  %v2282_v35 = vld [vmem:[#allocation2 + $0x189] sm:$0xff] }
  0x87   : > { %4681 = vmatprep.subr.bf16.mxu0 %v5201_v57 }
  0x8a   : > { %4682 = vmatpush3.bf16.msra.mxu0 %v5201_v57  ;;  %v2283_v57 = vld [vmem:[#allocation2 + $0x191] sm:$0xff] }
  0x8b   : > { %4683 = vmatprep.subr.bf16.mxu0 %v5203_v3  ;;  %v5810_v61 = vpack.c.bf16 %v2283_v57, %v2282_v35  ;;  %v3009_v35 = vld [vmem:[#allocation2 + $0xc8] sm:$0xff]  ;;  %v3010_v57 = vld [vmem:[#allocation2 + $0xd0] sm:$0xff] }
  0x8c   : > { %4428 = vmatmul.mubr.bf16.gmra.mrb[28].mxu1 %v5777_v20 }
  0x8d   : > { %4652 = vmatmul.mubr.bf16.gmra.mrb[12].mxu0 %v5779_v33  ;;  %4447 = vmatprep.mubr.bf16.mxu1 %v812_v37  ;;  %v5826_v37 = vpack.c.bf16 %v2289_v0, %v2288_v63  ;;  %v5229_v63 = vld [vmem:[%s6264_s3 + $0x220] sm:$0xff]  }
  0x8e   : > { %4655 = vmatprep.mubr.bf16.mxu0 %v5781_v40  ;;  %4684 = vmatpush3.bf16.msra.mxu0 %v5203_v3 }
  0x8f   : > { %4685 = vmatprep.subr.bf16.mxu0 %v5204_v45 }
  0x92   : > { %4686 = vmatpush3.bf16.msra.mxu0 %v5204_v45  ;;  %v2290_v45 = vld [vmem:[#allocation2 + $0x209] sm:$0xff] }
  0x93   : > { %4719 = vmatprep.subr.bf16.mxu0 %v5792_v16  ;;  %v2307_v27 = vpack.c.bf16 %v2291_v21, %v2290_v45  ;;  %v1520_v45 = vld [vmem:[#allocation2 + $0x27] sm:$0xff]  ;;  %v1521_v21 = vld [vmem:[#allocation2 + $0x2f] sm:$0xff] }
  0x94   : > { %4448 = vmatmul.mubr.bf16.vlgmr.msra.gmra.mrb[0].mxu1 %v5451_v41  ;;  %v5812_v41 = vpack.c.bf16 %v2285_v60, %v2284_v59  ;;  %v3037_v60 = vpack.c.bf16 %v3010_v57, %v3009_v35  ;;  %v3031_v35 = vld [vmem:[#allocation2 + $0x228] sm:$0xff]  ;;  %v3032_v57 = vld [vmem:[#allocation2 + $0x230] sm:$0xff] }
  0x95   : > { %4656 = vmatmul.mubr.bf16.gmra.mrb[16].mxu0 %v5794_v22  ;;  %4480 = vmatpush3.bf16.msra.mxu1 %v5704_v46  ;;  %v2286_v46 = vld [vmem:[#allocation2 + $0x1c9] sm:$0xff] }
  0x96   : > { %4451 = vmatprep.mubr.bf16.mxu1 %v5486_v2  ;;  %4659 = vmatprep.mubr.bf16.mxu0 %v5796_v31  ;;  %v5202_v2 = vld [vmem:[%s6264_s3 + $0x98] sm:$0xff]   ;;  %v5824_v3 = vpack.c.bf16 %v2287_v62, %v2286_v46  ;;  %v3013_v46 = vld [vmem:[#allocation2 + $0x108] sm:$0xff]  ;;  %v3014_v62 = vld [vmem:[#allocation2 + $0x110] sm:$0xff] }
  0x97   : > { %4481 = vmatprep.subr.bf16.mxu1 %v5198_v34 }
  0x99   : > { %4482 = vmatpush3.bf16.msra.mxu1 %v5198_v34  ;;  %v3008_v34 = vld [vmem:[#allocation2 + $0xb0] sm:$0xff] }
  0x9a   : > { %4483 = vmatprep.subr.bf16.mxu1 %v5200_v19 }
  0x9c   : > { %4452 = vmatmul.mubr.bf16.gmra.mrb[4].mxu1 %v5498_v9  ;;  %v5206_v9 = vld [vmem:[%s6264_s3 + $0xa8] sm:$0xff]  }
  0x9d   : > { %4660 = vmatmul.mubr.bf16.gmra.mrb[20].mxu0 %v5810_v61  ;;  %4455 = vmatprep.mubr.bf16.mxu1 %v5565_v48  ;;  %v5838_v48 = vpack.c.bf16 %v441_v44, %v440_v36  ;;  %v3004_v36 = vld [vmem:[#allocation2 + $0x70] sm:$0xff]  ;;  %v3005_v44 = vld [vmem:[#allocation2 + $0x88] sm:$0xff] }
  0x9e   : > { %4663 = vmatprep.mubr.bf16.mxu0 %v5812_v41  ;;  %4484 = vmatpush3.bf16.msra.mxu1 %v5200_v19  ;;  %v5227_v19 = vld [vmem:[%s6264_s3 + $0x210] sm:$0xff]  }
  0x9f   : > { %4485 = vmatprep.subr.bf16.mxu1 %v5202_v2 }
  0xa2   : > { %4486 = vmatpush3.bf16.msra.mxu1 %v5202_v2  ;;  %v3012_v2 = vld [vmem:[#allocation2 + $0xf0] sm:$0xff] }
  0xa3   : > { %4487 = vmatprep.subr.bf16.mxu1 %v5205_v1 }
  0xa4   : > { %4456 = vmatmul.mubr.bf16.gmra.mrb[8].mxu1 %v5572_v52  ;;  %v5208_v52 = vld [vmem:[%s6264_s3 + $0xb0] sm:$0xff]  }
  0xa5   : > { %4664 = vmatmul.mubr.bf16.gmra.mrb[24].mxu0 %v5824_v3  ;;  %4459 = vmatprep.mubr.bf16.mxu1 %v5614_v25  ;;  %v5210_v25 = vld [vmem:[%s6264_s3 + $0xb8] sm:$0xff]  }
  0xa6   : > { %4667 = vmatprep.mubr.bf16.mxu0 %v5826_v37  ;;  %4488 = vmatpush3.bf16.msra.mxu1 %v5205_v1  ;;  %v3039_v1 = vpack.c.bf16 %v3014_v62, %v3013_v46  ;;  %v3048_v46 = vpack.c.bf16 %v3032_v57, %v3031_v35  ;;  %v3391_v35 = vld [vmem:[#allocation2 + $0x189] sm:$0xff]  ;;  %v3392_v57 = vld [vmem:[#allocation2 + $0x191] sm:$0xff] }
  0xa7   : > { %4489 = vmatprep.subr.bf16.mxu1 %v5206_v9 }
  0xaa   : > { %4490 = vmatpush3.bf16.msra.mxu1 %v5206_v9  ;;  %v3016_v9 = vld [vmem:[#allocation2 + $0x130] sm:$0xff] }
  0xab   : > { %4491 = vmatprep.subr.bf16.mxu1 %v5208_v52 }
  0xac   : > { %4460 = vmatmul.mubr.bf16.gmra.mrb[12].mxu1 %v5626_v4  ;;  %v5213_v4 = vld [vmem:[%s6264_s3 + $0x1d8] sm:$0xff]  }
  0xad   : > { %4668 = vmatmul.mubr.bf16.gmra.mrb[28].mxu0 %v2307_v27  ;;  %4463 = vmatprep.mubr.bf16.mxu1 %v5667_v7  ;;  %v5214_v7 = vld [vmem:[%s6264_s3 + $0xc8] sm:$0xff]   ;;  %v3018_v27 = vld [vmem:[#allocation2 + $0x150] sm:$0xff] }
  0xae   : > { %4687 = vmatprep.mubr.bf16.mxu0 %v5530_v30  ;;  %4492 = vmatpush3.bf16.msra.mxu1 %v5208_v52  ;;  %v5211_v30 = vld [vmem:[%s6264_s3 + $0x1d0] sm:$0xff]   ;;  %v3017_v52 = vld [vmem:[#allocation2 + $0x148] sm:$0xff] }
  0xaf   : > { %4493 = vmatprep.subr.bf16.mxu1 %v5210_v25 }
  0xb2   : > { %4494 = vmatpush3.bf16.msra.mxu1 %v5210_v25  ;;  %v5231_v25 = vld [vmem:[%s6264_s3 + $0x230] sm:$0xff]  }
  0xb3   : > { %4527 = vmatprep.subr.bf16.mxu1 %v5212_v38 }
  0xb4   : > { %4464 = vmatmul.mubr.bf16.gmra.mrb[16].mxu1 %v5601_v14  ;;  %v1150_v14 = vld [vmem:[#allocation2 + $0x9] sm:$0xff] }
  0xb5   : > { %4688 = vmatmul.mubr.bf16.vlgmr.msra.gmra.mrb[0].mxu0 %v5554_v43  ;;  %4467 = vmatprep.mubr.bf16.mxu1 %v5633_v42  ;;  %v5215_v43 = vld [vmem:[%s6264_s3 + $0x1e0] sm:$0xff]  }
  0xb6   : > { %4691 = vmatprep.mubr.bf16.mxu0 %v5567_v49  ;;  %4720 = vmatpush3.bf16.msra.mxu0 %v5792_v16  ;;  %v5217_v49 = vld [vmem:[%s6264_s3 + $0x1e8] sm:$0xff]  }
  0xb7   : > { %4721 = vmatprep.subr.bf16.mxu0 %v5209_v39  ;;  %v5225_v16 = vld [vmem:[%s6264_s3 + $0x208] sm:$0xff]  }
  0xba   : > { %4722 = vmatpush3.bf16.msra.mxu0 %v5209_v39  ;;  %v1552_v39 = vpack.c.bf16 %v1521_v21, %v1520_v45  ;;  %v3375_v45 = vld [vmem:[#allocation2 + $0x89] sm:$0xff]  ;;  %v3376_v21 = vld [vmem:[#allocation2 + $0x91] sm:$0xff] }
  0xbb   : > { %4723 = vmatprep.subr.bf16.mxu0 %v5211_v30 }
  0xbc   : > { %4468 = vmatmul.mubr.bf16.gmra.mrb[20].mxu1 %v5648_v50  ;;  %v5220_v50 = vld [vmem:[%s6264_s3 + $0x1f8] sm:$0xff]  }
  0xbd   : > { %4692 = vmatmul.mubr.bf16.gmra.mrb[4].mxu0 %v5603_v15  ;;  %4471 = vmatprep.mubr.bf16.mxu1 %v5673_v13  ;;  %v1151_v15 = vld [vmem:[#allocation2 + $0x11] sm:$0xff] }
  0xbe   : > { %4695 = vmatprep.mubr.bf16.mxu0 %v5616_v26  ;;  %4724 = vmatpush3.bf16.msra.mxu0 %v5211_v30  ;;  %v5219_v26 = vld [vmem:[%s6264_s3 + $0x1f0] sm:$0xff]   ;;  %v1182_v42 = vpack.c.bf16 %v1151_v15, %v1150_v14  ;;  %v5218_v13 = vld [vmem:[%s6264_s3 + $0xd8] sm:$0xff]   ;;  %v1522_v30 = vld [vmem:[#allocation2 + $0x47] sm:$0xff] }
  0xbf   : > { %4725 = vmatprep.subr.bf16.mxu0 %v5213_v4  ;;  %v1524_v14 = vld [vmem:[#allocation2 + $0x67] sm:$0xff]  ;;  %v1525_v15 = vld [vmem:[#allocation2 + $0x6f] sm:$0xff] }
  0xc2   : > { %4726 = vmatpush3.bf16.msra.mxu0 %v5213_v4  ;;  %v1523_v4 = vld [vmem:[#allocation2 + $0x4f] sm:$0xff] }
  0xc3   : > { %4727 = vmatprep.subr.bf16.mxu0 %v5215_v43 }
  0xc4   : > { %4472 = vmatmul.mubr.bf16.gmra.mrb[24].mxu1 %v5687_v24  ;;  %v2660_v24 = vld [vmem:[#allocation2 + $0x20f] sm:$0xff] }
  0xc5   : > { %4696 = vmatmul.mubr.bf16.gmra.mrb[8].mxu0 %v5653_v58  ;;  %4475 = vmatprep.mubr.bf16.mxu1 %v5694_v32  ;;  %v5893_v58 = vld [vmem:[%s6264_s3 + $0x200] sm:$0xff]  }
  0xc6   : > { %4699 = vmatprep.mubr.bf16.mxu0 %v5669_v8  ;;  %4728 = vmatpush3.bf16.msra.mxu0 %v5215_v43  ;;  %v5216_v8 = vld [vmem:[%s6264_s3 + $0xd0] sm:$0xff]   ;;  %v5221_v32 = vld [vmem:[%s6264_s3 + $0xe0] sm:$0xff]   ;;  %v3019_v43 = vld [vmem:[#allocation2 + $0x168] sm:$0xff] }
  0xc7   : > { %4729 = vmatprep.subr.bf16.mxu0 %v5217_v49 }
  0xca   : > { %4730 = vmatpush3.bf16.msra.mxu0 %v5217_v49  ;;  %v3020_v49 = vld [vmem:[#allocation2 + $0x170] sm:$0xff] }
  0xcb   : > { %4731 = vmatprep.subr.bf16.mxu0 %v5219_v26 }
  0xcc   : > { %4476 = vmatmul.mubr.bf16.gmra.mrb[28].mxu1 %v5706_v51 }
  0xcd   : > { %4700 = vmatmul.mubr.bf16.gmra.mrb[12].mxu0 %v5699_v47  ;;  %4495 = vmatprep.mubr.bf16.mxu1 %v1182_v42  ;;  %v3022_v42 = vld [vmem:[#allocation2 + $0x190] sm:$0xff] }
  0xce   : > { %4703 = vmatprep.mubr.bf16.mxu0 %v5710_v54  ;;  %4732 = vmatpush3.bf16.msra.mxu0 %v5219_v26  ;;  %v2661_v54 = vld [vmem:[#allocation2 + $0x227] sm:$0xff] }
  0xcf   : > { %4733 = vmatprep.subr.bf16.mxu0 %v5220_v50  ;;  %v3021_v26 = vld [vmem:[#allocation2 + $0x188] sm:$0xff] }
  0xd2   : > { %4734 = vmatpush3.bf16.msra.mxu0 %v5220_v50  ;;  %v1553_v50 = vpack.c.bf16 %v1523_v4, %v1522_v30  ;;  %v1542_v30 = vld [vmem:[#allocation2 + $0x187] sm:$0xff]  ;;  %v1543_v4 = vld [vmem:[#allocation2 + $0x18f] sm:$0xff] }
  0xd3   : > { %4767 = vmatprep.subr.bf16.mxu0 %v5893_v58 }
  0xd4   : > { %4496 = vmatmul.mubr.bf16.vlgmr.msra.gmra.mrb[0].mxu1 %v5675_v17  ;;  %v2659_v17 = vld [vmem:[#allocation2 + $0x207] sm:$0xff] }
  0xd5   : > { %4704 = vmatmul.mubr.bf16.gmra.mrb[16].mxu0 %v5725_v5  ;;  %4528 = vmatpush3.bf16.msra.mxu1 %v5212_v38  ;;  %v5916_v47 = vpack.c.bf16 %v2660_v24, %v2659_v17  ;;  %v3001_v5 = vld [vmem:[#allocation2 + $0x48] sm:$0xff]  ;;  %v3024_v24 = vld [vmem:[#allocation2 + $0x1b0] sm:$0xff] }
  0xd6   : > { %4499 = vmatprep.mubr.bf16.mxu1 %v5708_v53  ;;  %4707 = vmatprep.mubr.bf16.mxu0 %v5729_v10  ;;  %v5222_v53 = vld [vmem:[%s6264_s3 + $0xe8] sm:$0xff]   ;;  %v5224_v10 = vld [vmem:[%s6264_s3 + $0xf0] sm:$0xff]  }
  0xd7   : > { %4529 = vmatprep.subr.bf16.mxu1 %v5214_v7  ;;  %v3023_v17 = vld [vmem:[#allocation2 + $0x1a8] sm:$0xff] }
  0xd9   : > { %4530 = vmatpush3.bf16.msra.mxu1 %v5214_v7  ;;  %v1554_v7 = vpack.c.bf16 %v1525_v15, %v1524_v14  ;;  %v1544_v14 = vld [vmem:[#allocation2 + $0x1a7] sm:$0xff]  ;;  %v1545_v15 = vld [vmem:[#allocation2 + $0x1af] sm:$0xff] }
  0xda   : > { %4531 = vmatprep.subr.bf16.mxu1 %v5216_v8 }
  0xdc   : > { %4500 = vmatmul.mubr.bf16.gmra.mrb[4].mxu1 %v5712_v55  ;;  %v2662_v55 = vld [vmem:[#allocation2 + $0x22f] sm:$0xff] }
  0xdd   : > { %4708 = vmatmul.mubr.bf16.gmra.mrb[20].mxu0 %v5753_v23  ;;  %4503 = vmatprep.mubr.bf16.mxu1 %v5727_v6  ;;  %v3002_v6 = vld [vmem:[#allocation2 + $0x50] sm:$0xff]  ;;  %v2678_v23 = vpack.c.bf16 %v2662_v55, %v2661_v54  ;;  %v5234_v54 = vld [vmem:[%s6264_s3 + $0x108] sm:$0xff]  }
  0xde   : > { %4711 = vmatprep.mubr.bf16.mxu0 %v5757_v18  ;;  %4532 = vmatpush3.bf16.msra.mxu1 %v5216_v8  ;;  %v3033_v18 = vpack.c.bf16 %v3002_v6, %v3001_v5  ;;  %v1526_v8 = vld [vmem:[#allocation2 + $0x87] sm:$0xff]  ;;  %v3026_v5 = vld [vmem:[#allocation2 + $0x1d0] sm:$0xff] }
  0xdf   : > { %4533 = vmatprep.subr.bf16.mxu1 %v5218_v13  ;;  %v3025_v55 = vld [vmem:[#allocation2 + $0x1c8] sm:$0xff] }
  0xe2   : > { %4534 = vmatpush3.bf16.msra.mxu1 %v5218_v13  ;;  %v1527_v13 = vld [vmem:[#allocation2 + $0x8f] sm:$0xff] }
  0xe3   : > { %4535 = vmatprep.subr.bf16.mxu1 %v5221_v32  ;;  %v1555_v6 = vpack.c.bf16 %v1527_v13, %v1526_v8  ;;  %v1564_v8 = vpack.c.bf16 %v1545_v15, %v1544_v14 }
  0xe4   : > { %4504 = vmatmul.mubr.bf16.gmra.mrb[8].mxu1 %v5731_v12  ;;  %v5226_v12 = vld [vmem:[%s6264_s3 + $0xf8] sm:$0xff]  }
  0xe5   : > { %4712 = vmatmul.mubr.bf16.gmra.mrb[24].mxu0 %v5777_v20  ;;  %4507 = vmatprep.mubr.bf16.mxu1 %v5755_v28  ;;  %v3003_v28 = vld [vmem:[#allocation2 + $0x68] sm:$0xff]  ;;  %v3006_v20 = vld [vmem:[#allocation2 + $0x90] sm:$0xff] }
  0xe6   : > { %4715 = vmatprep.mubr.bf16.mxu0 %v5916_v47  ;;  %4536 = vmatpush3.bf16.msra.mxu1 %v5221_v32  ;;  %v3034_v29 = vpack.c.bf16 %v3004_v36, %v3003_v28  ;;  %v3035_v11 = vpack.c.bf16 %v3006_v20, %v3005_v44  ;;  %v1528_v32 = vld [vmem:[#allocation2 + $0xa7] sm:$0xff]  ;;  %v1531_v36 = vld [vmem:[#allocation2 + $0xcf] sm:$0xff] }
  0xe7   : > { %4537 = vmatprep.subr.bf16.mxu1 %v5222_v53  ;;  %v1530_v28 = vld [vmem:[#allocation2 + $0xc7] sm:$0xff]  ;;  %v1533_v20 = vld [vmem:[#allocation2 + $0xef] sm:$0xff] }
  0xe8   : > { %v1532_v44 = vld [vmem:[#allocation2 + $0xe7] sm:$0xff] }
  0xea   : > { %4538 = vmatpush3.bf16.msra.mxu1 %v5222_v53  ;;  %v1529_v53 = vld [vmem:[#allocation2 + $0xaf] sm:$0xff] }
  0xeb   : > { %4539 = vmatprep.subr.bf16.mxu1 %v5224_v10 }
  0xec   : > { %4508 = vmatmul.mubr.bf16.gmra.mrb[12].mxu1 %v5761_v56  ;;  %v5939_v56 = vld [vmem:[%s6264_s3 + $0x100] sm:$0xff]  }
  0xed   : > { %4716 = vmatmul.mubr.bf16.gmra.mrb[28].mxu0 %v2678_v23  ;;  %4511 = vmatprep.mubr.bf16.mxu1 %v5779_v33  ;;  %v3007_v33 = vld [vmem:[#allocation2 + $0xa8] sm:$0xff]  ;;  %v1556_v23 = vpack.c.bf16 %v1529_v53, %v1528_v32  ;;  %v3382_v53 = vld [vmem:[#allocation2 + $0xf1] sm:$0xff] }
  0xee   : > { %4735 = vmatprep.mubr.bf16.mxu0 %v3033_v18  ;;  %4540 = vmatpush3.bf16.msra.mxu1 %v5224_v10  ;;  %v3036_v59 = vpack.c.bf16 %v3008_v34, %v3007_v33  ;;  %v5984_v10 = vpack.c.bf16 %v3024_v24, %v3023_v17  ;;  %v5986_v18 = vpack.c.bf16 %v3026_v5, %v3025_v55  ;;  %v1534_v33 = vld [vmem:[#allocation2 + $0x107] sm:$0xff]  ;;  %v1535_v34 = vld [vmem:[#allocation2 + $0x10f] sm:$0xff] }
  0xef   : > { %4541 = vmatprep.subr.bf16.mxu1 %v5226_v12  ;;  %v1546_v17 = vld [vmem:[#allocation2 + $0x1c7] sm:$0xff]  ;;  %v1547_v24 = vld [vmem:[#allocation2 + $0x1cf] sm:$0xff] }
  0xf0   : > { %v3381_v32 = vld [vmem:[#allocation2 + $0xe9] sm:$0xff] }
  0xf1   : > { %v1549_v55 = vld [vmem:[#allocation2 + $0x1ef] sm:$0xff] }
  0xf2   : > { %4542 = vmatpush3.bf16.msra.mxu1 %v5226_v12  ;;  %v5235_v12 = vld [vmem:[%s6264_s3 + $0x110] sm:$0xff]  }
  0xf3   : > { %4815 = vmatprep.subr.bf16.mxu1 %v5939_v56  ;;  %v3383_v5 = vld [vmem:[#allocation2 + $0x109] sm:$0xff] }
  0xf4   : > { %4512 = vmatmul.mubr.bf16.gmra.mrb[16].mxu1 %v5781_v40  ;;  %v5228_v40 = vld [vmem:[%s6264_s3 + $0x218] sm:$0xff]  }
  0xf5   : > { %4736 = vmatmul.mubr.bf16.vlgmr.msra.gmra.mrb[0].mxu0 %v3034_v29  ;;  %4515 = vmatprep.mubr.bf16.mxu1 %v5794_v22  ;;  %v3011_v22 = vld [vmem:[#allocation2 + $0xe8] sm:$0xff]  ;;  %v5236_v29 = vld [vmem:[%s6264_s3 + $0x118] sm:$0xff]  }
  0xf6   : > { %4739 = vmatprep.mubr.bf16.mxu0 %v3035_v11  ;;  %4768 = vmatpush3.bf16.msra.mxu0 %v5893_v58  ;;  %v3038_v0 = vpack.c.bf16 %v3012_v2, %v3011_v22  ;;  %v5974_v58 = vpack.c.bf16 %v3020_v49, %v3019_v43  ;;  %v1557_v11 = vpack.c.bf16 %v1531_v36, %v1530_v28  ;;  %v5238_v22 = vld [vmem:[%s6264_s3 + $0x128] sm:$0xff]   ;;  %v3378_v49 = vld [vmem:[#allocation2 + $0xb1] sm:$0xff] }
  0xf7   : > { %4769 = vmatprep.subr.bf16.mxu0 %v5225_v16  ;;  %v1559_v2 = vpack.c.bf16 %v1535_v34, %v1534_v33  ;;  %v3377_v43 = vld [vmem:[#allocation2 + $0xa9] sm:$0xff]  ;;  %v3390_v34 = vld [vmem:[#allocation2 + $0x171] sm:$0xff] }
  0xf8   : > { %v3389_v33 = vld [vmem:[#allocation2 + $0x169] sm:$0xff] }
  0xfa   : > { %4770 = vmatpush3.bf16.msra.mxu0 %v5225_v16  ;;  %v1558_v16 = vpack.c.bf16 %v1533_v20, %v1532_v44  ;;  %v3385_v44 = vld [vmem:[#allocation2 + $0x129] sm:$0xff]  ;;  %v3386_v20 = vld [vmem:[#allocation2 + $0x131] sm:$0xff] }
  0xfb   : > { %4771 = vmatprep.subr.bf16.mxu0 %v5227_v19 }
  0xfc   : > { %4516 = vmatmul.mubr.bf16.gmra.mrb[20].mxu1 %v5796_v31  ;;  %v5230_v31 = vld [vmem:[%s6264_s3 + $0x228] sm:$0xff]  }
  0xfd   : > { %4740 = vmatmul.mubr.bf16.gmra.mrb[4].mxu0 %v3036_v59  ;;  %4519 = vmatprep.mubr.bf16.mxu1 %v5810_v61  ;;  %v3015_v61 = vld [vmem:[#allocation2 + $0x128] sm:$0xff] }
  0xfe   : > { %4743 = vmatprep.mubr.bf16.mxu0 %v3037_v60  ;;  %4772 = vmatpush3.bf16.msra.mxu0 %v5227_v19  ;;  %v5964_v38 = vpack.c.bf16 %v3016_v9, %v3015_v61  ;;  %v1536_v19 = vld [vmem:[#allocation2 + $0x127] sm:$0xff]  ;;  %v1537_v59 = vld [vmem:[#allocation2 + $0x12f] sm:$0xff] }
  0xff   : > { %4773 = vmatprep.subr.bf16.mxu0 %v5228_v40  ;;  %v3371_v60 = vld [vmem:[#allocation2 + $0x49] sm:$0xff] }
 0x100   : > { %v1540_v61 = vld [vmem:[#allocation2 + $0x167] sm:$0xff]  ;;  %v1541_v9 = vld [vmem:[#allocation2 + $0x16f] sm:$0xff] }
 0x102   : > { %4774 = vmatpush3.bf16.msra.mxu0 %v5228_v40  ;;  %v3372_v40 = vld [vmem:[#allocation2 + $0x51] sm:$0xff] }
 0x103   : > { %4775 = vmatprep.subr.bf16.mxu0 %v5229_v63  ;;  %v3403_v62 = vpack.c.bf16 %v3372_v40, %v3371_v60  ;;  %v3393_v60 = vld [vmem:[#allocation2 + $0x1a9] sm:$0xff]  ;;  %v3394_v40 = vld [vmem:[#allocation2 + $0x1b1] sm:$0xff] }
 0x104   : > { %4520 = vmatmul.mubr.bf16.gmra.mrb[24].mxu1 %v5812_v41  ;;  %v5966_v41 = vpack.c.bf16 %v3018_v27, %v3017_v52  ;;  %v5240_v52 = vld [vmem:[%s6264_s3 + $0x138] sm:$0xff]  }
 0x105   : > { %4744 = vmatmul.mubr.bf16.gmra.mrb[8].mxu0 %v3038_v0  ;;  %4523 = vmatprep.mubr.bf16.mxu1 %v5824_v3  ;;  %v5232_v3 = vld [vmem:[%s6264_s3 + $0x238] sm:$0xff]   ;;  %v1539_v0 = vld [vmem:[#allocation2 + $0x14f] sm:$0xff] }
 0x106   : > { %4747 = vmatprep.mubr.bf16.mxu0 %v3039_v1  ;;  %4776 = vmatpush3.bf16.msra.mxu0 %v5229_v63  ;;  %v1538_v63 = vld [vmem:[#allocation2 + $0x147] sm:$0xff] }
 0x107   : > { %4777 = vmatprep.subr.bf16.mxu0 %v5230_v31  ;;  %v3373_v1 = vld [vmem:[#allocation2 + $0x69] sm:$0xff]  ;;  %v1561_v27 = vpack.c.bf16 %v1539_v0, %v1538_v63  ;;  %v3400_v63 = vld [vmem:[#allocation2 + $0x211] sm:$0xff] }
 0x10a   : > { %4778 = vmatpush3.bf16.msra.mxu0 %v5230_v31  ;;  %v3374_v31 = vld [vmem:[#allocation2 + $0x71] sm:$0xff] }
 0x10b   : > { %4779 = vmatprep.subr.bf16.mxu0 %v5231_v25 }
 0x10c   : > { %4524 = vmatmul.mubr.bf16.gmra.mrb[28].mxu1 %v5826_v37  ;;  %v5976_v37 = vpack.c.bf16 %v3022_v42, %v3021_v26  ;;  %v3379_v26 = vld [vmem:[#allocation2 + $0xc9] sm:$0xff]  ;;  %v3380_v42 = vld [vmem:[#allocation2 + $0xd1] sm:$0xff] }
 0x10d   : > { %4748 = vmatmul.mubr.bf16.gmra.mrb[12].mxu0 %v5964_v38  ;;  %4543 = vmatprep.mubr.bf16.mxu1 %v1552_v39  ;;  %v1562_v39 = vpack.c.bf16 %v1541_v9, %v1540_v61  ;;  %v3407_v13 = vpack.c.bf16 %v3380_v42, %v3379_v26  ;;  %v1921_v61 = vld [vmem:[#allocation2 + $0x210] sm:$0xff] }
 0x10e   : > { %4751 = vmatprep.mubr.bf16.mxu0 %v5966_v41  ;;  %4780 = vmatpush3.bf16.msra.mxu0 %v5231_v25  ;;  %v3404_v25 = vpack.c.bf16 %v3374_v31, %v3373_v1  ;;  %v1920_v31 = vld [vmem:[#allocation2 + $0x208] sm:$0xff]  ;;  %v3402_v9 = vld [vmem:[#allocation2 + $0x231] sm:$0xff] }
 0x10f   : > { %4781 = vmatprep.subr.bf16.mxu0 %v5232_v3 }
 0x112   : > { %4782 = vmatpush3.bf16.msra.mxu0 %v5232_v3  ;;  %v3405_v3 = vpack.c.bf16 %v3376_v21, %v3375_v45 }
 0x114   : > { %4544 = vmatmul.mubr.bf16.vlgmr.msra.gmra.mrb[0].mxu1 %v1553_v50  ;;  %v1563_v50 = vpack.c.bf16 %v1543_v4, %v1542_v30 }
 0x115   : > { %4752 = vmatmul.mubr.bf16.gmra.mrb[16].mxu0 %v5974_v58  ;;  %4823 = vmatpush3.bf16.msra.mxu1 %v5939_v56  ;;  %v5237_v56 = vld [vmem:[%s6264_s3 + $0x120] sm:$0xff]  }
 0x116   : > { %4547 = vmatprep.mubr.bf16.mxu1 %v1554_v7  ;;  %4755 = vmatprep.mubr.bf16.mxu0 %v5976_v37  ;;  %v3406_v7 = vpack.c.bf16 %v3378_v49, %v3377_v43 }
 0x117   : > { %4816 = vmatprep.subr.bf16.mxu1 %v5234_v54 }
 0x119   : > { %4824 = vmatpush3.bf16.msra.mxu1 %v5234_v54  ;;  %v1548_v54 = vld [vmem:[#allocation2 + $0x1e7] sm:$0xff] }
 0x11a   : > { %4817 = vmatprep.subr.bf16.mxu1 %v5235_v12  ;;  %v1566_v28 = vpack.c.bf16 %v1549_v55, %v1548_v54 }
 0x11c   : > { %4548 = vmatmul.mubr.bf16.gmra.mrb[4].mxu1 %v1555_v6  ;;  %v3384_v6 = vld [vmem:[#allocation2 + $0x111] sm:$0xff] }
 0x11d   : > { %4756 = vmatmul.mubr.bf16.gmra.mrb[20].mxu0 %v5984_v10  ;;  %4551 = vmatprep.mubr.bf16.mxu1 %v1556_v23  ;;  %v1565_v23 = vpack.c.bf16 %v1547_v24, %v1546_v17  ;;  %v3409_v36 = vpack.c.bf16 %v3384_v6, %v3383_v5 }
 0x11e   : > { %4759 = vmatprep.mubr.bf16.mxu0 %v5986_v18  ;;  %4825 = vmatpush3.bf16.msra.mxu1 %v5235_v12  ;;  %v3408_v12 = vpack.c.bf16 %v3382_v53, %v3381_v32 }
 0x11f   : > { %4818 = vmatprep.subr.bf16.mxu1 %v5236_v29 }
 0x122   : > { %4826 = vmatpush3.bf16.msra.mxu1 %v5236_v29  ;;  %v3387_v29 = vld [vmem:[#allocation2 + $0x149] sm:$0xff] }
 0x123   : > { %4819 = vmatprep.subr.bf16.mxu1 %v5237_v56 }
 0x124   : > { %4552 = vmatmul.mubr.bf16.gmra.mrb[8].mxu1 %v1557_v11  ;;  %v3388_v11 = vld [vmem:[#allocation2 + $0x151] sm:$0xff] }
 0x125   : > { %4760 = vmatmul.mubr.bf16.gmra.mrb[24].mxu0 %v5706_v51  ;;  %4555 = vmatprep.mubr.bf16.mxu1 %v1558_v16  ;;  %v1560_v51 = vpack.c.bf16 %v1537_v59, %v1536_v19  ;;  %v3410_v16 = vpack.c.bf16 %v3386_v20, %v3385_v44  ;;  %v3412_v19 = vpack.c.bf16 %v3390_v34, %v3389_v33 }
 0x126   : > { %4763 = vmatprep.mubr.bf16.mxu0 %v5838_v48  ;;  %4827 = vmatpush3.bf16.msra.mxu1 %v5237_v56  ;;  %v5239_v48 = vld [vmem:[%s6264_s3 + $0x130] sm:$0xff]   ;;  %v3411_v56 = vpack.c.bf16 %v3388_v11, %v3387_v29  ;;  %v3413_v59 = vpack.c.bf16 %v3392_v57, %v3391_v35 }
 0x127   : > { %4820 = vmatprep.subr.bf16.mxu1 %v5238_v22 }
 0x12a   : > { %4828 = vmatpush3.bf16.msra.mxu1 %v5238_v22  ;;  %v3395_v22 = vld [vmem:[#allocation2 + $0x1c9] sm:$0xff] }
 0x12b   : > { %4821 = vmatprep.subr.bf16.mxu1 %v5239_v48 }
 0x12c   : > { %4556 = vmatmul.mubr.bf16.gmra.mrb[12].mxu1 %v1559_v2  ;;  %v3414_v2 = vpack.c.bf16 %v3394_v40, %v3393_v60 }
 0x12d   : > { %4764 = vmatmul.mubr.bf16.gmra.mrb[28].mxu0 %v3048_v46  ;;  %4559 = vmatprep.mubr.bf16.mxu1 %v1560_v51  ;;  %v3398_v51 = vld [vmem:[#allocation2 + $0x1f1] sm:$0xff] }
 0x12e   : > { %4783 = vmatprep.mubr.bf16.mxu0 %v3403_v62  ;;  %4829 = vmatpush3.bf16.msra.mxu1 %v5239_v48  ;;  %v1918_v62 = vld [vmem:[#allocation2 + $0x1e8] sm:$0xff] }
 0x12f   : > { %4822 = vmatprep.subr.bf16.mxu1 %v5240_v52  ;;  %v3399_v48 = vld [vmem:[#allocation2 + $0x209] sm:$0xff] }
 0x130   : > { %v3417_v1 = vpack.c.bf16 %v3400_v63, %v3399_v48 }
 0x132   : > { %4830 = vmatpush3.bf16.msra.mxu1 %v5240_v52 }
 0x134   : > { %4560 = vmatmul.mubr.bf16.gmra.mrb[16].mxu1 %v1561_v27 }
 0x135   : > { %4784 = vmatmul.mubr.bf16.vlgmr.msra.gmra.mrb[0].mxu0 %v3404_v25  ;;  %4563 = vmatprep.mubr.bf16.mxu1 %v1562_v39 }
 0x136   : > { %4787 = vmatprep.mubr.bf16.mxu0 %v3405_v3 }
 0x13c   : > { %4564 = vmatmul.mubr.bf16.gmra.mrb[20].mxu1 %v1563_v50 }
 0x13d   : > { %4788 = vmatmul.mubr.bf16.gmra.mrb[4].mxu0 %v3406_v7  ;;  %4567 = vmatprep.mubr.bf16.mxu1 %v1564_v8 }
 0x13e   : > { %4791 = vmatprep.mubr.bf16.mxu0 %v3407_v13 }
 0x144   : > { %4568 = vmatmul.mubr.bf16.gmra.mrb[24].mxu1 %v1565_v23 }
 0x145   : > { %4792 = vmatmul.mubr.bf16.gmra.mrb[8].mxu0 %v3408_v12  ;;  %4571 = vmatprep.mubr.bf16.mxu1 %v1566_v28 }
 0x146   : > { %4795 = vmatprep.mubr.bf16.mxu0 %v3409_v36 }
 0x14c   : > { %4572 = vmatmul.mubr.bf16.gmra.mrb[28].mxu1 %v5916_v47  ;;  %v3396_v47 = vld [vmem:[#allocation2 + $0x1d1] sm:$0xff] }
 0x14d   : > { %4796 = vmatmul.mubr.bf16.gmra.mrb[12].mxu0 %v3410_v16  ;;  %4607 = vmatprep.mubr.bf16.mxu1 %v5964_v38  ;;  %v3415_v46 = vpack.c.bf16 %v3396_v47, %v3395_v22  ;;  %v3397_v38 = vld [vmem:[#allocation2 + $0x1e9] sm:$0xff] }
 0x14e   : > { %4799 = vmatprep.mubr.bf16.mxu0 %v3411_v56 }
 0x154   : > { %4608 = vmatmul.mubr.bf16.vlgmr.msra.gmra.mrb[16].mxu1 %v5966_v41  ;;  %v1919_v41 = vld [vmem:[#allocation2 + $0x1f0] sm:$0xff] }
 0x155   : > { %4800 = vmatmul.mubr.bf16.gmra.mrb[16].mxu0 %v3412_v19  ;;  %4611 = vmatprep.mubr.bf16.mxu1 %v5974_v58  ;;  %v3416_v58 = vpack.c.bf16 %v3398_v51, %v3397_v38  ;;  %v1936_v0 = vpack.c.bf16 %v1919_v41, %v1918_v62 }
 0x156   : > { %4803 = vmatprep.mubr.bf16.mxu0 %v3413_v59 }
 0x15c   : > { %4612 = vmatmul.mubr.bf16.gmra.mrb[20].mxu1 %v5976_v37  ;;  %v3401_v37 = vld [vmem:[#allocation2 + $0x229] sm:$0xff] }
 0x15d   : > { %4804 = vmatmul.mubr.bf16.gmra.mrb[20].mxu0 %v3414_v2  ;;  %4615 = vmatprep.mubr.bf16.mxu1 %v5984_v10  ;;  %v1937_v10 = vpack.c.bf16 %v1921_v61, %v1920_v31  ;;  %v3418_v45 = vpack.c.bf16 %v3402_v9, %v3401_v37 }
 0x15e   : > { %4807 = vmatprep.mubr.bf16.mxu0 %v3415_v46 }
 0x164   : > { %4616 = vmatmul.mubr.bf16.gmra.mrb[24].mxu1 %v5986_v18 }
 0x165   : > { %4808 = vmatmul.mubr.bf16.gmra.mrb[24].mxu0 %v3416_v58  ;;  %4619 = vmatprep.mubr.bf16.mxu1 %v1936_v0 }
 0x166   : > { %4811 = vmatprep.mubr.bf16.mxu0 %v3417_v1 }
 0x16c   : > { %4620 = vmatmul.mubr.bf16.gmra.mrb[28].mxu1 %v1937_v10 }
 0x16d   : > { %4812 = vmatmul.mubr.bf16.gmra.mrb[28].mxu0 %v3418_v45 }
 0x1e7   : > { %v4545_v21 = vpop.f32.mrb[0].mxu1 }
 0x1e8   : > { %v1667_v52 = vpop.f32.mrb[1].mxu1 }
 0x1e9   : > { %v4546_v27 = vpop.f32.mrb[2].mxu1 }
 0x1ea   : > { %v1670_v25 = vpop.f32.mrb[3].mxu1 }
 0x1ef   : > { %v4549_v39 = vpop.f32.mrb[4].mxu1 }
 0x1f0   : > { %v1683_v3 = vpop.f32.mrb[5].mxu1 }
 0x1f1   : > { %v4550_v30 = vpop.f32.mrb[6].mxu1 }
 0x1f2   : > { %v1686_v18 = vpop.f32.mrb[7].mxu1 }
 0x1f7   : > { %v4553_v4 = vpop.f32.mrb[8].mxu1 }
 0x1f8   : > { %v1699_v43 = vpop.f32.mrb[9].mxu1 }
 0x1f9   : > { %v4554_v49 = vpop.f32.mrb[10].mxu1 }
 0x1fa   : > { %v1702_v14 = vpop.f32.mrb[11].mxu1 }
 0x1ff   : > { %v4557_v15 = vpop.f32.mrb[12].mxu1 }
 0x200   : > { %v1715_v26 = vpop.f32.mrb[13].mxu1 }
 0x201   : > { %v4558_v42 = vpop.f32.mrb[14].mxu1 }
 0x202   : > { %v1718_v50 = vpop.f32.mrb[15].mxu1 }
 0x208   : > { %v4785_v7 = vpop.f32.mrb[0].mxu0 }
 0x209   : > { %v6017_v8 = vadd.f32 %v4785_v7, %v4545_v21  ;;  %v3518_v13 = vpop.f32.mrb[1].mxu0 }
 0x20a   : > { %v6019_v17 = vadd.f32 %v3518_v13, %v1667_v52  ;;  %v4786_v24 = vpop.f32.mrb[2].mxu0 }
 0x20b   : > { %3711 = vst [vmem:[%s5301_s27 + $0x10] sm:$0xff] %v6017_v8  ;;  %v6023_v32 = vadd.f32 %v4786_v24, %v4546_v27  ;;  %v3521_v53 = vpop.f32.mrb[3].mxu0 }
 0x20c   : > { %3709 = vst [vmem:[%s5301_s27] sm:$0xff] %v6019_v17  ;;  %v6027_v54 = vadd.f32 %v3521_v53, %v1670_v25 }
 0x20d   : > { %3712 = vst [vmem:[%s5301_s27 + $0x18] sm:$0xff] %v6023_v32 }
 0x20e   : > { %3710 = vst [vmem:[%s5301_s27 + $0x8] sm:$0xff] %v6027_v54 }
 0x210   : > { %v4789_v55 = vpop.f32.mrb[4].mxu0 }
 0x211   : > { %v6033_v5 = vadd.f32 %v4789_v55, %v4549_v39  ;;  %v3534_v6 = vpop.f32.mrb[5].mxu0 }
 0x212   : > { %v6035_v23 = vadd.f32 %v3534_v6, %v1683_v3  ;;  %v4790_v12 = vpop.f32.mrb[6].mxu0 }
 0x213   : > { %3715 = vst [vmem:[%s5301_s27 + $0x30] sm:$0xff] %v6033_v5  ;;  %v6039_v28 = vadd.f32 %v4790_v12, %v4550_v30  ;;  %v3537_v36 = vpop.f32.mrb[7].mxu0 }
 0x214   : > { %3713 = vst [vmem:[%s5301_s27 + $0x20] sm:$0xff] %v6035_v23  ;;  %v6043_v44 = vadd.f32 %v3537_v36, %v1686_v18 }
 0x215   : > { %3716 = vst [vmem:[%s5301_s27 + $0x38] sm:$0xff] %v6039_v28 }
 0x216   : > { %3714 = vst [vmem:[%s5301_s27 + $0x28] sm:$0xff] %v6043_v44 }
 0x218   : > { %v4793_v20 = vpop.f32.mrb[8].mxu0 }
 0x219   : > { %v6049_v29 = vadd.f32 %v4793_v20, %v4553_v4  ;;  %v3550_v11 = vpop.f32.mrb[9].mxu0 }
 0x21a   : > { %v6051_v16 = vadd.f32 %v3550_v11, %v1699_v43  ;;  %v4794_v56 = vpop.f32.mrb[10].mxu0 }
 0x21b   : > { %3719 = vst [vmem:[%s5301_s27 + $0x50] sm:$0xff] %v6049_v29  ;;  %v6055_v33 = vadd.f32 %v4794_v56, %v4554_v49  ;;  %v3553_v34 = vpop.f32.mrb[11].mxu0 }
 0x21c   : > { %3717 = vst [vmem:[%s5301_s27 + $0x40] sm:$0xff] %v6051_v16  ;;  %v6059_v35 = vadd.f32 %v3553_v34, %v1702_v14 }
 0x21d   : > { %3720 = vst [vmem:[%s5301_s27 + $0x58] sm:$0xff] %v6055_v33 }
 0x21e   : > { %3718 = vst [vmem:[%s5301_s27 + $0x48] sm:$0xff] %v6059_v35 }
 0x220   : > { %v4797_v57 = vpop.f32.mrb[12].mxu0 }
 0x221   : > { %v6065_v19 = vadd.f32 %v4797_v57, %v4557_v15  ;;  %v3566_v59 = vpop.f32.mrb[13].mxu0 }
 0x222   : > { %v6067_v60 = vadd.f32 %v3566_v59, %v1715_v26  ;;  %v4798_v40 = vpop.f32.mrb[14].mxu0 }
 0x223   : > { %3723 = vst [vmem:[%s5301_s27 + $0x70] sm:$0xff] %v6065_v19  ;;  %v6071_v22 = vadd.f32 %v4798_v40, %v4558_v42  ;;  %v3569_v47 = vpop.f32.mrb[15].mxu0 }
 0x224   : > { %3721 = vst [vmem:[%s5301_s27 + $0x60] sm:$0xff] %v6067_v60  ;;  %v6075_v2 = vadd.f32 %v3569_v47, %v1718_v50 }
 0x225   : > { %3724 = vst [vmem:[%s5301_s27 + $0x78] sm:$0xff] %v6071_v22 }
 0x226   : > { %3722 = vst [vmem:[%s5301_s27 + $0x68] sm:$0xff] %v6075_v2 }
 0x227   : > { %v4609_v46 = vpop.f32.mrb[16].mxu1 }
 0x228   : > { %v4801_v38 = vpop.f32.mrb[16].mxu0  ;;  %v2101_v51 = vpop.f32.mrb[17].mxu1 }
 0x229   : > { %v6081_v62 = vadd.f32 %v4801_v38, %v4609_v46  ;;  %v3582_v41 = vpop.f32.mrb[17].mxu0  ;;  %v4610_v48 = vpop.f32.mrb[18].mxu1  ;;  %v5250_v46 = vmov (!%p3959_p4), 0.0  }
 0x22a   : > { %v6083_v63 = vadd.f32 %v3582_v41, %v2101_v51  ;;  %v4802_v58 = vpop.f32.mrb[18].mxu0  ;;  %v2104_v0 = vpop.f32.mrb[19].mxu1  ;;  %3776 = vst [vmem:[%s6266_s5] sm:$0x3] (!%p3959_p4), %v5250_v46 }
 0x22b   : > { %3727 = vst [vmem:[%s5301_s27 + $0x90] sm:$0xff] %v6081_v62  ;;  %v6087_v1 = vadd.f32 %v4802_v58, %v4610_v48  ;;  %v3585_v31 = vpop.f32.mrb[19].mxu0 }
 0x22c   : > { %3725 = vst [vmem:[%s5301_s27 + $0x80] sm:$0xff] %v6083_v63  ;;  %v6091_v61 = vadd.f32 %v3585_v31, %v2104_v0 }
 0x22d   : > { %3728 = vst [vmem:[%s5301_s27 + $0x98] sm:$0xff] %v6087_v1 }
 0x22e   : > { %3726 = vst [vmem:[%s5301_s27 + $0x88] sm:$0xff] %v6091_v61 }
 0x22f   : > { %v4613_v37 = vpop.f32.mrb[20].mxu1 }
 0x230   : > { %v4805_v9 = vpop.f32.mrb[20].mxu0  ;;  %v2117_v10 = vpop.f32.mrb[21].mxu1 }
 0x231   : > { %v6097_v45 = vadd.f32 %v4805_v9, %v4613_v37  ;;  %v3598_v21 = vpop.f32.mrb[21].mxu0  ;;  %v4614_v52 = vpop.f32.mrb[22].mxu1 }
 0x232   : > { %v6099_v27 = vadd.f32 %v3598_v21, %v2117_v10  ;;  %v4806_v25 = vpop.f32.mrb[22].mxu0  ;;  %v2120_v39 = vpop.f32.mrb[23].mxu1 }
 0x233   : > { %3731 = vst [vmem:[%s5301_s27 + $0xb0] sm:$0xff] %v6097_v45  ;;  %v6103_v3 = vadd.f32 %v4806_v25, %v4614_v52  ;;  %v3601_v30 = vpop.f32.mrb[23].mxu0 }
 0x234   : > { %3729 = vst [vmem:[%s5301_s27 + $0xa0] sm:$0xff] %v6099_v27  ;;  %v6107_v18 = vadd.f32 %v3601_v30, %v2120_v39 }
 0x235   : > { %3732 = vst [vmem:[%s5301_s27 + $0xb8] sm:$0xff] %v6103_v3 }
 0x236   : > { %3730 = vst [vmem:[%s5301_s27 + $0xa8] sm:$0xff] %v6107_v18 }
 0x237   : > { %v4617_v4 = vpop.f32.mrb[24].mxu1 }
 0x238   : > { %v4809_v43 = vpop.f32.mrb[24].mxu0  ;;  %v2133_v49 = vpop.f32.mrb[25].mxu1 }
 0x239   : > { %v6113_v14 = vadd.f32 %v4809_v43, %v4617_v4  ;;  %v3614_v15 = vpop.f32.mrb[25].mxu0  ;;  %v4618_v26 = vpop.f32.mrb[26].mxu1 }
 0x23a   : > { %v6115_v42 = vadd.f32 %v3614_v15, %v2133_v49  ;;  %v4810_v50 = vpop.f32.mrb[26].mxu0  ;;  %v2136_v7 = vpop.f32.mrb[27].mxu1 }
 0x23b   : > { %3735 = vst [vmem:[%s5301_s27 + $0xd0] sm:$0xff] %v6113_v14  ;;  %v6119_v13 = vadd.f32 %v4810_v50, %v4618_v26  ;;  %v3617_v24 = vpop.f32.mrb[27].mxu0 }
 0x23c   : > { %3733 = vst [vmem:[%s5301_s27 + $0xc0] sm:$0xff] %v6115_v42  ;;  %v6123_v53 = vadd.f32 %v3617_v24, %v2136_v7 }
 0x23d   : > { %3736 = vst [vmem:[%s5301_s27 + $0xd8] sm:$0xff] %v6119_v13 }
 0x23e   : > { %3734 = vst [vmem:[%s5301_s27 + $0xc8] sm:$0xff] %v6123_v53 }
 0x23f   : > { %v4621_v55 = vpop.f32.mrb[28].mxu1 }
 0x240   : > { %v4813_v6 = vpop.f32.mrb[28].mxu0  ;;  %v2149_v12 = vpop.f32.mrb[29].mxu1  ;;  %3775 = sbr.rel (%p3959_p4) target bundleno = 583 (0x247), region = 44 }
 0x241   : > { %v6129_v36 = vadd.f32 %v4813_v6, %v4621_v55  ;;  %v3630_v20 = vpop.f32.mrb[29].mxu0  ;;  %v4622_v11 = vpop.f32.mrb[30].mxu1 }
 0x242   : > { %v6131_v56 = vadd.f32 %v3630_v20, %v2149_v12  ;;  %v4814_v34 = vpop.f32.mrb[30].mxu0  ;;  %v2152_v57 = vpop.f32.mrb[31].mxu1 }
 0x243   : > { %3739 = vst [vmem:[%s5301_s27 + $0xf0] sm:$0xff] %v6129_v36  ;;  %v6135_v59 = vadd.f32 %v4814_v34, %v4622_v11  ;;  %v3633_v40 = vpop.f32.mrb[31].mxu0 }
 0x244   : > { %3737 = vst [vmem:[%s5301_s27 + $0xe0] sm:$0xff] %v6131_v56  ;;  %v6139_v47 = vadd.f32 %v3633_v40, %v2152_v57 }
 0x245   : > { %3740 = vst [vmem:[%s5301_s27 + $0xf8] sm:$0xff] %v6135_v59 }
 0x246   : > { %3738 = vst [vmem:[%s5301_s27 + $0xe8] sm:$0xff] %v6139_v47 }
 0x247 PF: > { %v3778_v38 = vadd.f32 %v6027_v54, %v6019_v17  ;;  %v3818_v48 = vmul.f32 %v6019_v17, %v6019_v17  ;;  %v3819_v58 = vmul.f32 %v6027_v54, %v6027_v54  ;;  %v3820_v31 = vmul.f32 %v6017_v8, %v6017_v8 }
 0x248   : > { %v3821_v9 = vmul.f32 %v6023_v32, %v6023_v32  ;;  %v3822_v52 = vmul.f32 %v6035_v23, %v6035_v23  ;;  %v3823_v54 = vmul.f32 %v6043_v44, %v6043_v44  ;;  %v3824_v30 = vmul.f32 %v6033_v5, %v6033_v5 }
 0x249   : > { %v3779_v51 = vadd.f32 %v6017_v8, %v3778_v38  ;;  %v3850_v10 = vadd.f32 %v3819_v58, %v3818_v48  ;;  %v3825_v43 = vmul.f32 %v6039_v28, %v6039_v28  ;;  %v3826_v15 = vmul.f32 %v6051_v16, %v6051_v16 }
 0x24a   : > { %v3827_v50 = vmul.f32 %v6059_v35, %v6059_v35  ;;  %v3828_v24 = vmul.f32 %v6049_v29, %v6049_v29  ;;  %v3829_v6 = vmul.f32 %v6055_v33, %v6055_v33  ;;  %v3830_v20 = vmul.f32 %v6067_v60, %v6067_v60 }
 0x24b   : > { %v3780_v41 = vadd.f32 %v6023_v32, %v3779_v51  ;;  %v3851_v17 = vadd.f32 %v3850_v10, %v3820_v31  ;;  %v3831_v34 = vmul.f32 %v6075_v2, %v6075_v2  ;;  %v3832_v40 = vmul.f32 %v6065_v19, %v6065_v19 }
 0x24c   : > { %v3833_v38 = vmul.f32 %v6071_v22, %v6071_v22  ;;  %v3835_v58 = vmul.f32 %v6091_v61, %v6091_v61  ;;  %v3836_v31 = vmul.f32 %v6081_v62, %v6081_v62 }
 0x24d   : > { %v3781_v0 = vadd.f32 %v6035_v23, %v3780_v41  ;;  %v3852_v39 = vadd.f32 %v3851_v17, %v3821_v9  ;;  %v3834_v41 = vmul.f32 %v6083_v63, %v6083_v63  ;;  %v3837_v9 = vmul.f32 %v6087_v1, %v6087_v1 }
 0x24e   : > { %v3839_v17 = vmul.f32 %v6107_v18, %v6107_v18 }
 0x24f   : > { %v3782_v37 = vadd.f32 %v6043_v44, %v3781_v0  ;;  %v3853_v4 = vadd.f32 %v3852_v39, %v3822_v52 }
 0x251   : > { %v3783_v21 = vadd.f32 %v6033_v5, %v3782_v37  ;;  %v3854_v49 = vadd.f32 %v3853_v4, %v3823_v54  ;;  %v3840_v54 = vmul.f32 %v6097_v45, %v6097_v45  ;;  %v3842_v4 = vmul.f32 %v6115_v42, %v6115_v42 }
 0x253   : > { %v3784_v25 = vadd.f32 %v6039_v28, %v3783_v21  ;;  %v3855_v26 = vadd.f32 %v3854_v49, %v3824_v30  ;;  %v3838_v21 = vmul.f32 %v6099_v27, %v6099_v27 }
 0x255   : > { %v3785_v8 = vadd.f32 %v6051_v16, %v3784_v25  ;;  %v3856_v7 = vadd.f32 %v3855_v26, %v3825_v43  ;;  %v3843_v43 = vmul.f32 %v6123_v53, %v6123_v53  ;;  %v3845_v26 = vmul.f32 %v6119_v13, %v6119_v13 }
 0x257   : > { %v3786_v32 = vadd.f32 %v6059_v35, %v3785_v8  ;;  %v3857_v55 = vadd.f32 %v3856_v7, %v3826_v15  ;;  %v3841_v8 = vmul.f32 %v6103_v3, %v6103_v3 }
 0x259   : > { %v3787_v23 = vadd.f32 %v6049_v29, %v3786_v32  ;;  %v3858_v12 = vadd.f32 %v3857_v55, %v3827_v50  ;;  %v3846_v50 = vmul.f32 %v6131_v56, %v6131_v56  ;;  %v3848_v55 = vmul.f32 %v6129_v36, %v6129_v36 }
 0x25b   : > { %v3788_v44 = vadd.f32 %v6055_v33, %v3787_v23  ;;  %v3859_v11 = vadd.f32 %v3858_v12, %v3828_v24  ;;  %v3844_v23 = vmul.f32 %v6113_v14, %v6113_v14 }
 0x25d   : > { %v3789_v5 = vadd.f32 %v6067_v60, %v3788_v44  ;;  %v3860_v57 = vadd.f32 %v3859_v11, %v3829_v6 }
 0x25f   : > { %v3790_v28 = vadd.f32 %v6075_v2, %v3789_v5  ;;  %v3861_v46 = vadd.f32 %v3860_v57, %v3830_v20  ;;  %v3847_v5 = vmul.f32 %v6139_v47, %v6139_v47 }
 0x261   : > { %v3791_v16 = vadd.f32 %v6065_v19, %v3790_v28  ;;  %v3862_v51 = vadd.f32 %v3861_v46, %v3831_v34 }
 0x263   : > { %v3792_v35 = vadd.f32 %v6071_v22, %v3791_v16  ;;  %v3863_v48 = vadd.f32 %v3862_v51, %v3832_v40 }
 0x265   : > { %v3793_v29 = vadd.f32 %v6083_v63, %v3792_v35  ;;  %v3864_v0 = vadd.f32 %v3863_v48, %v3833_v38 }
 0x267   : > { %v3794_v33 = vadd.f32 %v6091_v61, %v3793_v29  ;;  %v3865_v37 = vadd.f32 %v3864_v0, %v3834_v41 }
 0x269   : > { %v3795_v60 = vadd.f32 %v6081_v62, %v3794_v33  ;;  %v3866_v10 = vadd.f32 %v3865_v37, %v3835_v58  ;;  %v3817_v33 = vld [vmem:[%s6266_s5 + $0x1] sm:$0x1] }
 0x26b   : > { %v3796_v2 = vadd.f32 %v6087_v1, %v3795_v60  ;;  %v3867_v52 = vadd.f32 %v3866_v10, %v3836_v31 }
 0x26d   : > { %v3797_v19 = vadd.f32 %v6099_v27, %v3796_v2  ;;  %v3868_v25 = vadd.f32 %v3867_v52, %v3837_v9 }
 0x26f   : > { %v3798_v22 = vadd.f32 %v6107_v18, %v3797_v19  ;;  %v3869_v39 = vadd.f32 %v3868_v25, %v3838_v21 }
 0x271   : > { %v3799_v63 = vadd.f32 %v6097_v45, %v3798_v22  ;;  %v3870_v30 = vadd.f32 %v3869_v39, %v3839_v17 }
 0x273   : > { %v3800_v61 = vadd.f32 %v6103_v3, %v3799_v63  ;;  %v3871_v32 = vadd.f32 %v3870_v30, %v3840_v54 }
 0x275   : > { %v3801_v62 = vadd.f32 %v6115_v42, %v3800_v61  ;;  %v3872_v49 = vadd.f32 %v3871_v32, %v3841_v8 }
 0x277   : > { %v3802_v1 = vadd.f32 %v6123_v53, %v3801_v62  ;;  %v3873_v15 = vadd.f32 %v3872_v49, %v3842_v4 }
 0x279   : > { %v3803_v27 = vadd.f32 %v6113_v14, %v3802_v1  ;;  %v3874_v44 = vadd.f32 %v3873_v15, %v3843_v43 }
 0x27b   : > { %v3804_v18 = vadd.f32 %v6119_v13, %v3803_v27  ;;  %v3875_v7 = vadd.f32 %v3874_v44, %v3844_v23  ;;  %v3849_v13 = vmul.f32 %v6135_v59, %v6135_v59 }
 0x27d   : > { %v3805_v45 = vadd.f32 %v6131_v56, %v3804_v18  ;;  %v3876_v24 = vadd.f32 %v3875_v7, %v3845_v26 }
 0x27f   : > { %v3806_v3 = vadd.f32 %v6139_v47, %v3805_v45  ;;  %v3877_v28 = vadd.f32 %v3876_v24, %v3846_v50  ;;  %v3777_v47 = vld [vmem:[%s6266_s5] sm:$0x1] }
 0x281   : > { %v3807_v42 = vadd.f32 %v6129_v36, %v3806_v3  ;;  %v3878_v12 = vadd.f32 %v3877_v28, %v3847_v5 }
 0x283   : > { %v3808_v53 = vadd.f32 %v6135_v59, %v3807_v42  ;;  %v3879_v20 = vadd.f32 %v3878_v12, %v3848_v55 }
 0x285   : > { %v3809_v14 = vrot.slane %v3808_v53, 4  ;;  %v3880_v11 = vadd.f32 %v3879_v20, %v3849_v13 }
 0x287   : > { %v3810_v6 = vadd.f32 %v3809_v14, %v3808_v53  ;;  %v3881_v34 = vrot.slane %v3880_v11, 4 }
 0x289   : > { %v3811_v16 = vrot.slane %v3810_v6, 2  ;;  %v3882_v29 = vadd.f32 %v3881_v34, %v3880_v11 }
 0x28b   : > { %v3812_v56 = vadd.f32 %v3811_v16, %v3810_v6  ;;  %v3883_v36 = vrot.slane %v3882_v29, 2 }
 0x28d   : > { %v3813_v35 = vrot.slane %v3812_v56, 1  ;;  %v3884_v59 = vadd.f32 %v3883_v36, %v3882_v29 }
 0x28f   : > { %v3814_v57 = vadd.f32 %v3813_v35, %v3812_v56  ;;  %v3885_v46 = vrot.slane %v3884_v59, 1 }
 0x291   : > { %v3815_v40 = vadd.f32 %v3814_v57, %v3777_v47  ;;  %v3886_v38 = vadd.f32 %v3885_v46, %v3884_v59 }
 0x293   : > { %3816 = vst [vmem:[%s6266_s5] sm:$0x1] %v3815_v40  ;;  %v3887_v51 = vadd.f32 %v3886_v38, %v3817_v33 }
 0x295   : > { %3888 = vst [vmem:[%s6266_s5 + $0x1] sm:$0x1] %v3887_v51 }
 0x296 PF: > { %s16_s18 = sadd.s32 1, %s5247_s18  }
 0x297   : > { %p13_p5 = scmp.ge.s32.totalorder %s16_s18, 6  }
 0x299   :  { %15 = sbr.rel (!%p13_p5) target bundleno = 1 (0x1), region = 92 }

</bundles_post_ra>
